<compile_context>
chip_gen: v5e
topology: v5e:2x2
jax: 0.10.0
libtpu: 0.0.40
codegen_flags: <defaults>
</compile_context>

<pallas_src>
import math

import jax
import jax.numpy as jnp
from jax.experimental import pallas as pl
from jax.experimental.pallas import tpu as pltpu

# ----------------------------- model / graph dims (small) -----------------------------
NODE_TYPES = ["hierarchy", "protocol", "impression", "treatment"]
EDGE_TYPES = [
    ("protocol", "is children of", "hierarchy"),
    ("protocol", "has", "impression"),
    ("protocol", "suggests", "treatment"),
    ("hierarchy", "is parent of", "protocol"),
    ("impression", "indicates", "protocol"),
    ("treatment", "is suggested by", "protocol"),
]
TYPE_ID = {n: i for i, n in enumerate(NODE_TYPES)}
EDGE_SRC = tuple(TYPE_ID[e[0]] for e in EDGE_TYPES)
EDGE_DST = tuple(TYPE_ID[e[2]] for e in EDGE_TYPES)
PROTOCOL = TYPE_ID["protocol"]

NTYPES = len(NODE_TYPES)        # 4 node types
NREL = len(EDGE_TYPES)          # 6 edge types
N_NODES = 16                    # nodes per node type
C_IN = 16                       # in_channels
HID = 32                        # hidden_channels
HEADS = 2                       # num_heads
HEAD_DIM = HID // HEADS         # 16
C_OUT = 8                       # out_channels
NUM_LAYERS = 2
E_PER_REL = 40                  # synthetic edges per relation


# ----------------------------- fused HGT kernel -----------------------------
def hgt_kernel(x_ref, adj_ref,
               w_in_ref, b_in_ref,
               w_kqv_ref, b_kqv_ref,
               a_rel_ref, m_rel_ref,
               w_a_ref, b_a_ref, beta_ref,
               w_out_ref, b_out_ref,
               o_ref):
    """Whole HGT forward (input linears + all HGTConv layers + classifier) in one
    kernel invocation; all intermediates stay in VMEM / vregs."""
    f32 = jnp.float32

    # 1) per-node-type input Linear + ReLU
    h = []
    for t in range(NTYPES):
        ht = jnp.dot(x_ref[t], w_in_ref[t], preferred_element_type=f32) + b_in_ref[t]
        h.append(jnp.maximum(ht, 0.0))

    beta_all = beta_ref[...]                        # (NUM_LAYERS, NTYPES) = sigmoid(skip)

    # 2) HGTConv layers (statically unrolled)
    for l in range(NUM_LAYERS):
        # fused K|Q|V projection per node type: one (N,H) @ (H,3H) matmul each
        k, q, v = [], [], []
        for t in range(NTYPES):
            kqv = (jnp.dot(h[t], w_kqv_ref[l, t], preferred_element_type=f32)
                   + b_kqv_ref[l, t])
            k.append(kqv[:, 0 * HID:1 * HID])
            q.append(kqv[:, 1 * HID:2 * HID])
            v.append(kqv[:, 2 * HID:3 * HID])

        agg = [jnp.zeros((N_NODES, HID), f32) for _ in range(NTYPES)]

        for r in range(NREL):
            st, dt = EDGE_SRC[r], EDGE_DST[r]
            # relation transforms: block-diagonal over heads (p_rel/sqrt(D) folded in a_rel)
            k_rel = jnp.dot(k[st], a_rel_ref[l, r], preferred_element_type=f32)   # (N, HID)
            v_rel = jnp.dot(v[st], m_rel_ref[l, r], preferred_element_type=f32)   # (N, HID)
            mask = adj_ref[r]                                                      # (N_dst, N_src)

            ctx_heads = []
            for hd in range(HEADS):
                sl = slice(hd * HEAD_DIM, (hd + 1) * HEAD_DIM)
                qh, kh, vh = q[dt][:, sl], k_rel[:, sl], v_rel[:, sl]
                # q . k^T via dot_general contracting last dims (no materialized transpose)
                logits = jax.lax.dot_general(qh, kh, (((1,), (1,)), ((), ())),
                                             preferred_element_type=f32)           # (N_dst, N_src)
                logits = jnp.where(mask > 0.0, logits, f32(-1e30))
                mx = jnp.max(logits, axis=-1, keepdims=True)
                p = jnp.exp(logits - mx) * mask
                denom = jnp.sum(p, axis=-1, keepdims=True)
                # EUP approx reciprocal; +1e-30 keeps dst nodes with no incoming edges at 0
                attn = p * pl.reciprocal(denom + f32(1e-30), approx=True)
                ctx_heads.append(jnp.dot(attn, vh, preferred_element_type=f32))
            # group='sum': accumulate messages from every relation into the dst node type
            agg[dt] = agg[dt] + jnp.concatenate(ctx_heads, axis=-1)

        new_h = []
        for t in range(NTYPES):
            # TODO(synk): PyG HGTConv uses exact erf GELU; tanh approximation used here.
            a_out = (jnp.dot(jax.nn.gelu(agg[t], approximate=True), w_a_ref[l, t],
                             preferred_element_type=f32) + b_a_ref[l, t])
            beta = beta_all[l:l + 1, t:t + 1]                                       # (1, 1)
            new_h.append(beta * a_out + (1.0 - beta) * h[t])
        h = new_h

    # 3) final classifier on 'protocol' nodes
    logits = jnp.dot(h[PROTOCOL], w_out_ref[...], preferred_element_type=f32) + b_out_ref[...]
    o_ref[...] = logits.astype(o_ref.dtype)


def hgt_forward(packed, x_all, adj):
    def full(shape):
        nd = len(shape)
        return pl.BlockSpec(shape, lambda i, _nd=nd: (0,) * _nd)

    args = (x_all, adj,
            packed["w_in"], packed["b_in"],
            packed["w_kqv"], packed["b_kqv"],
            packed["a_rel"], packed["m_rel"],
            packed["w_a"], packed["b_a"], packed["beta"],
            packed["w_out"], packed["b_out"])

    return pl.pallas_call(
        hgt_kernel,
        out_shape=jax.ShapeDtypeStruct((N_NODES, C_OUT), jnp.float32),
        grid=(1,),                                    # single fused launch
        in_specs=[full(a.shape) for a in args],
        out_specs=full((N_NODES, C_OUT)),
        compiler_params=pltpu.CompilerParams(dimension_semantics=("arbitrary",)),
        cost_estimate=pl.CostEstimate(flops=3_000_000, transcendentals=20_000,
                                      bytes_accessed=400_000),
    )(*args)


# ----------------------------- parameters -----------------------------
def init_raw_params(key):
    ks = iter(jax.random.split(key, 20))
    std = 0.1
    w = lambda k, s: jax.random.normal(k, s, jnp.float32) * std
    return {
        "w_in": w(next(ks), (NTYPES, C_IN, HID)),
        "b_in": w(next(ks), (NTYPES, 1, HID)),
        "k_w": w(next(ks), (NUM_LAYERS, NTYPES, HID, HID)),
        "k_b": w(next(ks), (NUM_LAYERS, NTYPES, 1, HID)),
        "q_w": w(next(ks), (NUM_LAYERS, NTYPES, HID, HID)),
        "q_b": w(next(ks), (NUM_LAYERS, NTYPES, 1, HID)),
        "v_w": w(next(ks), (NUM_LAYERS, NTYPES, HID, HID)),
        "v_b": w(next(ks), (NUM_LAYERS, NTYPES, 1, HID)),
        "a_w": w(next(ks), (NUM_LAYERS, NTYPES, HID, HID)),
        "a_b": w(next(ks), (NUM_LAYERS, NTYPES, 1, HID)),
        "skip": jnp.ones((NUM_LAYERS, NTYPES), jnp.float32),
        "a_rel": w(next(ks), (NUM_LAYERS, NREL, HEADS, HEAD_DIM, HEAD_DIM)),
        "m_rel": w(next(ks), (NUM_LAYERS, NREL, HEADS, HEAD_DIM, HEAD_DIM)),
        "p_rel": 1.0 + 0.1 * jax.random.normal(next(ks), (NUM_LAYERS, NREL, HEADS), jnp.float32),
        "w_out": w(next(ks), (HID, C_OUT)),
        "b_out": w(next(ks), (1, C_OUT)),
    }


def _block_diag_heads(mats, scale):
    """(L, R, HEADS, D, D) per-head matrices -> (L, R, HID, HID) block-diagonal,
    with `scale` (L, R, HEADS) folded into each head block."""
    L, R = mats.shape[:2]
    out = jnp.zeros((L, R, HID, HID), jnp.float32)
    for hd in range(HEADS):
        blk = mats[:, :, hd] * scale[:, :, hd, None, None]
        out = out.at[:, :, hd * HEAD_DIM:(hd + 1) * HEAD_DIM,
                     hd * HEAD_DIM:(hd + 1) * HEAD_DIM].set(blk)
    return out


def pack_params(raw):
    """One-time packing into kernel-friendly form: fused K|Q|V weights, block-diagonal
    relation matrices (p_rel/sqrt(D) folded into a_rel), sigmoid applied to skip gates."""
    w_kqv = jnp.concatenate([raw["k_w"], raw["q_w"], raw["v_w"]], axis=-1)   # (L,4,H,3H)
    b_kqv = jnp.concatenate([raw["k_b"], raw["q_b"], raw["v_b"]], axis=-1)   # (L,4,1,3H)
    return {
        "w_in": raw["w_in"], "b_in": raw["b_in"],
        "w_kqv": w_kqv, "b_kqv": b_kqv,
        "a_rel": _block_diag_heads(raw["a_rel"], raw["p_rel"] / math.sqrt(HEAD_DIM)),
        "m_rel": _block_diag_heads(raw["m_rel"], jnp.ones_like(raw["p_rel"])),
        "w_a": raw["a_w"], "b_a": raw["a_b"],
        "beta": jax.nn.sigmoid(raw["skip"]),
        "w_out": raw["w_out"], "b_out": raw["b_out"],
    }


# ----------------------------- synthetic heterogeneous graph -----------------------------
def make_graph(key):
    """x_dict stacked to (NTYPES, N, C_IN); edge_index_dict densified to per-relation
    adjacency masks adj[r][dst, src] in {0, 1} of shape (NREL, N, N)."""
    keys = jax.random.split(key, 1 + 2 * NREL)
    x_all = jax.random.normal(keys[0], (NTYPES, N_NODES, C_IN), jnp.float32)
    adj = []
    for r in range(NREL):
        src = jax.random.randint(keys[1 + 2 * r], (E_PER_REL,), 0, N_NODES)
        dst = jax.random.randint(keys[2 + 2 * r], (E_PER_REL,), 0, N_NODES)
        adj.append(jnp.zeros((N_NODES, N_NODES), jnp.float32).at[dst, src].set(1.0))
    return x_all, jnp.stack(adj, axis=0)


# ----------------------------- pure-JAX reference (raw per-head formulation) -----------------------------
def hgt_forward_ref(raw, x_all, adj):
    P = jax.lax.Precision.HIGHEST
    h = [jnp.maximum(jnp.dot(x_all[t], raw["w_in"][t], precision=P) + raw["b_in"][t], 0.0)
         for t in range(NTYPES)]
    for l in range(NUM_LAYERS):
        k = [(jnp.dot(h[t], raw["k_w"][l, t], precision=P) + raw["k_b"][l, t]
              ).reshape(N_NODES, HEADS, HEAD_DIM) for t in range(NTYPES)]
        q = [(jnp.dot(h[t], raw["q_w"][l, t], precision=P) + raw["q_b"][l, t]
              ).reshape(N_NODES, HEADS, HEAD_DIM) for t in range(NTYPES)]
        v = [(jnp.dot(h[t], raw["v_w"][l, t], precision=P) + raw["v_b"][l, t]
              ).reshape(N_NODES, HEADS, HEAD_DIM) for t in range(NTYPES)]
        agg = [jnp.zeros((N_NODES, HEADS, HEAD_DIM), jnp.float32) for _ in range(NTYPES)]
        for r in range(NREL):
            st, dt = EDGE_SRC[r], EDGE_DST[r]
            k_rel = jnp.einsum("nhd,hde->nhe", k[st], raw["a_rel"][l, r], precision=P)
            v_rel = jnp.einsum("nhd,hde->nhe", v[st], raw["m_rel"][l, r], precision=P)
            logits = jnp.einsum("nhd,mhd->nmh", q[dt], k_rel, precision=P)
            logits = logits * (raw["p_rel"][l, r] / math.sqrt(HEAD_DIM))
            mask = adj[r][:, :, None]
            logits = jnp.where(mask > 0.0, logits, -1e30)
            mx = jnp.max(logits, axis=1, keepdims=True)
            p = jnp.exp(logits - mx) * mask
            attn = p / (jnp.sum(p, axis=1, keepdims=True) + 1e-30)
            agg[dt] = agg[dt] + jnp.einsum("nmh,mhd->nhd", attn, v_rel, precision=P)
        new_h = []
        for t in range(NTYPES):
            a_out = (jnp.dot(jax.nn.gelu(agg[t].reshape(N_NODES, HID), approximate=True),
                             raw["a_w"][l, t], precision=P) + raw["a_b"][l, t])
            beta = jax.nn.sigmoid(raw["skip"][l, t])
            new_h.append(beta * a_out + (1.0 - beta) * h[t])
        h = new_h
    return jnp.dot(h[PROTOCOL], raw["w_out"], precision=P) + raw["b_out"]


if __name__ == "__main__":
    key = jax.random.PRNGKey(0)
    k_param, k_graph = jax.random.split(key)

    raw = init_raw_params(k_param)
    packed = pack_params(raw)
    x_all, adj = make_graph(k_graph)

    out = jax.block_until_ready(hgt_forward(packed, x_all, adj))
    ref = jax.block_until_ready(hgt_forward_ref(raw, x_all, adj))

    assert out.shape == (N_NODES, C_OUT)
    err = float(jnp.max(jnp.abs(out - ref)))
    assert jnp.allclose(out, ref, atol=2e-3, rtol=2e-3), f"mismatch vs reference (max abs err {err})"
    print("KERNEL_OK")
</pallas_src>

<mosaic_0001>
module attributes {stable_mosaic.version = 11 : i64} {
  func.func @hgt_kernel(%arg0: i32, %arg1: memref<4x16x16xf32, #tpu.memory_space<vmem>>, %arg2: memref<6x16x16xf32, #tpu.memory_space<vmem>>, %arg3: memref<4x16x32xf32, #tpu.memory_space<vmem>>, %arg4: memref<4x1x32xf32, #tpu.memory_space<vmem>>, %arg5: memref<2x4x32x96xf32, #tpu.memory_space<vmem>>, %arg6: memref<2x4x1x96xf32, #tpu.memory_space<vmem>>, %arg7: memref<2x6x32x32xf32, #tpu.memory_space<vmem>>, %arg8: memref<2x6x32x32xf32, #tpu.memory_space<vmem>>, %arg9: memref<2x4x32x32xf32, #tpu.memory_space<vmem>>, %arg10: memref<2x4x1x32xf32, #tpu.memory_space<vmem>>, %arg11: memref<2x4xf32, #tpu.memory_space<vmem>>, %arg12: memref<32x8xf32, #tpu.memory_space<vmem>>, %arg13: memref<1x8xf32, #tpu.memory_space<vmem>>, %arg14: memref<16x8xf32, #tpu.memory_space<vmem>>) attributes {dimension_semantics = [#tpu.dimension_semantics<arbitrary>], iteration_bounds = array<i64: 1>, scalar_prefetch = 0 : i64, scratch_operands = 0 : i64, tpu.core_type = #tpu.core_type<tc>, window_params = [{pipeline_mode = #tpu.pipeline_mode<synchronous>, transform_indices = @transform_0, window_bounds = array<i64: 4, 16, 16>}, {pipeline_mode = #tpu.pipeline_mode<synchronous>, transform_indices = @transform_1, window_bounds = array<i64: 6, 16, 16>}, {pipeline_mode = #tpu.pipeline_mode<synchronous>, transform_indices = @transform_2, window_bounds = array<i64: 4, 16, 32>}, {pipeline_mode = #tpu.pipeline_mode<synchronous>, transform_indices = @transform_3, window_bounds = array<i64: 4, 1, 32>}, {pipeline_mode = #tpu.pipeline_mode<synchronous>, transform_indices = @transform_4, window_bounds = array<i64: 2, 4, 32, 96>}, {pipeline_mode = #tpu.pipeline_mode<synchronous>, transform_indices = @transform_5, window_bounds = array<i64: 2, 4, 1, 96>}, {pipeline_mode = #tpu.pipeline_mode<synchronous>, transform_indices = @transform_6, window_bounds = array<i64: 2, 6, 32, 32>}, {pipeline_mode = #tpu.pipeline_mode<synchronous>, transform_indices = @transform_7, window_bounds = array<i64: 2, 6, 32, 32>}, {pipeline_mode = #tpu.pipeline_mode<synchronous>, transform_indices = @transform_8, window_bounds = array<i64: 2, 4, 32, 32>}, {pipeline_mode = #tpu.pipeline_mode<synchronous>, transform_indices = @transform_9, window_bounds = array<i64: 2, 4, 1, 32>}, {pipeline_mode = #tpu.pipeline_mode<synchronous>, transform_indices = @transform_10, window_bounds = array<i64: 2, 4>}, {pipeline_mode = #tpu.pipeline_mode<synchronous>, transform_indices = @transform_11, window_bounds = array<i64: 32, 8>}, {pipeline_mode = #tpu.pipeline_mode<synchronous>, transform_indices = @transform_12, window_bounds = array<i64: 1, 8>}, {pipeline_mode = #tpu.pipeline_mode<synchronous>, transform_indices = @transform_13, window_bounds = array<i64: 16, 8>}]} {
    %c0 = arith.constant 0 : index
    %c0_0 = arith.constant 0 : index
    %c0_1 = arith.constant 0 : index
    %0 = vector.load %arg1[%c0, %c0_0, %c0_1] : memref<4x16x16xf32, #tpu.memory_space<vmem>>, vector<1x16x16xf32>
    %1 = vector.shape_cast %0 : vector<1x16x16xf32> to vector<16x16xf32>
    %c0_2 = arith.constant 0 : index
    %c0_3 = arith.constant 0 : index
    %c0_4 = arith.constant 0 : index
    %2 = vector.load %arg3[%c0_2, %c0_3, %c0_4] : memref<4x16x32xf32, #tpu.memory_space<vmem>>, vector<1x16x32xf32>
    %3 = vector.shape_cast %2 : vector<1x16x32xf32> to vector<16x32xf32>
    %cst = arith.constant dense<0.000000e+00> : vector<16x32xf32>
    %4 = tpu.matmul %1, %3, %cst {dimension_numbers = #tpu.dot_dimension_numbers<[1], [0], [0], [1], [0, 0, 1, 1], [], []>} : vector<16x16xf32>, vector<16x32xf32>, vector<16x32xf32> -> vector<16x32xf32>
    %c0_5 = arith.constant 0 : index
    %c0_6 = arith.constant 0 : index
    %c0_7 = arith.constant 0 : index
    %5 = vector.load %arg4[%c0_5, %c0_6, %c0_7] : memref<4x1x32xf32, #tpu.memory_space<vmem>>, vector<1x1x32xf32>
    %6 = vector.shape_cast %5 : vector<1x1x32xf32> to vector<1x32xf32>
    %7 = vector.broadcast %6 : vector<1x32xf32> to vector<16x32xf32>
    %8 = arith.addf %4, %7 : vector<16x32xf32>
    %cst_8 = arith.constant 0.000000e+00 : f32
    %9 = vector.broadcast %cst_8 : f32 to vector<16x32xf32>
    %10 = arith.maximumf %8, %9 : vector<16x32xf32>
    %c1 = arith.constant 1 : index
    %c0_9 = arith.constant 0 : index
    %c0_10 = arith.constant 0 : index
    %11 = vector.load %arg1[%c1, %c0_9, %c0_10] : memref<4x16x16xf32, #tpu.memory_space<vmem>>, vector<1x16x16xf32>
    %12 = vector.shape_cast %11 : vector<1x16x16xf32> to vector<16x16xf32>
    %c1_11 = arith.constant 1 : index
    %c0_12 = arith.constant 0 : index
    %c0_13 = arith.constant 0 : index
    %13 = vector.load %arg3[%c1_11, %c0_12, %c0_13] : memref<4x16x32xf32, #tpu.memory_space<vmem>>, vector<1x16x32xf32>
    %14 = vector.shape_cast %13 : vector<1x16x32xf32> to vector<16x32xf32>
    %cst_14 = arith.constant dense<0.000000e+00> : vector<16x32xf32>
    %15 = tpu.matmul %12, %14, %cst_14 {dimension_numbers = #tpu.dot_dimension_numbers<[1], [0], [0], [1], [0, 0, 1, 1], [], []>} : vector<16x16xf32>, vector<16x32xf32>, vector<16x32xf32> -> vector<16x32xf32>
    %c1_15 = arith.constant 1 : index
    %c0_16 = arith.constant 0 : index
    %c0_17 = arith.constant 0 : index
    %16 = vector.load %arg4[%c1_15, %c0_16, %c0_17] : memref<4x1x32xf32, #tpu.memory_space<vmem>>, vector<1x1x32xf32>
    %17 = vector.shape_cast %16 : vector<1x1x32xf32> to vector<1x32xf32>
    %18 = vector.broadcast %17 : vector<1x32xf32> to vector<16x32xf32>
    %19 = arith.addf %15, %18 : vector<16x32xf32>
    %cst_18 = arith.constant 0.000000e+00 : f32
    %20 = vector.broadcast %cst_18 : f32 to vector<16x32xf32>
    %21 = arith.maximumf %19, %20 : vector<16x32xf32>
    %c2 = arith.constant 2 : index
    %c0_19 = arith.constant 0 : index
    %c0_20 = arith.constant 0 : index
    %22 = vector.load %arg1[%c2, %c0_19, %c0_20] : memref<4x16x16xf32, #tpu.memory_space<vmem>>, vector<1x16x16xf32>
    %23 = vector.shape_cast %22 : vector<1x16x16xf32> to vector<16x16xf32>
    %c2_21 = arith.constant 2 : index
    %c0_22 = arith.constant 0 : index
    %c0_23 = arith.constant 0 : index
    %24 = vector.load %arg3[%c2_21, %c0_22, %c0_23] : memref<4x16x32xf32, #tpu.memory_space<vmem>>, vector<1x16x32xf32>
    %25 = vector.shape_cast %24 : vector<1x16x32xf32> to vector<16x32xf32>
    %cst_24 = arith.constant dense<0.000000e+00> : vector<16x32xf32>
    %26 = tpu.matmul %23, %25, %cst_24 {dimension_numbers = #tpu.dot_dimension_numbers<[1], [0], [0], [1], [0, 0, 1, 1], [], []>} : vector<16x16xf32>, vector<16x32xf32>, vector<16x32xf32> -> vector<16x32xf32>
    %c2_25 = arith.constant 2 : index
    %c0_26 = arith.constant 0 : index
    %c0_27 = arith.constant 0 : index
    %27 = vector.load %arg4[%c2_25, %c0_26, %c0_27] : memref<4x1x32xf32, #tpu.memory_space<vmem>>, vector<1x1x32xf32>
    %28 = vector.shape_cast %27 : vector<1x1x32xf32> to vector<1x32xf32>
    %29 = vector.broadcast %28 : vector<1x32xf32> to vector<16x32xf32>
    %30 = arith.addf %26, %29 : vector<16x32xf32>
    %cst_28 = arith.constant 0.000000e+00 : f32
    %31 = vector.broadcast %cst_28 : f32 to vector<16x32xf32>
    %32 = arith.maximumf %30, %31 : vector<16x32xf32>
    %c3 = arith.constant 3 : index
    %c0_29 = arith.constant 0 : index
    %c0_30 = arith.constant 0 : index
    %33 = vector.load %arg1[%c3, %c0_29, %c0_30] : memref<4x16x16xf32, #tpu.memory_space<vmem>>, vector<1x16x16xf32>
    %34 = vector.shape_cast %33 : vector<1x16x16xf32> to vector<16x16xf32>
    %c3_31 = arith.constant 3 : index
    %c0_32 = arith.constant 0 : index
    %c0_33 = arith.constant 0 : index
    %35 = vector.load %arg3[%c3_31, %c0_32, %c0_33] : memref<4x16x32xf32, #tpu.memory_space<vmem>>, vector<1x16x32xf32>
    %36 = vector.shape_cast %35 : vector<1x16x32xf32> to vector<16x32xf32>
    %cst_34 = arith.constant dense<0.000000e+00> : vector<16x32xf32>
    %37 = tpu.matmul %34, %36, %cst_34 {dimension_numbers = #tpu.dot_dimension_numbers<[1], [0], [0], [1], [0, 0, 1, 1], [], []>} : vector<16x16xf32>, vector<16x32xf32>, vector<16x32xf32> -> vector<16x32xf32>
    %c3_35 = arith.constant 3 : index
    %c0_36 = arith.constant 0 : index
    %c0_37 = arith.constant 0 : index
    %38 = vector.load %arg4[%c3_35, %c0_36, %c0_37] : memref<4x1x32xf32, #tpu.memory_space<vmem>>, vector<1x1x32xf32>
    %39 = vector.shape_cast %38 : vector<1x1x32xf32> to vector<1x32xf32>
    %40 = vector.broadcast %39 : vector<1x32xf32> to vector<16x32xf32>
    %41 = arith.addf %37, %40 : vector<16x32xf32>
    %cst_38 = arith.constant 0.000000e+00 : f32
    %42 = vector.broadcast %cst_38 : f32 to vector<16x32xf32>
    %43 = arith.maximumf %41, %42 : vector<16x32xf32>
    %c0_39 = arith.constant 0 : index
    %c0_40 = arith.constant 0 : index
    %44 = vector.load %arg11[%c0_39, %c0_40] : memref<2x4xf32, #tpu.memory_space<vmem>>, vector<2x4xf32>
    %c0_41 = arith.constant 0 : index
    %c0_42 = arith.constant 0 : index
    %c0_43 = arith.constant 0 : index
    %c0_44 = arith.constant 0 : index
    %45 = vector.load %arg5[%c0_41, %c0_42, %c0_43, %c0_44] : memref<2x4x32x96xf32, #tpu.memory_space<vmem>>, vector<1x1x32x96xf32>
    %46 = vector.shape_cast %45 : vector<1x1x32x96xf32> to vector<32x96xf32>
    %cst_45 = arith.constant dense<0.000000e+00> : vector<16x96xf32>
    %47 = tpu.matmul %10, %46, %cst_45 {dimension_numbers = #tpu.dot_dimension_numbers<[1], [0], [0], [1], [0, 0, 1, 1], [], []>} : vector<16x32xf32>, vector<32x96xf32>, vector<16x96xf32> -> vector<16x96xf32>
    %c0_46 = arith.constant 0 : index
    %c0_47 = arith.constant 0 : index
    %c0_48 = arith.constant 0 : index
    %c0_49 = arith.constant 0 : index
    %48 = vector.load %arg6[%c0_46, %c0_47, %c0_48, %c0_49] : memref<2x4x1x96xf32, #tpu.memory_space<vmem>>, vector<1x1x1x96xf32>
    %49 = vector.shape_cast %48 : vector<1x1x1x96xf32> to vector<1x96xf32>
    %50 = vector.broadcast %49 : vector<1x96xf32> to vector<16x96xf32>
    %51 = arith.addf %47, %50 : vector<16x96xf32>
    %52 = vector.extract_strided_slice %51 {offsets = [0, 0], sizes = [16, 32], strides = [1, 1]} : vector<16x96xf32> to vector<16x32xf32>
    %53 = vector.extract_strided_slice %51 {offsets = [0, 32], sizes = [16, 32], strides = [1, 1]} : vector<16x96xf32> to vector<16x32xf32>
    %54 = vector.extract_strided_slice %51 {offsets = [0, 64], sizes = [16, 32], strides = [1, 1]} : vector<16x96xf32> to vector<16x32xf32>
    %c0_50 = arith.constant 0 : index
    %c1_51 = arith.constant 1 : index
    %c0_52 = arith.constant 0 : index
    %c0_53 = arith.constant 0 : index
    %55 = vector.load %arg5[%c0_50, %c1_51, %c0_52, %c0_53] : memref<2x4x32x96xf32, #tpu.memory_space<vmem>>, vector<1x1x32x96xf32>
    %56 = vector.shape_cast %55 : vector<1x1x32x96xf32> to vector<32x96xf32>
    %cst_54 = arith.constant dense<0.000000e+00> : vector<16x96xf32>
    %57 = tpu.matmul %21, %56, %cst_54 {dimension_numbers = #tpu.dot_dimension_numbers<[1], [0], [0], [1], [0, 0, 1, 1], [], []>} : vector<16x32xf32>, vector<32x96xf32>, vector<16x96xf32> -> vector<16x96xf32>
    %c0_55 = arith.constant 0 : index
    %c1_56 = arith.constant 1 : index
    %c0_57 = arith.constant 0 : index
    %c0_58 = arith.constant 0 : index
    %58 = vector.load %arg6[%c0_55, %c1_56, %c0_57, %c0_58] : memref<2x4x1x96xf32, #tpu.memory_space<vmem>>, vector<1x1x1x96xf32>
    %59 = vector.shape_cast %58 : vector<1x1x1x96xf32> to vector<1x96xf32>
    %60 = vector.broadcast %59 : vector<1x96xf32> to vector<16x96xf32>
    %61 = arith.addf %57, %60 : vector<16x96xf32>
    %62 = vector.extract_strided_slice %61 {offsets = [0, 0], sizes = [16, 32], strides = [1, 1]} : vector<16x96xf32> to vector<16x32xf32>
    %63 = vector.extract_strided_slice %61 {offsets = [0, 32], sizes = [16, 32], strides = [1, 1]} : vector<16x96xf32> to vector<16x32xf32>
    %64 = vector.extract_strided_slice %61 {offsets = [0, 64], sizes = [16, 32], strides = [1, 1]} : vector<16x96xf32> to vector<16x32xf32>
    %c0_59 = arith.constant 0 : index
    %c2_60 = arith.constant 2 : index
    %c0_61 = arith.constant 0 : index
    %c0_62 = arith.constant 0 : index
    %65 = vector.load %arg5[%c0_59, %c2_60, %c0_61, %c0_62] : memref<2x4x32x96xf32, #tpu.memory_space<vmem>>, vector<1x1x32x96xf32>
    %66 = vector.shape_cast %65 : vector<1x1x32x96xf32> to vector<32x96xf32>
    %cst_63 = arith.constant dense<0.000000e+00> : vector<16x96xf32>
    %67 = tpu.matmul %32, %66, %cst_63 {dimension_numbers = #tpu.dot_dimension_numbers<[1], [0], [0], [1], [0, 0, 1, 1], [], []>} : vector<16x32xf32>, vector<32x96xf32>, vector<16x96xf32> -> vector<16x96xf32>
    %c0_64 = arith.constant 0 : index
    %c2_65 = arith.constant 2 : index
    %c0_66 = arith.constant 0 : index
    %c0_67 = arith.constant 0 : index
    %68 = vector.load %arg6[%c0_64, %c2_65, %c0_66, %c0_67] : memref<2x4x1x96xf32, #tpu.memory_space<vmem>>, vector<1x1x1x96xf32>
    %69 = vector.shape_cast %68 : vector<1x1x1x96xf32> to vector<1x96xf32>
    %70 = vector.broadcast %69 : vector<1x96xf32> to vector<16x96xf32>
    %71 = arith.addf %67, %70 : vector<16x96xf32>
    %72 = vector.extract_strided_slice %71 {offsets = [0, 0], sizes = [16, 32], strides = [1, 1]} : vector<16x96xf32> to vector<16x32xf32>
    %73 = vector.extract_strided_slice %71 {offsets = [0, 32], sizes = [16, 32], strides = [1, 1]} : vector<16x96xf32> to vector<16x32xf32>
    %74 = vector.extract_strided_slice %71 {offsets = [0, 64], sizes = [16, 32], strides = [1, 1]} : vector<16x96xf32> to vector<16x32xf32>
    %c0_68 = arith.constant 0 : index
    %c3_69 = arith.constant 3 : index
    %c0_70 = arith.constant 0 : index
    %c0_71 = arith.constant 0 : index
    %75 = vector.load %arg5[%c0_68, %c3_69, %c0_70, %c0_71] : memref<2x4x32x96xf32, #tpu.memory_space<vmem>>, vector<1x1x32x96xf32>
    %76 = vector.shape_cast %75 : vector<1x1x32x96xf32> to vector<32x96xf32>
    %cst_72 = arith.constant dense<0.000000e+00> : vector<16x96xf32>
    %77 = tpu.matmul %43, %76, %cst_72 {dimension_numbers = #tpu.dot_dimension_numbers<[1], [0], [0], [1], [0, 0, 1, 1], [], []>} : vector<16x32xf32>, vector<32x96xf32>, vector<16x96xf32> -> vector<16x96xf32>
    %c0_73 = arith.constant 0 : index
    %c3_74 = arith.constant 3 : index
    %c0_75 = arith.constant 0 : index
    %c0_76 = arith.constant 0 : index
    %78 = vector.load %arg6[%c0_73, %c3_74, %c0_75, %c0_76] : memref<2x4x1x96xf32, #tpu.memory_space<vmem>>, vector<1x1x1x96xf32>
    %79 = vector.shape_cast %78 : vector<1x1x1x96xf32> to vector<1x96xf32>
    %80 = vector.broadcast %79 : vector<1x96xf32> to vector<16x96xf32>
    %81 = arith.addf %77, %80 : vector<16x96xf32>
    %82 = vector.extract_strided_slice %81 {offsets = [0, 0], sizes = [16, 32], strides = [1, 1]} : vector<16x96xf32> to vector<16x32xf32>
    %83 = vector.extract_strided_slice %81 {offsets = [0, 32], sizes = [16, 32], strides = [1, 1]} : vector<16x96xf32> to vector<16x32xf32>
    %84 = vector.extract_strided_slice %81 {offsets = [0, 64], sizes = [16, 32], strides = [1, 1]} : vector<16x96xf32> to vector<16x32xf32>
    %cst_77 = arith.constant 0.000000e+00 : f32
    %85 = vector.broadcast %cst_77 : f32 to vector<16x32xf32>
    %cst_78 = arith.constant 0.000000e+00 : f32
    %86 = vector.broadcast %cst_78 : f32 to vector<16x32xf32>
    %cst_79 = arith.constant 0.000000e+00 : f32
    %87 = vector.broadcast %cst_79 : f32 to vector<16x32xf32>
    %cst_80 = arith.constant 0.000000e+00 : f32
    %88 = vector.broadcast %cst_80 : f32 to vector<16x32xf32>
    %c0_81 = arith.constant 0 : index
    %c0_82 = arith.constant 0 : index
    %c0_83 = arith.constant 0 : index
    %c0_84 = arith.constant 0 : index
    %89 = vector.load %arg7[%c0_81, %c0_82, %c0_83, %c0_84] : memref<2x6x32x32xf32, #tpu.memory_space<vmem>>, vector<1x1x32x32xf32>
    %90 = vector.shape_cast %89 : vector<1x1x32x32xf32> to vector<32x32xf32>
    %cst_85 = arith.constant dense<0.000000e+00> : vector<16x32xf32>
    %91 = tpu.matmul %62, %90, %cst_85 {dimension_numbers = #tpu.dot_dimension_numbers<[1], [0], [0], [1], [0, 0, 1, 1], [], []>} : vector<16x32xf32>, vector<32x32xf32>, vector<16x32xf32> -> vector<16x32xf32>
    %c0_86 = arith.constant 0 : index
    %c0_87 = arith.constant 0 : index
    %c0_88 = arith.constant 0 : index
    %c0_89 = arith.constant 0 : index
    %92 = vector.load %arg8[%c0_86, %c0_87, %c0_88, %c0_89] : memref<2x6x32x32xf32, #tpu.memory_space<vmem>>, vector<1x1x32x32xf32>
    %93 = vector.shape_cast %92 : vector<1x1x32x32xf32> to vector<32x32xf32>
    %cst_90 = arith.constant dense<0.000000e+00> : vector<16x32xf32>
    %94 = tpu.matmul %64, %93, %cst_90 {dimension_numbers = #tpu.dot_dimension_numbers<[1], [0], [0], [1], [0, 0, 1, 1], [], []>} : vector<16x32xf32>, vector<32x32xf32>, vector<16x32xf32> -> vector<16x32xf32>
    %c0_91 = arith.constant 0 : index
    %c0_92 = arith.constant 0 : index
    %c0_93 = arith.constant 0 : index
    %95 = vector.load %arg2[%c0_91, %c0_92, %c0_93] : memref<6x16x16xf32, #tpu.memory_space<vmem>>, vector<1x16x16xf32>
    %96 = vector.shape_cast %95 : vector<1x16x16xf32> to vector<16x16xf32>
    %97 = vector.extract_strided_slice %53 {offsets = [0, 0], sizes = [16, 16], strides = [1, 1]} : vector<16x32xf32> to vector<16x16xf32>
    %98 = vector.extract_strided_slice %91 {offsets = [0, 0], sizes = [16, 16], strides = [1, 1]} : vector<16x32xf32> to vector<16x16xf32>
    %99 = vector.extract_strided_slice %94 {offsets = [0, 0], sizes = [16, 16], strides = [1, 1]} : vector<16x32xf32> to vector<16x16xf32>
    %cst_94 = arith.constant dense<0.000000e+00> : vector<16x16xf32>
    %100 = tpu.matmul %97, %98, %cst_94 {dimension_numbers = #tpu.dot_dimension_numbers<[1], [1], [0], [0], [0, 0, 1, 0], [], []>} : vector<16x16xf32>, vector<16x16xf32>, vector<16x16xf32> -> vector<16x16xf32>
    %cst_95 = arith.constant 0.000000e+00 : f32
    %101 = vector.broadcast %cst_95 : f32 to vector<16x16xf32>
    %102 = arith.cmpf ogt, %96, %101 : vector<16x16xf32>
    %cst_96 = arith.constant -1.000000e+30 : f32
    %103 = vector.broadcast %cst_96 : f32 to vector<16x16xf32>
    %104 = arith.select %102, %100, %103 : vector<16x16xi1>, vector<16x16xf32>
    %cst_97 = arith.constant dense<0xFF800000> : vector<16xf32>
    %105 = vector.multi_reduction <maximumf>, %104, %cst_97 [1] : vector<16x16xf32> to vector<16xf32>
    %106 = vector.shape_cast %105 : vector<16xf32> to vector<16x1xf32>
    %107 = vector.broadcast %106 : vector<16x1xf32> to vector<16x16xf32>
    %108 = arith.subf %104, %107 : vector<16x16xf32>
    %109 = math.exp %108 : vector<16x16xf32>
    %110 = arith.mulf %109, %96 : vector<16x16xf32>
    %cst_98 = arith.constant dense<0.000000e+00> : vector<16xf32>
    %111 = vector.multi_reduction <add>, %110, %cst_98 [1] : vector<16x16xf32> to vector<16xf32>
    %112 = vector.shape_cast %111 : vector<16xf32> to vector<16x1xf32>
    %cst_99 = arith.constant 1.000000e-30 : f32
    %113 = vector.broadcast %cst_99 : f32 to vector<16x1xf32>
    %114 = arith.addf %112, %113 : vector<16x1xf32>
    %115 = tpu.reciprocal %114 {approx = true} : vector<16x1xf32> -> vector<16x1xf32>
    %116 = vector.broadcast %115 : vector<16x1xf32> to vector<16x16xf32>
    %117 = arith.mulf %110, %116 : vector<16x16xf32>
    %cst_100 = arith.constant dense<0.000000e+00> : vector<16x16xf32>
    %118 = tpu.matmul %117, %99, %cst_100 {dimension_numbers = #tpu.dot_dimension_numbers<[1], [0], [0], [1], [0, 0, 1, 1], [], []>} : vector<16x16xf32>, vector<16x16xf32>, vector<16x16xf32> -> vector<16x16xf32>
    %119 = vector.extract_strided_slice %53 {offsets = [0, 16], sizes = [16, 16], strides = [1, 1]} : vector<16x32xf32> to vector<16x16xf32>
    %120 = vector.extract_strided_slice %91 {offsets = [0, 16], sizes = [16, 16], strides = [1, 1]} : vector<16x32xf32> to vector<16x16xf32>
    %121 = vector.extract_strided_slice %94 {offsets = [0, 16], sizes = [16, 16], strides = [1, 1]} : vector<16x32xf32> to vector<16x16xf32>
    %cst_101 = arith.constant dense<0.000000e+00> : vector<16x16xf32>
    %122 = tpu.matmul %119, %120, %cst_101 {dimension_numbers = #tpu.dot_dimension_numbers<[1], [1], [0], [0], [0, 0, 1, 0], [], []>} : vector<16x16xf32>, vector<16x16xf32>, vector<16x16xf32> -> vector<16x16xf32>
    %cst_102 = arith.constant 0.000000e+00 : f32
    %123 = vector.broadcast %cst_102 : f32 to vector<16x16xf32>
    %124 = arith.cmpf ogt, %96, %123 : vector<16x16xf32>
    %cst_103 = arith.constant -1.000000e+30 : f32
    %125 = vector.broadcast %cst_103 : f32 to vector<16x16xf32>
    %126 = arith.select %124, %122, %125 : vector<16x16xi1>, vector<16x16xf32>
    %cst_104 = arith.constant dense<0xFF800000> : vector<16xf32>
    %127 = vector.multi_reduction <maximumf>, %126, %cst_104 [1] : vector<16x16xf32> to vector<16xf32>
    %128 = vector.shape_cast %127 : vector<16xf32> to vector<16x1xf32>
    %129 = vector.broadcast %128 : vector<16x1xf32> to vector<16x16xf32>
    %130 = arith.subf %126, %129 : vector<16x16xf32>
    %131 = math.exp %130 : vector<16x16xf32>
    %132 = arith.mulf %131, %96 : vector<16x16xf32>
    %cst_105 = arith.constant dense<0.000000e+00> : vector<16xf32>
    %133 = vector.multi_reduction <add>, %132, %cst_105 [1] : vector<16x16xf32> to vector<16xf32>
    %134 = vector.shape_cast %133 : vector<16xf32> to vector<16x1xf32>
    %cst_106 = arith.constant 1.000000e-30 : f32
    %135 = vector.broadcast %cst_106 : f32 to vector<16x1xf32>
    %136 = arith.addf %134, %135 : vector<16x1xf32>
    %137 = tpu.reciprocal %136 {approx = true} : vector<16x1xf32> -> vector<16x1xf32>
    %138 = vector.broadcast %137 : vector<16x1xf32> to vector<16x16xf32>
    %139 = arith.mulf %132, %138 : vector<16x16xf32>
    %cst_107 = arith.constant dense<0.000000e+00> : vector<16x16xf32>
    %140 = tpu.matmul %139, %121, %cst_107 {dimension_numbers = #tpu.dot_dimension_numbers<[1], [0], [0], [1], [0, 0, 1, 1], [], []>} : vector<16x16xf32>, vector<16x16xf32>, vector<16x16xf32> -> vector<16x16xf32>
    %141 = tpu.concatenate %118, %140 in 1 : vector<16x16xf32>, vector<16x16xf32> -> vector<16x32xf32>
    %142 = arith.addf %85, %141 : vector<16x32xf32>
    %c0_108 = arith.constant 0 : index
    %c1_109 = arith.constant 1 : index
    %c0_110 = arith.constant 0 : index
    %c0_111 = arith.constant 0 : index
    %143 = vector.load %arg7[%c0_108, %c1_109, %c0_110, %c0_111] : memref<2x6x32x32xf32, #tpu.memory_space<vmem>>, vector<1x1x32x32xf32>
    %144 = vector.shape_cast %143 : vector<1x1x32x32xf32> to vector<32x32xf32>
    %cst_112 = arith.constant dense<0.000000e+00> : vector<16x32xf32>
    %145 = tpu.matmul %62, %144, %cst_112 {dimension_numbers = #tpu.dot_dimension_numbers<[1], [0], [0], [1], [0, 0, 1, 1], [], []>} : vector<16x32xf32>, vector<32x32xf32>, vector<16x32xf32> -> vector<16x32xf32>
    %c0_113 = arith.constant 0 : index
    %c1_114 = arith.constant 1 : index
    %c0_115 = arith.constant 0 : index
    %c0_116 = arith.constant 0 : index
    %146 = vector.load %arg8[%c0_113, %c1_114, %c0_115, %c0_116] : memref<2x6x32x32xf32, #tpu.memory_space<vmem>>, vector<1x1x32x32xf32>
    %147 = vector.shape_cast %146 : vector<1x1x32x32xf32> to vector<32x32xf32>
    %cst_117 = arith.constant dense<0.000000e+00> : vector<16x32xf32>
    %148 = tpu.matmul %64, %147, %cst_117 {dimension_numbers = #tpu.dot_dimension_numbers<[1], [0], [0], [1], [0, 0, 1, 1], [], []>} : vector<16x32xf32>, vector<32x32xf32>, vector<16x32xf32> -> vector<16x32xf32>
    %c1_118 = arith.constant 1 : index
    %c0_119 = arith.constant 0 : index
    %c0_120 = arith.constant 0 : index
    %149 = vector.load %arg2[%c1_118, %c0_119, %c0_120] : memref<6x16x16xf32, #tpu.memory_space<vmem>>, vector<1x16x16xf32>
    %150 = vector.shape_cast %149 : vector<1x16x16xf32> to vector<16x16xf32>
    %151 = vector.extract_strided_slice %73 {offsets = [0, 0], sizes = [16, 16], strides = [1, 1]} : vector<16x32xf32> to vector<16x16xf32>
    %152 = vector.extract_strided_slice %145 {offsets = [0, 0], sizes = [16, 16], strides = [1, 1]} : vector<16x32xf32> to vector<16x16xf32>
    %153 = vector.extract_strided_slice %148 {offsets = [0, 0], sizes = [16, 16], strides = [1, 1]} : vector<16x32xf32> to vector<16x16xf32>
    %cst_121 = arith.constant dense<0.000000e+00> : vector<16x16xf32>
    %154 = tpu.matmul %151, %152, %cst_121 {dimension_numbers = #tpu.dot_dimension_numbers<[1], [1], [0], [0], [0, 0, 1, 0], [], []>} : vector<16x16xf32>, vector<16x16xf32>, vector<16x16xf32> -> vector<16x16xf32>
    %cst_122 = arith.constant 0.000000e+00 : f32
    %155 = vector.broadcast %cst_122 : f32 to vector<16x16xf32>
    %156 = arith.cmpf ogt, %150, %155 : vector<16x16xf32>
    %cst_123 = arith.constant -1.000000e+30 : f32
    %157 = vector.broadcast %cst_123 : f32 to vector<16x16xf32>
    %158 = arith.select %156, %154, %157 : vector<16x16xi1>, vector<16x16xf32>
    %cst_124 = arith.constant dense<0xFF800000> : vector<16xf32>
    %159 = vector.multi_reduction <maximumf>, %158, %cst_124 [1] : vector<16x16xf32> to vector<16xf32>
    %160 = vector.shape_cast %159 : vector<16xf32> to vector<16x1xf32>
    %161 = vector.broadcast %160 : vector<16x1xf32> to vector<16x16xf32>
    %162 = arith.subf %158, %161 : vector<16x16xf32>
    %163 = math.exp %162 : vector<16x16xf32>
    %164 = arith.mulf %163, %150 : vector<16x16xf32>
    %cst_125 = arith.constant dense<0.000000e+00> : vector<16xf32>
    %165 = vector.multi_reduction <add>, %164, %cst_125 [1] : vector<16x16xf32> to vector<16xf32>
    %166 = vector.shape_cast %165 : vector<16xf32> to vector<16x1xf32>
    %cst_126 = arith.constant 1.000000e-30 : f32
    %167 = vector.broadcast %cst_126 : f32 to vector<16x1xf32>
    %168 = arith.addf %166, %167 : vector<16x1xf32>
    %169 = tpu.reciprocal %168 {approx = true} : vector<16x1xf32> -> vector<16x1xf32>
    %170 = vector.broadcast %169 : vector<16x1xf32> to vector<16x16xf32>
    %171 = arith.mulf %164, %170 : vector<16x16xf32>
    %cst_127 = arith.constant dense<0.000000e+00> : vector<16x16xf32>
    %172 = tpu.matmul %171, %153, %cst_127 {dimension_numbers = #tpu.dot_dimension_numbers<[1], [0], [0], [1], [0, 0, 1, 1], [], []>} : vector<16x16xf32>, vector<16x16xf32>, vector<16x16xf32> -> vector<16x16xf32>
    %173 = vector.extract_strided_slice %73 {offsets = [0, 16], sizes = [16, 16], strides = [1, 1]} : vector<16x32xf32> to vector<16x16xf32>
    %174 = vector.extract_strided_slice %145 {offsets = [0, 16], sizes = [16, 16], strides = [1, 1]} : vector<16x32xf32> to vector<16x16xf32>
    %175 = vector.extract_strided_slice %148 {offsets = [0, 16], sizes = [16, 16], strides = [1, 1]} : vector<16x32xf32> to vector<16x16xf32>
    %cst_128 = arith.constant dense<0.000000e+00> : vector<16x16xf32>
    %176 = tpu.matmul %173, %174, %cst_128 {dimension_numbers = #tpu.dot_dimension_numbers<[1], [1], [0], [0], [0, 0, 1, 0], [], []>} : vector<16x16xf32>, vector<16x16xf32>, vector<16x16xf32> -> vector<16x16xf32>
    %cst_129 = arith.constant 0.000000e+00 : f32
    %177 = vector.broadcast %cst_129 : f32 to vector<16x16xf32>
    %178 = arith.cmpf ogt, %150, %177 : vector<16x16xf32>
    %cst_130 = arith.constant -1.000000e+30 : f32
    %179 = vector.broadcast %cst_130 : f32 to vector<16x16xf32>
    %180 = arith.select %178, %176, %179 : vector<16x16xi1>, vector<16x16xf32>
    %cst_131 = arith.constant dense<0xFF800000> : vector<16xf32>
    %181 = vector.multi_reduction <maximumf>, %180, %cst_131 [1] : vector<16x16xf32> to vector<16xf32>
    %182 = vector.shape_cast %181 : vector<16xf32> to vector<16x1xf32>
    %183 = vector.broadcast %182 : vector<16x1xf32> to vector<16x16xf32>
    %184 = arith.subf %180, %183 : vector<16x16xf32>
    %185 = math.exp %184 : vector<16x16xf32>
    %186 = arith.mulf %185, %150 : vector<16x16xf32>
    %cst_132 = arith.constant dense<0.000000e+00> : vector<16xf32>
    %187 = vector.multi_reduction <add>, %186, %cst_132 [1] : vector<16x16xf32> to vector<16xf32>
    %188 = vector.shape_cast %187 : vector<16xf32> to vector<16x1xf32>
    %cst_133 = arith.constant 1.000000e-30 : f32
    %189 = vector.broadcast %cst_133 : f32 to vector<16x1xf32>
    %190 = arith.addf %188, %189 : vector<16x1xf32>
    %191 = tpu.reciprocal %190 {approx = true} : vector<16x1xf32> -> vector<16x1xf32>
    %192 = vector.broadcast %191 : vector<16x1xf32> to vector<16x16xf32>
    %193 = arith.mulf %186, %192 : vector<16x16xf32>
    %cst_134 = arith.constant dense<0.000000e+00> : vector<16x16xf32>
    %194 = tpu.matmul %193, %175, %cst_134 {dimension_numbers = #tpu.dot_dimension_numbers<[1], [0], [0], [1], [0, 0, 1, 1], [], []>} : vector<16x16xf32>, vector<16x16xf32>, vector<16x16xf32> -> vector<16x16xf32>
    %195 = tpu.concatenate %172, %194 in 1 : vector<16x16xf32>, vector<16x16xf32> -> vector<16x32xf32>
    %196 = arith.addf %87, %195 : vector<16x32xf32>
    %c0_135 = arith.constant 0 : index
    %c2_136 = arith.constant 2 : index
    %c0_137 = arith.constant 0 : index
    %c0_138 = arith.constant 0 : index
    %197 = vector.load %arg7[%c0_135, %c2_136, %c0_137, %c0_138] : memref<2x6x32x32xf32, #tpu.memory_space<vmem>>, vector<1x1x32x32xf32>
    %198 = vector.shape_cast %197 : vector<1x1x32x32xf32> to vector<32x32xf32>
    %cst_139 = arith.constant dense<0.000000e+00> : vector<16x32xf32>
    %199 = tpu.matmul %62, %198, %cst_139 {dimension_numbers = #tpu.dot_dimension_numbers<[1], [0], [0], [1], [0, 0, 1, 1], [], []>} : vector<16x32xf32>, vector<32x32xf32>, vector<16x32xf32> -> vector<16x32xf32>
    %c0_140 = arith.constant 0 : index
    %c2_141 = arith.constant 2 : index
    %c0_142 = arith.constant 0 : index
    %c0_143 = arith.constant 0 : index
    %200 = vector.load %arg8[%c0_140, %c2_141, %c0_142, %c0_143] : memref<2x6x32x32xf32, #tpu.memory_space<vmem>>, vector<1x1x32x32xf32>
    %201 = vector.shape_cast %200 : vector<1x1x32x32xf32> to vector<32x32xf32>
    %cst_144 = arith.constant dense<0.000000e+00> : vector<16x32xf32>
    %202 = tpu.matmul %64, %201, %cst_144 {dimension_numbers = #tpu.dot_dimension_numbers<[1], [0], [0], [1], [0, 0, 1, 1], [], []>} : vector<16x32xf32>, vector<32x32xf32>, vector<16x32xf32> -> vector<16x32xf32>
    %c2_145 = arith.constant 2 : index
    %c0_146 = arith.constant 0 : index
    %c0_147 = arith.constant 0 : index
    %203 = vector.load %arg2[%c2_145, %c0_146, %c0_147] : memref<6x16x16xf32, #tpu.memory_space<vmem>>, vector<1x16x16xf32>
    %204 = vector.shape_cast %203 : vector<1x16x16xf32> to vector<16x16xf32>
    %205 = vector.extract_strided_slice %83 {offsets = [0, 0], sizes = [16, 16], strides = [1, 1]} : vector<16x32xf32> to vector<16x16xf32>
    %206 = vector.extract_strided_slice %199 {offsets = [0, 0], sizes = [16, 16], strides = [1, 1]} : vector<16x32xf32> to vector<16x16xf32>
    %207 = vector.extract_strided_slice %202 {offsets = [0, 0], sizes = [16, 16], strides = [1, 1]} : vector<16x32xf32> to vector<16x16xf32>
    %cst_148 = arith.constant dense<0.000000e+00> : vector<16x16xf32>
    %208 = tpu.matmul %205, %206, %cst_148 {dimension_numbers = #tpu.dot_dimension_numbers<[1], [1], [0], [0], [0, 0, 1, 0], [], []>} : vector<16x16xf32>, vector<16x16xf32>, vector<16x16xf32> -> vector<16x16xf32>
    %cst_149 = arith.constant 0.000000e+00 : f32
    %209 = vector.broadcast %cst_149 : f32 to vector<16x16xf32>
    %210 = arith.cmpf ogt, %204, %209 : vector<16x16xf32>
    %cst_150 = arith.constant -1.000000e+30 : f32
    %211 = vector.broadcast %cst_150 : f32 to vector<16x16xf32>
    %212 = arith.select %210, %208, %211 : vector<16x16xi1>, vector<16x16xf32>
    %cst_151 = arith.constant dense<0xFF800000> : vector<16xf32>
    %213 = vector.multi_reduction <maximumf>, %212, %cst_151 [1] : vector<16x16xf32> to vector<16xf32>
    %214 = vector.shape_cast %213 : vector<16xf32> to vector<16x1xf32>
    %215 = vector.broadcast %214 : vector<16x1xf32> to vector<16x16xf32>
    %216 = arith.subf %212, %215 : vector<16x16xf32>
    %217 = math.exp %216 : vector<16x16xf32>
    %218 = arith.mulf %217, %204 : vector<16x16xf32>
    %cst_152 = arith.constant dense<0.000000e+00> : vector<16xf32>
    %219 = vector.multi_reduction <add>, %218, %cst_152 [1] : vector<16x16xf32> to vector<16xf32>
    %220 = vector.shape_cast %219 : vector<16xf32> to vector<16x1xf32>
    %cst_153 = arith.constant 1.000000e-30 : f32
    %221 = vector.broadcast %cst_153 : f32 to vector<16x1xf32>
    %222 = arith.addf %220, %221 : vector<16x1xf32>
    %223 = tpu.reciprocal %222 {approx = true} : vector<16x1xf32> -> vector<16x1xf32>
    %224 = vector.broadcast %223 : vector<16x1xf32> to vector<16x16xf32>
    %225 = arith.mulf %218, %224 : vector<16x16xf32>
    %cst_154 = arith.constant dense<0.000000e+00> : vector<16x16xf32>
    %226 = tpu.matmul %225, %207, %cst_154 {dimension_numbers = #tpu.dot_dimension_numbers<[1], [0], [0], [1], [0, 0, 1, 1], [], []>} : vector<16x16xf32>, vector<16x16xf32>, vector<16x16xf32> -> vector<16x16xf32>
    %227 = vector.extract_strided_slice %83 {offsets = [0, 16], sizes = [16, 16], strides = [1, 1]} : vector<16x32xf32> to vector<16x16xf32>
    %228 = vector.extract_strided_slice %199 {offsets = [0, 16], sizes = [16, 16], strides = [1, 1]} : vector<16x32xf32> to vector<16x16xf32>
    %229 = vector.extract_strided_slice %202 {offsets = [0, 16], sizes = [16, 16], strides = [1, 1]} : vector<16x32xf32> to vector<16x16xf32>
    %cst_155 = arith.constant dense<0.000000e+00> : vector<16x16xf32>
    %230 = tpu.matmul %227, %228, %cst_155 {dimension_numbers = #tpu.dot_dimension_numbers<[1], [1], [0], [0], [0, 0, 1, 0], [], []>} : vector<16x16xf32>, vector<16x16xf32>, vector<16x16xf32> -> vector<16x16xf32>
    %cst_156 = arith.constant 0.000000e+00 : f32
    %231 = vector.broadcast %cst_156 : f32 to vector<16x16xf32>
    %232 = arith.cmpf ogt, %204, %231 : vector<16x16xf32>
    %cst_157 = arith.constant -1.000000e+30 : f32
    %233 = vector.broadcast %cst_157 : f32 to vector<16x16xf32>
    %234 = arith.select %232, %230, %233 : vector<16x16xi1>, vector<16x16xf32>
    %cst_158 = arith.constant dense<0xFF800000> : vector<16xf32>
    %235 = vector.multi_reduction <maximumf>, %234, %cst_158 [1] : vector<16x16xf32> to vector<16xf32>
    %236 = vector.shape_cast %235 : vector<16xf32> to vector<16x1xf32>
    %237 = vector.broadcast %236 : vector<16x1xf32> to vector<16x16xf32>
    %238 = arith.subf %234, %237 : vector<16x16xf32>
    %239 = math.exp %238 : vector<16x16xf32>
    %240 = arith.mulf %239, %204 : vector<16x16xf32>
    %cst_159 = arith.constant dense<0.000000e+00> : vector<16xf32>
    %241 = vector.multi_reduction <add>, %240, %cst_159 [1] : vector<16x16xf32> to vector<16xf32>
    %242 = vector.shape_cast %241 : vector<16xf32> to vector<16x1xf32>
    %cst_160 = arith.constant 1.000000e-30 : f32
    %243 = vector.broadcast %cst_160 : f32 to vector<16x1xf32>
    %244 = arith.addf %242, %243 : vector<16x1xf32>
    %245 = tpu.reciprocal %244 {approx = true} : vector<16x1xf32> -> vector<16x1xf32>
    %246 = vector.broadcast %245 : vector<16x1xf32> to vector<16x16xf32>
    %247 = arith.mulf %240, %246 : vector<16x16xf32>
    %cst_161 = arith.constant dense<0.000000e+00> : vector<16x16xf32>
    %248 = tpu.matmul %247, %229, %cst_161 {dimension_numbers = #tpu.dot_dimension_numbers<[1], [0], [0], [1], [0, 0, 1, 1], [], []>} : vector<16x16xf32>, vector<16x16xf32>, vector<16x16xf32> -> vector<16x16xf32>
    %249 = tpu.concatenate %226, %248 in 1 : vector<16x16xf32>, vector<16x16xf32> -> vector<16x32xf32>
    %250 = arith.addf %88, %249 : vector<16x32xf32>
    %c0_162 = arith.constant 0 : index
    %c3_163 = arith.constant 3 : index
    %c0_164 = arith.constant 0 : index
    %c0_165 = arith.constant 0 : index
    %251 = vector.load %arg7[%c0_162, %c3_163, %c0_164, %c0_165] : memref<2x6x32x32xf32, #tpu.memory_space<vmem>>, vector<1x1x32x32xf32>
    %252 = vector.shape_cast %251 : vector<1x1x32x32xf32> to vector<32x32xf32>
    %cst_166 = arith.constant dense<0.000000e+00> : vector<16x32xf32>
    %253 = tpu.matmul %52, %252, %cst_166 {dimension_numbers = #tpu.dot_dimension_numbers<[1], [0], [0], [1], [0, 0, 1, 1], [], []>} : vector<16x32xf32>, vector<32x32xf32>, vector<16x32xf32> -> vector<16x32xf32>
    %c0_167 = arith.constant 0 : index
    %c3_168 = arith.constant 3 : index
    %c0_169 = arith.constant 0 : index
    %c0_170 = arith.constant 0 : index
    %254 = vector.load %arg8[%c0_167, %c3_168, %c0_169, %c0_170] : memref<2x6x32x32xf32, #tpu.memory_space<vmem>>, vector<1x1x32x32xf32>
    %255 = vector.shape_cast %254 : vector<1x1x32x32xf32> to vector<32x32xf32>
    %cst_171 = arith.constant dense<0.000000e+00> : vector<16x32xf32>
    %256 = tpu.matmul %54, %255, %cst_171 {dimension_numbers = #tpu.dot_dimension_numbers<[1], [0], [0], [1], [0, 0, 1, 1], [], []>} : vector<16x32xf32>, vector<32x32xf32>, vector<16x32xf32> -> vector<16x32xf32>
    %c3_172 = arith.constant 3 : index
    %c0_173 = arith.constant 0 : index
    %c0_174 = arith.constant 0 : index
    %257 = vector.load %arg2[%c3_172, %c0_173, %c0_174] : memref<6x16x16xf32, #tpu.memory_space<vmem>>, vector<1x16x16xf32>
    %258 = vector.shape_cast %257 : vector<1x16x16xf32> to vector<16x16xf32>
    %259 = vector.extract_strided_slice %63 {offsets = [0, 0], sizes = [16, 16], strides = [1, 1]} : vector<16x32xf32> to vector<16x16xf32>
    %260 = vector.extract_strided_slice %253 {offsets = [0, 0], sizes = [16, 16], strides = [1, 1]} : vector<16x32xf32> to vector<16x16xf32>
    %261 = vector.extract_strided_slice %256 {offsets = [0, 0], sizes = [16, 16], strides = [1, 1]} : vector<16x32xf32> to vector<16x16xf32>
    %cst_175 = arith.constant dense<0.000000e+00> : vector<16x16xf32>
    %262 = tpu.matmul %259, %260, %cst_175 {dimension_numbers = #tpu.dot_dimension_numbers<[1], [1], [0], [0], [0, 0, 1, 0], [], []>} : vector<16x16xf32>, vector<16x16xf32>, vector<16x16xf32> -> vector<16x16xf32>
    %cst_176 = arith.constant 0.000000e+00 : f32
    %263 = vector.broadcast %cst_176 : f32 to vector<16x16xf32>
    %264 = arith.cmpf ogt, %258, %263 : vector<16x16xf32>
    %cst_177 = arith.constant -1.000000e+30 : f32
    %265 = vector.broadcast %cst_177 : f32 to vector<16x16xf32>
    %266 = arith.select %264, %262, %265 : vector<16x16xi1>, vector<16x16xf32>
    %cst_178 = arith.constant dense<0xFF800000> : vector<16xf32>
    %267 = vector.multi_reduction <maximumf>, %266, %cst_178 [1] : vector<16x16xf32> to vector<16xf32>
    %268 = vector.shape_cast %267 : vector<16xf32> to vector<16x1xf32>
    %269 = vector.broadcast %268 : vector<16x1xf32> to vector<16x16xf32>
    %270 = arith.subf %266, %269 : vector<16x16xf32>
    %271 = math.exp %270 : vector<16x16xf32>
    %272 = arith.mulf %271, %258 : vector<16x16xf32>
    %cst_179 = arith.constant dense<0.000000e+00> : vector<16xf32>
    %273 = vector.multi_reduction <add>, %272, %cst_179 [1] : vector<16x16xf32> to vector<16xf32>
    %274 = vector.shape_cast %273 : vector<16xf32> to vector<16x1xf32>
    %cst_180 = arith.constant 1.000000e-30 : f32
    %275 = vector.broadcast %cst_180 : f32 to vector<16x1xf32>
    %276 = arith.addf %274, %275 : vector<16x1xf32>
    %277 = tpu.reciprocal %276 {approx = true} : vector<16x1xf32> -> vector<16x1xf32>
    %278 = vector.broadcast %277 : vector<16x1xf32> to vector<16x16xf32>
    %279 = arith.mulf %272, %278 : vector<16x16xf32>
    %cst_181 = arith.constant dense<0.000000e+00> : vector<16x16xf32>
    %280 = tpu.matmul %279, %261, %cst_181 {dimension_numbers = #tpu.dot_dimension_numbers<[1], [0], [0], [1], [0, 0, 1, 1], [], []>} : vector<16x16xf32>, vector<16x16xf32>, vector<16x16xf32> -> vector<16x16xf32>
    %281 = vector.extract_strided_slice %63 {offsets = [0, 16], sizes = [16, 16], strides = [1, 1]} : vector<16x32xf32> to vector<16x16xf32>
    %282 = vector.extract_strided_slice %253 {offsets = [0, 16], sizes = [16, 16], strides = [1, 1]} : vector<16x32xf32> to vector<16x16xf32>
    %283 = vector.extract_strided_slice %256 {offsets = [0, 16], sizes = [16, 16], strides = [1, 1]} : vector<16x32xf32> to vector<16x16xf32>
    %cst_182 = arith.constant dense<0.000000e+00> : vector<16x16xf32>
    %284 = tpu.matmul %281, %282, %cst_182 {dimension_numbers = #tpu.dot_dimension_numbers<[1], [1], [0], [0], [0, 0, 1, 0], [], []>} : vector<16x16xf32>, vector<16x16xf32>, vector<16x16xf32> -> vector<16x16xf32>
    %cst_183 = arith.constant 0.000000e+00 : f32
    %285 = vector.broadcast %cst_183 : f32 to vector<16x16xf32>
    %286 = arith.cmpf ogt, %258, %285 : vector<16x16xf32>
    %cst_184 = arith.constant -1.000000e+30 : f32
    %287 = vector.broadcast %cst_184 : f32 to vector<16x16xf32>
    %288 = arith.select %286, %284, %287 : vector<16x16xi1>, vector<16x16xf32>
    %cst_185 = arith.constant dense<0xFF800000> : vector<16xf32>
    %289 = vector.multi_reduction <maximumf>, %288, %cst_185 [1] : vector<16x16xf32> to vector<16xf32>
    %290 = vector.shape_cast %289 : vector<16xf32> to vector<16x1xf32>
    %291 = vector.broadcast %290 : vector<16x1xf32> to vector<16x16xf32>
    %292 = arith.subf %288, %291 : vector<16x16xf32>
    %293 = math.exp %292 : vector<16x16xf32>
    %294 = arith.mulf %293, %258 : vector<16x16xf32>
    %cst_186 = arith.constant dense<0.000000e+00> : vector<16xf32>
    %295 = vector.multi_reduction <add>, %294, %cst_186 [1] : vector<16x16xf32> to vector<16xf32>
    %296 = vector.shape_cast %295 : vector<16xf32> to vector<16x1xf32>
    %cst_187 = arith.constant 1.000000e-30 : f32
    %297 = vector.broadcast %cst_187 : f32 to vector<16x1xf32>
    %298 = arith.addf %296, %297 : vector<16x1xf32>
    %299 = tpu.reciprocal %298 {approx = true} : vector<16x1xf32> -> vector<16x1xf32>
    %300 = vector.broadcast %299 : vector<16x1xf32> to vector<16x16xf32>
    %301 = arith.mulf %294, %300 : vector<16x16xf32>
    %cst_188 = arith.constant dense<0.000000e+00> : vector<16x16xf32>
    %302 = tpu.matmul %301, %283, %cst_188 {dimension_numbers = #tpu.dot_dimension_numbers<[1], [0], [0], [1], [0, 0, 1, 1], [], []>} : vector<16x16xf32>, vector<16x16xf32>, vector<16x16xf32> -> vector<16x16xf32>
    %303 = tpu.concatenate %280, %302 in 1 : vector<16x16xf32>, vector<16x16xf32> -> vector<16x32xf32>
    %304 = arith.addf %86, %303 : vector<16x32xf32>
    %c0_189 = arith.constant 0 : index
    %c4 = arith.constant 4 : index
    %c0_190 = arith.constant 0 : index
    %c0_191 = arith.constant 0 : index
    %305 = vector.load %arg7[%c0_189, %c4, %c0_190, %c0_191] : memref<2x6x32x32xf32, #tpu.memory_space<vmem>>, vector<1x1x32x32xf32>
    %306 = vector.shape_cast %305 : vector<1x1x32x32xf32> to vector<32x32xf32>
    %cst_192 = arith.constant dense<0.000000e+00> : vector<16x32xf32>
    %307 = tpu.matmul %72, %306, %cst_192 {dimension_numbers = #tpu.dot_dimension_numbers<[1], [0], [0], [1], [0, 0, 1, 1], [], []>} : vector<16x32xf32>, vector<32x32xf32>, vector<16x32xf32> -> vector<16x32xf32>
    %c0_193 = arith.constant 0 : index
    %c4_194 = arith.constant 4 : index
    %c0_195 = arith.constant 0 : index
    %c0_196 = arith.constant 0 : index
    %308 = vector.load %arg8[%c0_193, %c4_194, %c0_195, %c0_196] : memref<2x6x32x32xf32, #tpu.memory_space<vmem>>, vector<1x1x32x32xf32>
    %309 = vector.shape_cast %308 : vector<1x1x32x32xf32> to vector<32x32xf32>
    %cst_197 = arith.constant dense<0.000000e+00> : vector<16x32xf32>
    %310 = tpu.matmul %74, %309, %cst_197 {dimension_numbers = #tpu.dot_dimension_numbers<[1], [0], [0], [1], [0, 0, 1, 1], [], []>} : vector<16x32xf32>, vector<32x32xf32>, vector<16x32xf32> -> vector<16x32xf32>
    %c4_198 = arith.constant 4 : index
    %c0_199 = arith.constant 0 : index
    %c0_200 = arith.constant 0 : index
    %311 = vector.load %arg2[%c4_198, %c0_199, %c0_200] : memref<6x16x16xf32, #tpu.memory_space<vmem>>, vector<1x16x16xf32>
    %312 = vector.shape_cast %311 : vector<1x16x16xf32> to vector<16x16xf32>
    %313 = vector.extract_strided_slice %63 {offsets = [0, 0], sizes = [16, 16], strides = [1, 1]} : vector<16x32xf32> to vector<16x16xf32>
    %314 = vector.extract_strided_slice %307 {offsets = [0, 0], sizes = [16, 16], strides = [1, 1]} : vector<16x32xf32> to vector<16x16xf32>
    %315 = vector.extract_strided_slice %310 {offsets = [0, 0], sizes = [16, 16], strides = [1, 1]} : vector<16x32xf32> to vector<16x16xf32>
    %cst_201 = arith.constant dense<0.000000e+00> : vector<16x16xf32>
    %316 = tpu.matmul %313, %314, %cst_201 {dimension_numbers = #tpu.dot_dimension_numbers<[1], [1], [0], [0], [0, 0, 1, 0], [], []>} : vector<16x16xf32>, vector<16x16xf32>, vector<16x16xf32> -> vector<16x16xf32>
    %cst_202 = arith.constant 0.000000e+00 : f32
    %317 = vector.broadcast %cst_202 : f32 to vector<16x16xf32>
    %318 = arith.cmpf ogt, %312, %317 : vector<16x16xf32>
    %cst_203 = arith.constant -1.000000e+30 : f32
    %319 = vector.broadcast %cst_203 : f32 to vector<16x16xf32>
    %320 = arith.select %318, %316, %319 : vector<16x16xi1>, vector<16x16xf32>
    %cst_204 = arith.constant dense<0xFF800000> : vector<16xf32>
    %321 = vector.multi_reduction <maximumf>, %320, %cst_204 [1] : vector<16x16xf32> to vector<16xf32>
    %322 = vector.shape_cast %321 : vector<16xf32> to vector<16x1xf32>
    %323 = vector.broadcast %322 : vector<16x1xf32> to vector<16x16xf32>
    %324 = arith.subf %320, %323 : vector<16x16xf32>
    %325 = math.exp %324 : vector<16x16xf32>
    %326 = arith.mulf %325, %312 : vector<16x16xf32>
    %cst_205 = arith.constant dense<0.000000e+00> : vector<16xf32>
    %327 = vector.multi_reduction <add>, %326, %cst_205 [1] : vector<16x16xf32> to vector<16xf32>
    %328 = vector.shape_cast %327 : vector<16xf32> to vector<16x1xf32>
    %cst_206 = arith.constant 1.000000e-30 : f32
    %329 = vector.broadcast %cst_206 : f32 to vector<16x1xf32>
    %330 = arith.addf %328, %329 : vector<16x1xf32>
    %331 = tpu.reciprocal %330 {approx = true} : vector<16x1xf32> -> vector<16x1xf32>
    %332 = vector.broadcast %331 : vector<16x1xf32> to vector<16x16xf32>
    %333 = arith.mulf %326, %332 : vector<16x16xf32>
    %cst_207 = arith.constant dense<0.000000e+00> : vector<16x16xf32>
    %334 = tpu.matmul %333, %315, %cst_207 {dimension_numbers = #tpu.dot_dimension_numbers<[1], [0], [0], [1], [0, 0, 1, 1], [], []>} : vector<16x16xf32>, vector<16x16xf32>, vector<16x16xf32> -> vector<16x16xf32>
    %335 = vector.extract_strided_slice %63 {offsets = [0, 16], sizes = [16, 16], strides = [1, 1]} : vector<16x32xf32> to vector<16x16xf32>
    %336 = vector.extract_strided_slice %307 {offsets = [0, 16], sizes = [16, 16], strides = [1, 1]} : vector<16x32xf32> to vector<16x16xf32>
    %337 = vector.extract_strided_slice %310 {offsets = [0, 16], sizes = [16, 16], strides = [1, 1]} : vector<16x32xf32> to vector<16x16xf32>
    %cst_208 = arith.constant dense<0.000000e+00> : vector<16x16xf32>
    %338 = tpu.matmul %335, %336, %cst_208 {dimension_numbers = #tpu.dot_dimension_numbers<[1], [1], [0], [0], [0, 0, 1, 0], [], []>} : vector<16x16xf32>, vector<16x16xf32>, vector<16x16xf32> -> vector<16x16xf32>
    %cst_209 = arith.constant 0.000000e+00 : f32
    %339 = vector.broadcast %cst_209 : f32 to vector<16x16xf32>
    %340 = arith.cmpf ogt, %312, %339 : vector<16x16xf32>
    %cst_210 = arith.constant -1.000000e+30 : f32
    %341 = vector.broadcast %cst_210 : f32 to vector<16x16xf32>
    %342 = arith.select %340, %338, %341 : vector<16x16xi1>, vector<16x16xf32>
    %cst_211 = arith.constant dense<0xFF800000> : vector<16xf32>
    %343 = vector.multi_reduction <maximumf>, %342, %cst_211 [1] : vector<16x16xf32> to vector<16xf32>
    %344 = vector.shape_cast %343 : vector<16xf32> to vector<16x1xf32>
    %345 = vector.broadcast %344 : vector<16x1xf32> to vector<16x16xf32>
    %346 = arith.subf %342, %345 : vector<16x16xf32>
    %347 = math.exp %346 : vector<16x16xf32>
    %348 = arith.mulf %347, %312 : vector<16x16xf32>
    %cst_212 = arith.constant dense<0.000000e+00> : vector<16xf32>
    %349 = vector.multi_reduction <add>, %348, %cst_212 [1] : vector<16x16xf32> to vector<16xf32>
    %350 = vector.shape_cast %349 : vector<16xf32> to vector<16x1xf32>
    %cst_213 = arith.constant 1.000000e-30 : f32
    %351 = vector.broadcast %cst_213 : f32 to vector<16x1xf32>
    %352 = arith.addf %350, %351 : vector<16x1xf32>
    %353 = tpu.reciprocal %352 {approx = true} : vector<16x1xf32> -> vector<16x1xf32>
    %354 = vector.broadcast %353 : vector<16x1xf32> to vector<16x16xf32>
    %355 = arith.mulf %348, %354 : vector<16x16xf32>
    %cst_214 = arith.constant dense<0.000000e+00> : vector<16x16xf32>
    %356 = tpu.matmul %355, %337, %cst_214 {dimension_numbers = #tpu.dot_dimension_numbers<[1], [0], [0], [1], [0, 0, 1, 1], [], []>} : vector<16x16xf32>, vector<16x16xf32>, vector<16x16xf32> -> vector<16x16xf32>
    %357 = tpu.concatenate %334, %356 in 1 : vector<16x16xf32>, vector<16x16xf32> -> vector<16x32xf32>
    %358 = arith.addf %304, %357 : vector<16x32xf32>
    %c0_215 = arith.constant 0 : index
    %c5 = arith.constant 5 : index
    %c0_216 = arith.constant 0 : index
    %c0_217 = arith.constant 0 : index
    %359 = vector.load %arg7[%c0_215, %c5, %c0_216, %c0_217] : memref<2x6x32x32xf32, #tpu.memory_space<vmem>>, vector<1x1x32x32xf32>
    %360 = vector.shape_cast %359 : vector<1x1x32x32xf32> to vector<32x32xf32>
    %cst_218 = arith.constant dense<0.000000e+00> : vector<16x32xf32>
    %361 = tpu.matmul %82, %360, %cst_218 {dimension_numbers = #tpu.dot_dimension_numbers<[1], [0], [0], [1], [0, 0, 1, 1], [], []>} : vector<16x32xf32>, vector<32x32xf32>, vector<16x32xf32> -> vector<16x32xf32>
    %c0_219 = arith.constant 0 : index
    %c5_220 = arith.constant 5 : index
    %c0_221 = arith.constant 0 : index
    %c0_222 = arith.constant 0 : index
    %362 = vector.load %arg8[%c0_219, %c5_220, %c0_221, %c0_222] : memref<2x6x32x32xf32, #tpu.memory_space<vmem>>, vector<1x1x32x32xf32>
    %363 = vector.shape_cast %362 : vector<1x1x32x32xf32> to vector<32x32xf32>
    %cst_223 = arith.constant dense<0.000000e+00> : vector<16x32xf32>
    %364 = tpu.matmul %84, %363, %cst_223 {dimension_numbers = #tpu.dot_dimension_numbers<[1], [0], [0], [1], [0, 0, 1, 1], [], []>} : vector<16x32xf32>, vector<32x32xf32>, vector<16x32xf32> -> vector<16x32xf32>
    %c5_224 = arith.constant 5 : index
    %c0_225 = arith.constant 0 : index
    %c0_226 = arith.constant 0 : index
    %365 = vector.load %arg2[%c5_224, %c0_225, %c0_226] : memref<6x16x16xf32, #tpu.memory_space<vmem>>, vector<1x16x16xf32>
    %366 = vector.shape_cast %365 : vector<1x16x16xf32> to vector<16x16xf32>
    %367 = vector.extract_strided_slice %63 {offsets = [0, 0], sizes = [16, 16], strides = [1, 1]} : vector<16x32xf32> to vector<16x16xf32>
    %368 = vector.extract_strided_slice %361 {offsets = [0, 0], sizes = [16, 16], strides = [1, 1]} : vector<16x32xf32> to vector<16x16xf32>
    %369 = vector.extract_strided_slice %364 {offsets = [0, 0], sizes = [16, 16], strides = [1, 1]} : vector<16x32xf32> to vector<16x16xf32>
    %cst_227 = arith.constant dense<0.000000e+00> : vector<16x16xf32>
    %370 = tpu.matmul %367, %368, %cst_227 {dimension_numbers = #tpu.dot_dimension_numbers<[1], [1], [0], [0], [0, 0, 1, 0], [], []>} : vector<16x16xf32>, vector<16x16xf32>, vector<16x16xf32> -> vector<16x16xf32>
    %cst_228 = arith.constant 0.000000e+00 : f32
    %371 = vector.broadcast %cst_228 : f32 to vector<16x16xf32>
    %372 = arith.cmpf ogt, %366, %371 : vector<16x16xf32>
    %cst_229 = arith.constant -1.000000e+30 : f32
    %373 = vector.broadcast %cst_229 : f32 to vector<16x16xf32>
    %374 = arith.select %372, %370, %373 : vector<16x16xi1>, vector<16x16xf32>
    %cst_230 = arith.constant dense<0xFF800000> : vector<16xf32>
    %375 = vector.multi_reduction <maximumf>, %374, %cst_230 [1] : vector<16x16xf32> to vector<16xf32>
    %376 = vector.shape_cast %375 : vector<16xf32> to vector<16x1xf32>
    %377 = vector.broadcast %376 : vector<16x1xf32> to vector<16x16xf32>
    %378 = arith.subf %374, %377 : vector<16x16xf32>
    %379 = math.exp %378 : vector<16x16xf32>
    %380 = arith.mulf %379, %366 : vector<16x16xf32>
    %cst_231 = arith.constant dense<0.000000e+00> : vector<16xf32>
    %381 = vector.multi_reduction <add>, %380, %cst_231 [1] : vector<16x16xf32> to vector<16xf32>
    %382 = vector.shape_cast %381 : vector<16xf32> to vector<16x1xf32>
    %cst_232 = arith.constant 1.000000e-30 : f32
    %383 = vector.broadcast %cst_232 : f32 to vector<16x1xf32>
    %384 = arith.addf %382, %383 : vector<16x1xf32>
    %385 = tpu.reciprocal %384 {approx = true} : vector<16x1xf32> -> vector<16x1xf32>
    %386 = vector.broadcast %385 : vector<16x1xf32> to vector<16x16xf32>
    %387 = arith.mulf %380, %386 : vector<16x16xf32>
    %cst_233 = arith.constant dense<0.000000e+00> : vector<16x16xf32>
    %388 = tpu.matmul %387, %369, %cst_233 {dimension_numbers = #tpu.dot_dimension_numbers<[1], [0], [0], [1], [0, 0, 1, 1], [], []>} : vector<16x16xf32>, vector<16x16xf32>, vector<16x16xf32> -> vector<16x16xf32>
    %389 = vector.extract_strided_slice %63 {offsets = [0, 16], sizes = [16, 16], strides = [1, 1]} : vector<16x32xf32> to vector<16x16xf32>
    %390 = vector.extract_strided_slice %361 {offsets = [0, 16], sizes = [16, 16], strides = [1, 1]} : vector<16x32xf32> to vector<16x16xf32>
    %391 = vector.extract_strided_slice %364 {offsets = [0, 16], sizes = [16, 16], strides = [1, 1]} : vector<16x32xf32> to vector<16x16xf32>
    %cst_234 = arith.constant dense<0.000000e+00> : vector<16x16xf32>
    %392 = tpu.matmul %389, %390, %cst_234 {dimension_numbers = #tpu.dot_dimension_numbers<[1], [1], [0], [0], [0, 0, 1, 0], [], []>} : vector<16x16xf32>, vector<16x16xf32>, vector<16x16xf32> -> vector<16x16xf32>
    %cst_235 = arith.constant 0.000000e+00 : f32
    %393 = vector.broadcast %cst_235 : f32 to vector<16x16xf32>
    %394 = arith.cmpf ogt, %366, %393 : vector<16x16xf32>
    %cst_236 = arith.constant -1.000000e+30 : f32
    %395 = vector.broadcast %cst_236 : f32 to vector<16x16xf32>
    %396 = arith.select %394, %392, %395 : vector<16x16xi1>, vector<16x16xf32>
    %cst_237 = arith.constant dense<0xFF800000> : vector<16xf32>
    %397 = vector.multi_reduction <maximumf>, %396, %cst_237 [1] : vector<16x16xf32> to vector<16xf32>
    %398 = vector.shape_cast %397 : vector<16xf32> to vector<16x1xf32>
    %399 = vector.broadcast %398 : vector<16x1xf32> to vector<16x16xf32>
    %400 = arith.subf %396, %399 : vector<16x16xf32>
    %401 = math.exp %400 : vector<16x16xf32>
    %402 = arith.mulf %401, %366 : vector<16x16xf32>
    %cst_238 = arith.constant dense<0.000000e+00> : vector<16xf32>
    %403 = vector.multi_reduction <add>, %402, %cst_238 [1] : vector<16x16xf32> to vector<16xf32>
    %404 = vector.shape_cast %403 : vector<16xf32> to vector<16x1xf32>
    %cst_239 = arith.constant 1.000000e-30 : f32
    %405 = vector.broadcast %cst_239 : f32 to vector<16x1xf32>
    %406 = arith.addf %404, %405 : vector<16x1xf32>
    %407 = tpu.reciprocal %406 {approx = true} : vector<16x1xf32> -> vector<16x1xf32>
    %408 = vector.broadcast %407 : vector<16x1xf32> to vector<16x16xf32>
    %409 = arith.mulf %402, %408 : vector<16x16xf32>
    %cst_240 = arith.constant dense<0.000000e+00> : vector<16x16xf32>
    %410 = tpu.matmul %409, %391, %cst_240 {dimension_numbers = #tpu.dot_dimension_numbers<[1], [0], [0], [1], [0, 0, 1, 1], [], []>} : vector<16x16xf32>, vector<16x16xf32>, vector<16x16xf32> -> vector<16x16xf32>
    %411 = tpu.concatenate %388, %410 in 1 : vector<16x16xf32>, vector<16x16xf32> -> vector<16x32xf32>
    %412 = arith.addf %358, %411 : vector<16x32xf32>
    %413 = arith.mulf %142, %142 : vector<16x32xf32>
    %414 = arith.mulf %142, %413 : vector<16x32xf32>
    %cst_241 = arith.constant 4.471500e-02 : f32
    %415 = vector.broadcast %cst_241 : f32 to vector<16x32xf32>
    %416 = arith.mulf %415, %414 : vector<16x32xf32>
    %417 = arith.addf %142, %416 : vector<16x32xf32>
    %cst_242 = arith.constant 0.797884583 : f32
    %418 = vector.broadcast %cst_242 : f32 to vector<16x32xf32>
    %419 = arith.mulf %418, %417 : vector<16x32xf32>
    %420 = math.tanh %419 : vector<16x32xf32>
    %cst_243 = arith.constant 1.000000e+00 : f32
    %421 = vector.broadcast %cst_243 : f32 to vector<16x32xf32>
    %422 = arith.addf %421, %420 : vector<16x32xf32>
    %cst_244 = arith.constant 5.000000e-01 : f32
    %423 = vector.broadcast %cst_244 : f32 to vector<16x32xf32>
    %424 = arith.mulf %423, %422 : vector<16x32xf32>
    %425 = arith.mulf %142, %424 : vector<16x32xf32>
    %c0_245 = arith.constant 0 : index
    %c0_246 = arith.constant 0 : index
    %c0_247 = arith.constant 0 : index
    %c0_248 = arith.constant 0 : index
    %426 = vector.load %arg9[%c0_245, %c0_246, %c0_247, %c0_248] : memref<2x4x32x32xf32, #tpu.memory_space<vmem>>, vector<1x1x32x32xf32>
    %427 = vector.shape_cast %426 : vector<1x1x32x32xf32> to vector<32x32xf32>
    %cst_249 = arith.constant dense<0.000000e+00> : vector<16x32xf32>
    %428 = tpu.matmul %425, %427, %cst_249 {dimension_numbers = #tpu.dot_dimension_numbers<[1], [0], [0], [1], [0, 0, 1, 1], [], []>} : vector<16x32xf32>, vector<32x32xf32>, vector<16x32xf32> -> vector<16x32xf32>
    %c0_250 = arith.constant 0 : index
    %c0_251 = arith.constant 0 : index
    %c0_252 = arith.constant 0 : index
    %c0_253 = arith.constant 0 : index
    %429 = vector.load %arg10[%c0_250, %c0_251, %c0_252, %c0_253] : memref<2x4x1x32xf32, #tpu.memory_space<vmem>>, vector<1x1x1x32xf32>
    %430 = vector.shape_cast %429 : vector<1x1x1x32xf32> to vector<1x32xf32>
    %431 = vector.broadcast %430 : vector<1x32xf32> to vector<16x32xf32>
    %432 = arith.addf %428, %431 : vector<16x32xf32>
    %433 = vector.extract_strided_slice %44 {offsets = [0, 0], sizes = [1, 1], strides = [1, 1]} : vector<2x4xf32> to vector<1x1xf32>
    %434 = vector.broadcast %433 : vector<1x1xf32> to vector<16x32xf32>
    %435 = arith.mulf %434, %432 : vector<16x32xf32>
    %cst_254 = arith.constant 1.000000e+00 : f32
    %436 = vector.broadcast %cst_254 : f32 to vector<1x1xf32>
    %437 = arith.subf %436, %433 : vector<1x1xf32>
    %438 = vector.broadcast %437 : vector<1x1xf32> to vector<16x32xf32>
    %439 = arith.mulf %438, %10 : vector<16x32xf32>
    %440 = arith.addf %435, %439 : vector<16x32xf32>
    %441 = arith.mulf %412, %412 : vector<16x32xf32>
    %442 = arith.mulf %412, %441 : vector<16x32xf32>
    %cst_255 = arith.constant 4.471500e-02 : f32
    %443 = vector.broadcast %cst_255 : f32 to vector<16x32xf32>
    %444 = arith.mulf %443, %442 : vector<16x32xf32>
    %445 = arith.addf %412, %444 : vector<16x32xf32>
    %cst_256 = arith.constant 0.797884583 : f32
    %446 = vector.broadcast %cst_256 : f32 to vector<16x32xf32>
    %447 = arith.mulf %446, %445 : vector<16x32xf32>
    %448 = math.tanh %447 : vector<16x32xf32>
    %cst_257 = arith.constant 1.000000e+00 : f32
    %449 = vector.broadcast %cst_257 : f32 to vector<16x32xf32>
    %450 = arith.addf %449, %448 : vector<16x32xf32>
    %cst_258 = arith.constant 5.000000e-01 : f32
    %451 = vector.broadcast %cst_258 : f32 to vector<16x32xf32>
    %452 = arith.mulf %451, %450 : vector<16x32xf32>
    %453 = arith.mulf %412, %452 : vector<16x32xf32>
    %c0_259 = arith.constant 0 : index
    %c1_260 = arith.constant 1 : index
    %c0_261 = arith.constant 0 : index
    %c0_262 = arith.constant 0 : index
    %454 = vector.load %arg9[%c0_259, %c1_260, %c0_261, %c0_262] : memref<2x4x32x32xf32, #tpu.memory_space<vmem>>, vector<1x1x32x32xf32>
    %455 = vector.shape_cast %454 : vector<1x1x32x32xf32> to vector<32x32xf32>
    %cst_263 = arith.constant dense<0.000000e+00> : vector<16x32xf32>
    %456 = tpu.matmul %453, %455, %cst_263 {dimension_numbers = #tpu.dot_dimension_numbers<[1], [0], [0], [1], [0, 0, 1, 1], [], []>} : vector<16x32xf32>, vector<32x32xf32>, vector<16x32xf32> -> vector<16x32xf32>
    %c0_264 = arith.constant 0 : index
    %c1_265 = arith.constant 1 : index
    %c0_266 = arith.constant 0 : index
    %c0_267 = arith.constant 0 : index
    %457 = vector.load %arg10[%c0_264, %c1_265, %c0_266, %c0_267] : memref<2x4x1x32xf32, #tpu.memory_space<vmem>>, vector<1x1x1x32xf32>
    %458 = vector.shape_cast %457 : vector<1x1x1x32xf32> to vector<1x32xf32>
    %459 = vector.broadcast %458 : vector<1x32xf32> to vector<16x32xf32>
    %460 = arith.addf %456, %459 : vector<16x32xf32>
    %461 = vector.extract_strided_slice %44 {offsets = [0, 1], sizes = [1, 1], strides = [1, 1]} : vector<2x4xf32> to vector<1x1xf32>
    %462 = vector.broadcast %461 : vector<1x1xf32> to vector<16x32xf32>
    %463 = arith.mulf %462, %460 : vector<16x32xf32>
    %cst_268 = arith.constant 1.000000e+00 : f32
    %464 = vector.broadcast %cst_268 : f32 to vector<1x1xf32>
    %465 = arith.subf %464, %461 : vector<1x1xf32>
    %466 = vector.broadcast %465 : vector<1x1xf32> to vector<16x32xf32>
    %467 = arith.mulf %466, %21 : vector<16x32xf32>
    %468 = arith.addf %463, %467 : vector<16x32xf32>
    %469 = arith.mulf %196, %196 : vector<16x32xf32>
    %470 = arith.mulf %196, %469 : vector<16x32xf32>
    %cst_269 = arith.constant 4.471500e-02 : f32
    %471 = vector.broadcast %cst_269 : f32 to vector<16x32xf32>
    %472 = arith.mulf %471, %470 : vector<16x32xf32>
    %473 = arith.addf %196, %472 : vector<16x32xf32>
    %cst_270 = arith.constant 0.797884583 : f32
    %474 = vector.broadcast %cst_270 : f32 to vector<16x32xf32>
    %475 = arith.mulf %474, %473 : vector<16x32xf32>
    %476 = math.tanh %475 : vector<16x32xf32>
    %cst_271 = arith.constant 1.000000e+00 : f32
    %477 = vector.broadcast %cst_271 : f32 to vector<16x32xf32>
    %478 = arith.addf %477, %476 : vector<16x32xf32>
    %cst_272 = arith.constant 5.000000e-01 : f32
    %479 = vector.broadcast %cst_272 : f32 to vector<16x32xf32>
    %480 = arith.mulf %479, %478 : vector<16x32xf32>
    %481 = arith.mulf %196, %480 : vector<16x32xf32>
    %c0_273 = arith.constant 0 : index
    %c2_274 = arith.constant 2 : index
    %c0_275 = arith.constant 0 : index
    %c0_276 = arith.constant 0 : index
    %482 = vector.load %arg9[%c0_273, %c2_274, %c0_275, %c0_276] : memref<2x4x32x32xf32, #tpu.memory_space<vmem>>, vector<1x1x32x32xf32>
    %483 = vector.shape_cast %482 : vector<1x1x32x32xf32> to vector<32x32xf32>
    %cst_277 = arith.constant dense<0.000000e+00> : vector<16x32xf32>
    %484 = tpu.matmul %481, %483, %cst_277 {dimension_numbers = #tpu.dot_dimension_numbers<[1], [0], [0], [1], [0, 0, 1, 1], [], []>} : vector<16x32xf32>, vector<32x32xf32>, vector<16x32xf32> -> vector<16x32xf32>
    %c0_278 = arith.constant 0 : index
    %c2_279 = arith.constant 2 : index
    %c0_280 = arith.constant 0 : index
    %c0_281 = arith.constant 0 : index
    %485 = vector.load %arg10[%c0_278, %c2_279, %c0_280, %c0_281] : memref<2x4x1x32xf32, #tpu.memory_space<vmem>>, vector<1x1x1x32xf32>
    %486 = vector.shape_cast %485 : vector<1x1x1x32xf32> to vector<1x32xf32>
    %487 = vector.broadcast %486 : vector<1x32xf32> to vector<16x32xf32>
    %488 = arith.addf %484, %487 : vector<16x32xf32>
    %489 = vector.extract_strided_slice %44 {offsets = [0, 2], sizes = [1, 1], strides = [1, 1]} : vector<2x4xf32> to vector<1x1xf32>
    %490 = vector.broadcast %489 : vector<1x1xf32> to vector<16x32xf32>
    %491 = arith.mulf %490, %488 : vector<16x32xf32>
    %cst_282 = arith.constant 1.000000e+00 : f32
    %492 = vector.broadcast %cst_282 : f32 to vector<1x1xf32>
    %493 = arith.subf %492, %489 : vector<1x1xf32>
    %494 = vector.broadcast %493 : vector<1x1xf32> to vector<16x32xf32>
    %495 = arith.mulf %494, %32 : vector<16x32xf32>
    %496 = arith.addf %491, %495 : vector<16x32xf32>
    %497 = arith.mulf %250, %250 : vector<16x32xf32>
    %498 = arith.mulf %250, %497 : vector<16x32xf32>
    %cst_283 = arith.constant 4.471500e-02 : f32
    %499 = vector.broadcast %cst_283 : f32 to vector<16x32xf32>
    %500 = arith.mulf %499, %498 : vector<16x32xf32>
    %501 = arith.addf %250, %500 : vector<16x32xf32>
    %cst_284 = arith.constant 0.797884583 : f32
    %502 = vector.broadcast %cst_284 : f32 to vector<16x32xf32>
    %503 = arith.mulf %502, %501 : vector<16x32xf32>
    %504 = math.tanh %503 : vector<16x32xf32>
    %cst_285 = arith.constant 1.000000e+00 : f32
    %505 = vector.broadcast %cst_285 : f32 to vector<16x32xf32>
    %506 = arith.addf %505, %504 : vector<16x32xf32>
    %cst_286 = arith.constant 5.000000e-01 : f32
    %507 = vector.broadcast %cst_286 : f32 to vector<16x32xf32>
    %508 = arith.mulf %507, %506 : vector<16x32xf32>
    %509 = arith.mulf %250, %508 : vector<16x32xf32>
    %c0_287 = arith.constant 0 : index
    %c3_288 = arith.constant 3 : index
    %c0_289 = arith.constant 0 : index
    %c0_290 = arith.constant 0 : index
    %510 = vector.load %arg9[%c0_287, %c3_288, %c0_289, %c0_290] : memref<2x4x32x32xf32, #tpu.memory_space<vmem>>, vector<1x1x32x32xf32>
    %511 = vector.shape_cast %510 : vector<1x1x32x32xf32> to vector<32x32xf32>
    %cst_291 = arith.constant dense<0.000000e+00> : vector<16x32xf32>
    %512 = tpu.matmul %509, %511, %cst_291 {dimension_numbers = #tpu.dot_dimension_numbers<[1], [0], [0], [1], [0, 0, 1, 1], [], []>} : vector<16x32xf32>, vector<32x32xf32>, vector<16x32xf32> -> vector<16x32xf32>
    %c0_292 = arith.constant 0 : index
    %c3_293 = arith.constant 3 : index
    %c0_294 = arith.constant 0 : index
    %c0_295 = arith.constant 0 : index
    %513 = vector.load %arg10[%c0_292, %c3_293, %c0_294, %c0_295] : memref<2x4x1x32xf32, #tpu.memory_space<vmem>>, vector<1x1x1x32xf32>
    %514 = vector.shape_cast %513 : vector<1x1x1x32xf32> to vector<1x32xf32>
    %515 = vector.broadcast %514 : vector<1x32xf32> to vector<16x32xf32>
    %516 = arith.addf %512, %515 : vector<16x32xf32>
    %517 = vector.extract_strided_slice %44 {offsets = [0, 3], sizes = [1, 1], strides = [1, 1]} : vector<2x4xf32> to vector<1x1xf32>
    %518 = vector.broadcast %517 : vector<1x1xf32> to vector<16x32xf32>
    %519 = arith.mulf %518, %516 : vector<16x32xf32>
    %cst_296 = arith.constant 1.000000e+00 : f32
    %520 = vector.broadcast %cst_296 : f32 to vector<1x1xf32>
    %521 = arith.subf %520, %517 : vector<1x1xf32>
    %522 = vector.broadcast %521 : vector<1x1xf32> to vector<16x32xf32>
    %523 = arith.mulf %522, %43 : vector<16x32xf32>
    %524 = arith.addf %519, %523 : vector<16x32xf32>
    %c1_297 = arith.constant 1 : index
    %c0_298 = arith.constant 0 : index
    %c0_299 = arith.constant 0 : index
    %c0_300 = arith.constant 0 : index
    %525 = vector.load %arg5[%c1_297, %c0_298, %c0_299, %c0_300] : memref<2x4x32x96xf32, #tpu.memory_space<vmem>>, vector<1x1x32x96xf32>
    %526 = vector.shape_cast %525 : vector<1x1x32x96xf32> to vector<32x96xf32>
    %cst_301 = arith.constant dense<0.000000e+00> : vector<16x96xf32>
    %527 = tpu.matmul %440, %526, %cst_301 {dimension_numbers = #tpu.dot_dimension_numbers<[1], [0], [0], [1], [0, 0, 1, 1], [], []>} : vector<16x32xf32>, vector<32x96xf32>, vector<16x96xf32> -> vector<16x96xf32>
    %c1_302 = arith.constant 1 : index
    %c0_303 = arith.constant 0 : index
    %c0_304 = arith.constant 0 : index
    %c0_305 = arith.constant 0 : index
    %528 = vector.load %arg6[%c1_302, %c0_303, %c0_304, %c0_305] : memref<2x4x1x96xf32, #tpu.memory_space<vmem>>, vector<1x1x1x96xf32>
    %529 = vector.shape_cast %528 : vector<1x1x1x96xf32> to vector<1x96xf32>
    %530 = vector.broadcast %529 : vector<1x96xf32> to vector<16x96xf32>
    %531 = arith.addf %527, %530 : vector<16x96xf32>
    %532 = vector.extract_strided_slice %531 {offsets = [0, 0], sizes = [16, 32], strides = [1, 1]} : vector<16x96xf32> to vector<16x32xf32>
    %533 = vector.extract_strided_slice %531 {offsets = [0, 64], sizes = [16, 32], strides = [1, 1]} : vector<16x96xf32> to vector<16x32xf32>
    %c1_306 = arith.constant 1 : index
    %c1_307 = arith.constant 1 : index
    %c0_308 = arith.constant 0 : index
    %c0_309 = arith.constant 0 : index
    %534 = vector.load %arg5[%c1_306, %c1_307, %c0_308, %c0_309] : memref<2x4x32x96xf32, #tpu.memory_space<vmem>>, vector<1x1x32x96xf32>
    %535 = vector.shape_cast %534 : vector<1x1x32x96xf32> to vector<32x96xf32>
    %cst_310 = arith.constant dense<0.000000e+00> : vector<16x96xf32>
    %536 = tpu.matmul %468, %535, %cst_310 {dimension_numbers = #tpu.dot_dimension_numbers<[1], [0], [0], [1], [0, 0, 1, 1], [], []>} : vector<16x32xf32>, vector<32x96xf32>, vector<16x96xf32> -> vector<16x96xf32>
    %c1_311 = arith.constant 1 : index
    %c1_312 = arith.constant 1 : index
    %c0_313 = arith.constant 0 : index
    %c0_314 = arith.constant 0 : index
    %537 = vector.load %arg6[%c1_311, %c1_312, %c0_313, %c0_314] : memref<2x4x1x96xf32, #tpu.memory_space<vmem>>, vector<1x1x1x96xf32>
    %538 = vector.shape_cast %537 : vector<1x1x1x96xf32> to vector<1x96xf32>
    %539 = vector.broadcast %538 : vector<1x96xf32> to vector<16x96xf32>
    %540 = arith.addf %536, %539 : vector<16x96xf32>
    %541 = vector.extract_strided_slice %540 {offsets = [0, 32], sizes = [16, 32], strides = [1, 1]} : vector<16x96xf32> to vector<16x32xf32>
    %c1_315 = arith.constant 1 : index
    %c2_316 = arith.constant 2 : index
    %c0_317 = arith.constant 0 : index
    %c0_318 = arith.constant 0 : index
    %542 = vector.load %arg5[%c1_315, %c2_316, %c0_317, %c0_318] : memref<2x4x32x96xf32, #tpu.memory_space<vmem>>, vector<1x1x32x96xf32>
    %543 = vector.shape_cast %542 : vector<1x1x32x96xf32> to vector<32x96xf32>
    %cst_319 = arith.constant dense<0.000000e+00> : vector<16x96xf32>
    %544 = tpu.matmul %496, %543, %cst_319 {dimension_numbers = #tpu.dot_dimension_numbers<[1], [0], [0], [1], [0, 0, 1, 1], [], []>} : vector<16x32xf32>, vector<32x96xf32>, vector<16x96xf32> -> vector<16x96xf32>
    %c1_320 = arith.constant 1 : index
    %c2_321 = arith.constant 2 : index
    %c0_322 = arith.constant 0 : index
    %c0_323 = arith.constant 0 : index
    %545 = vector.load %arg6[%c1_320, %c2_321, %c0_322, %c0_323] : memref<2x4x1x96xf32, #tpu.memory_space<vmem>>, vector<1x1x1x96xf32>
    %546 = vector.shape_cast %545 : vector<1x1x1x96xf32> to vector<1x96xf32>
    %547 = vector.broadcast %546 : vector<1x96xf32> to vector<16x96xf32>
    %548 = arith.addf %544, %547 : vector<16x96xf32>
    %549 = vector.extract_strided_slice %548 {offsets = [0, 0], sizes = [16, 32], strides = [1, 1]} : vector<16x96xf32> to vector<16x32xf32>
    %550 = vector.extract_strided_slice %548 {offsets = [0, 64], sizes = [16, 32], strides = [1, 1]} : vector<16x96xf32> to vector<16x32xf32>
    %c1_324 = arith.constant 1 : index
    %c3_325 = arith.constant 3 : index
    %c0_326 = arith.constant 0 : index
    %c0_327 = arith.constant 0 : index
    %551 = vector.load %arg5[%c1_324, %c3_325, %c0_326, %c0_327] : memref<2x4x32x96xf32, #tpu.memory_space<vmem>>, vector<1x1x32x96xf32>
    %552 = vector.shape_cast %551 : vector<1x1x32x96xf32> to vector<32x96xf32>
    %cst_328 = arith.constant dense<0.000000e+00> : vector<16x96xf32>
    %553 = tpu.matmul %524, %552, %cst_328 {dimension_numbers = #tpu.dot_dimension_numbers<[1], [0], [0], [1], [0, 0, 1, 1], [], []>} : vector<16x32xf32>, vector<32x96xf32>, vector<16x96xf32> -> vector<16x96xf32>
    %c1_329 = arith.constant 1 : index
    %c3_330 = arith.constant 3 : index
    %c0_331 = arith.constant 0 : index
    %c0_332 = arith.constant 0 : index
    %554 = vector.load %arg6[%c1_329, %c3_330, %c0_331, %c0_332] : memref<2x4x1x96xf32, #tpu.memory_space<vmem>>, vector<1x1x1x96xf32>
    %555 = vector.shape_cast %554 : vector<1x1x1x96xf32> to vector<1x96xf32>
    %556 = vector.broadcast %555 : vector<1x96xf32> to vector<16x96xf32>
    %557 = arith.addf %553, %556 : vector<16x96xf32>
    %558 = vector.extract_strided_slice %557 {offsets = [0, 0], sizes = [16, 32], strides = [1, 1]} : vector<16x96xf32> to vector<16x32xf32>
    %559 = vector.extract_strided_slice %557 {offsets = [0, 64], sizes = [16, 32], strides = [1, 1]} : vector<16x96xf32> to vector<16x32xf32>
    %cst_333 = arith.constant 0.000000e+00 : f32
    %560 = vector.broadcast %cst_333 : f32 to vector<16x32xf32>
    %c1_334 = arith.constant 1 : index
    %c3_335 = arith.constant 3 : index
    %c0_336 = arith.constant 0 : index
    %c0_337 = arith.constant 0 : index
    %561 = vector.load %arg7[%c1_334, %c3_335, %c0_336, %c0_337] : memref<2x6x32x32xf32, #tpu.memory_space<vmem>>, vector<1x1x32x32xf32>
    %562 = vector.shape_cast %561 : vector<1x1x32x32xf32> to vector<32x32xf32>
    %cst_338 = arith.constant dense<0.000000e+00> : vector<16x32xf32>
    %563 = tpu.matmul %532, %562, %cst_338 {dimension_numbers = #tpu.dot_dimension_numbers<[1], [0], [0], [1], [0, 0, 1, 1], [], []>} : vector<16x32xf32>, vector<32x32xf32>, vector<16x32xf32> -> vector<16x32xf32>
    %c1_339 = arith.constant 1 : index
    %c3_340 = arith.constant 3 : index
    %c0_341 = arith.constant 0 : index
    %c0_342 = arith.constant 0 : index
    %564 = vector.load %arg8[%c1_339, %c3_340, %c0_341, %c0_342] : memref<2x6x32x32xf32, #tpu.memory_space<vmem>>, vector<1x1x32x32xf32>
    %565 = vector.shape_cast %564 : vector<1x1x32x32xf32> to vector<32x32xf32>
    %cst_343 = arith.constant dense<0.000000e+00> : vector<16x32xf32>
    %566 = tpu.matmul %533, %565, %cst_343 {dimension_numbers = #tpu.dot_dimension_numbers<[1], [0], [0], [1], [0, 0, 1, 1], [], []>} : vector<16x32xf32>, vector<32x32xf32>, vector<16x32xf32> -> vector<16x32xf32>
    %c3_344 = arith.constant 3 : index
    %c0_345 = arith.constant 0 : index
    %c0_346 = arith.constant 0 : index
    %567 = vector.load %arg2[%c3_344, %c0_345, %c0_346] : memref<6x16x16xf32, #tpu.memory_space<vmem>>, vector<1x16x16xf32>
    %568 = vector.shape_cast %567 : vector<1x16x16xf32> to vector<16x16xf32>
    %569 = vector.extract_strided_slice %541 {offsets = [0, 0], sizes = [16, 16], strides = [1, 1]} : vector<16x32xf32> to vector<16x16xf32>
    %570 = vector.extract_strided_slice %563 {offsets = [0, 0], sizes = [16, 16], strides = [1, 1]} : vector<16x32xf32> to vector<16x16xf32>
    %571 = vector.extract_strided_slice %566 {offsets = [0, 0], sizes = [16, 16], strides = [1, 1]} : vector<16x32xf32> to vector<16x16xf32>
    %cst_347 = arith.constant dense<0.000000e+00> : vector<16x16xf32>
    %572 = tpu.matmul %569, %570, %cst_347 {dimension_numbers = #tpu.dot_dimension_numbers<[1], [1], [0], [0], [0, 0, 1, 0], [], []>} : vector<16x16xf32>, vector<16x16xf32>, vector<16x16xf32> -> vector<16x16xf32>
    %cst_348 = arith.constant 0.000000e+00 : f32
    %573 = vector.broadcast %cst_348 : f32 to vector<16x16xf32>
    %574 = arith.cmpf ogt, %568, %573 : vector<16x16xf32>
    %cst_349 = arith.constant -1.000000e+30 : f32
    %575 = vector.broadcast %cst_349 : f32 to vector<16x16xf32>
    %576 = arith.select %574, %572, %575 : vector<16x16xi1>, vector<16x16xf32>
    %cst_350 = arith.constant dense<0xFF800000> : vector<16xf32>
    %577 = vector.multi_reduction <maximumf>, %576, %cst_350 [1] : vector<16x16xf32> to vector<16xf32>
    %578 = vector.shape_cast %577 : vector<16xf32> to vector<16x1xf32>
    %579 = vector.broadcast %578 : vector<16x1xf32> to vector<16x16xf32>
    %580 = arith.subf %576, %579 : vector<16x16xf32>
    %581 = math.exp %580 : vector<16x16xf32>
    %582 = arith.mulf %581, %568 : vector<16x16xf32>
    %cst_351 = arith.constant dense<0.000000e+00> : vector<16xf32>
    %583 = vector.multi_reduction <add>, %582, %cst_351 [1] : vector<16x16xf32> to vector<16xf32>
    %584 = vector.shape_cast %583 : vector<16xf32> to vector<16x1xf32>
    %cst_352 = arith.constant 1.000000e-30 : f32
    %585 = vector.broadcast %cst_352 : f32 to vector<16x1xf32>
    %586 = arith.addf %584, %585 : vector<16x1xf32>
    %587 = tpu.reciprocal %586 {approx = true} : vector<16x1xf32> -> vector<16x1xf32>
    %588 = vector.broadcast %587 : vector<16x1xf32> to vector<16x16xf32>
    %589 = arith.mulf %582, %588 : vector<16x16xf32>
    %cst_353 = arith.constant dense<0.000000e+00> : vector<16x16xf32>
    %590 = tpu.matmul %589, %571, %cst_353 {dimension_numbers = #tpu.dot_dimension_numbers<[1], [0], [0], [1], [0, 0, 1, 1], [], []>} : vector<16x16xf32>, vector<16x16xf32>, vector<16x16xf32> -> vector<16x16xf32>
    %591 = vector.extract_strided_slice %541 {offsets = [0, 16], sizes = [16, 16], strides = [1, 1]} : vector<16x32xf32> to vector<16x16xf32>
    %592 = vector.extract_strided_slice %563 {offsets = [0, 16], sizes = [16, 16], strides = [1, 1]} : vector<16x32xf32> to vector<16x16xf32>
    %593 = vector.extract_strided_slice %566 {offsets = [0, 16], sizes = [16, 16], strides = [1, 1]} : vector<16x32xf32> to vector<16x16xf32>
    %cst_354 = arith.constant dense<0.000000e+00> : vector<16x16xf32>
    %594 = tpu.matmul %591, %592, %cst_354 {dimension_numbers = #tpu.dot_dimension_numbers<[1], [1], [0], [0], [0, 0, 1, 0], [], []>} : vector<16x16xf32>, vector<16x16xf32>, vector<16x16xf32> -> vector<16x16xf32>
    %cst_355 = arith.constant 0.000000e+00 : f32
    %595 = vector.broadcast %cst_355 : f32 to vector<16x16xf32>
    %596 = arith.cmpf ogt, %568, %595 : vector<16x16xf32>
    %cst_356 = arith.constant -1.000000e+30 : f32
    %597 = vector.broadcast %cst_356 : f32 to vector<16x16xf32>
    %598 = arith.select %596, %594, %597 : vector<16x16xi1>, vector<16x16xf32>
    %cst_357 = arith.constant dense<0xFF800000> : vector<16xf32>
    %599 = vector.multi_reduction <maximumf>, %598, %cst_357 [1] : vector<16x16xf32> to vector<16xf32>
    %600 = vector.shape_cast %599 : vector<16xf32> to vector<16x1xf32>
    %601 = vector.broadcast %600 : vector<16x1xf32> to vector<16x16xf32>
    %602 = arith.subf %598, %601 : vector<16x16xf32>
    %603 = math.exp %602 : vector<16x16xf32>
    %604 = arith.mulf %603, %568 : vector<16x16xf32>
    %cst_358 = arith.constant dense<0.000000e+00> : vector<16xf32>
    %605 = vector.multi_reduction <add>, %604, %cst_358 [1] : vector<16x16xf32> to vector<16xf32>
    %606 = vector.shape_cast %605 : vector<16xf32> to vector<16x1xf32>
    %cst_359 = arith.constant 1.000000e-30 : f32
    %607 = vector.broadcast %cst_359 : f32 to vector<16x1xf32>
    %608 = arith.addf %606, %607 : vector<16x1xf32>
    %609 = tpu.reciprocal %608 {approx = true} : vector<16x1xf32> -> vector<16x1xf32>
    %610 = vector.broadcast %609 : vector<16x1xf32> to vector<16x16xf32>
    %611 = arith.mulf %604, %610 : vector<16x16xf32>
    %cst_360 = arith.constant dense<0.000000e+00> : vector<16x16xf32>
    %612 = tpu.matmul %611, %593, %cst_360 {dimension_numbers = #tpu.dot_dimension_numbers<[1], [0], [0], [1], [0, 0, 1, 1], [], []>} : vector<16x16xf32>, vector<16x16xf32>, vector<16x16xf32> -> vector<16x16xf32>
    %613 = tpu.concatenate %590, %612 in 1 : vector<16x16xf32>, vector<16x16xf32> -> vector<16x32xf32>
    %614 = arith.addf %560, %613 : vector<16x32xf32>
    %c1_361 = arith.constant 1 : index
    %c4_362 = arith.constant 4 : index
    %c0_363 = arith.constant 0 : index
    %c0_364 = arith.constant 0 : index
    %615 = vector.load %arg7[%c1_361, %c4_362, %c0_363, %c0_364] : memref<2x6x32x32xf32, #tpu.memory_space<vmem>>, vector<1x1x32x32xf32>
    %616 = vector.shape_cast %615 : vector<1x1x32x32xf32> to vector<32x32xf32>
    %cst_365 = arith.constant dense<0.000000e+00> : vector<16x32xf32>
    %617 = tpu.matmul %549, %616, %cst_365 {dimension_numbers = #tpu.dot_dimension_numbers<[1], [0], [0], [1], [0, 0, 1, 1], [], []>} : vector<16x32xf32>, vector<32x32xf32>, vector<16x32xf32> -> vector<16x32xf32>
    %c1_366 = arith.constant 1 : index
    %c4_367 = arith.constant 4 : index
    %c0_368 = arith.constant 0 : index
    %c0_369 = arith.constant 0 : index
    %618 = vector.load %arg8[%c1_366, %c4_367, %c0_368, %c0_369] : memref<2x6x32x32xf32, #tpu.memory_space<vmem>>, vector<1x1x32x32xf32>
    %619 = vector.shape_cast %618 : vector<1x1x32x32xf32> to vector<32x32xf32>
    %cst_370 = arith.constant dense<0.000000e+00> : vector<16x32xf32>
    %620 = tpu.matmul %550, %619, %cst_370 {dimension_numbers = #tpu.dot_dimension_numbers<[1], [0], [0], [1], [0, 0, 1, 1], [], []>} : vector<16x32xf32>, vector<32x32xf32>, vector<16x32xf32> -> vector<16x32xf32>
    %c4_371 = arith.constant 4 : index
    %c0_372 = arith.constant 0 : index
    %c0_373 = arith.constant 0 : index
    %621 = vector.load %arg2[%c4_371, %c0_372, %c0_373] : memref<6x16x16xf32, #tpu.memory_space<vmem>>, vector<1x16x16xf32>
    %622 = vector.shape_cast %621 : vector<1x16x16xf32> to vector<16x16xf32>
    %623 = vector.extract_strided_slice %541 {offsets = [0, 0], sizes = [16, 16], strides = [1, 1]} : vector<16x32xf32> to vector<16x16xf32>
    %624 = vector.extract_strided_slice %617 {offsets = [0, 0], sizes = [16, 16], strides = [1, 1]} : vector<16x32xf32> to vector<16x16xf32>
    %625 = vector.extract_strided_slice %620 {offsets = [0, 0], sizes = [16, 16], strides = [1, 1]} : vector<16x32xf32> to vector<16x16xf32>
    %cst_374 = arith.constant dense<0.000000e+00> : vector<16x16xf32>
    %626 = tpu.matmul %623, %624, %cst_374 {dimension_numbers = #tpu.dot_dimension_numbers<[1], [1], [0], [0], [0, 0, 1, 0], [], []>} : vector<16x16xf32>, vector<16x16xf32>, vector<16x16xf32> -> vector<16x16xf32>
    %cst_375 = arith.constant 0.000000e+00 : f32
    %627 = vector.broadcast %cst_375 : f32 to vector<16x16xf32>
    %628 = arith.cmpf ogt, %622, %627 : vector<16x16xf32>
    %cst_376 = arith.constant -1.000000e+30 : f32
    %629 = vector.broadcast %cst_376 : f32 to vector<16x16xf32>
    %630 = arith.select %628, %626, %629 : vector<16x16xi1>, vector<16x16xf32>
    %cst_377 = arith.constant dense<0xFF800000> : vector<16xf32>
    %631 = vector.multi_reduction <maximumf>, %630, %cst_377 [1] : vector<16x16xf32> to vector<16xf32>
    %632 = vector.shape_cast %631 : vector<16xf32> to vector<16x1xf32>
    %633 = vector.broadcast %632 : vector<16x1xf32> to vector<16x16xf32>
    %634 = arith.subf %630, %633 : vector<16x16xf32>
    %635 = math.exp %634 : vector<16x16xf32>
    %636 = arith.mulf %635, %622 : vector<16x16xf32>
    %cst_378 = arith.constant dense<0.000000e+00> : vector<16xf32>
    %637 = vector.multi_reduction <add>, %636, %cst_378 [1] : vector<16x16xf32> to vector<16xf32>
    %638 = vector.shape_cast %637 : vector<16xf32> to vector<16x1xf32>
    %cst_379 = arith.constant 1.000000e-30 : f32
    %639 = vector.broadcast %cst_379 : f32 to vector<16x1xf32>
    %640 = arith.addf %638, %639 : vector<16x1xf32>
    %641 = tpu.reciprocal %640 {approx = true} : vector<16x1xf32> -> vector<16x1xf32>
    %642 = vector.broadcast %641 : vector<16x1xf32> to vector<16x16xf32>
    %643 = arith.mulf %636, %642 : vector<16x16xf32>
    %cst_380 = arith.constant dense<0.000000e+00> : vector<16x16xf32>
    %644 = tpu.matmul %643, %625, %cst_380 {dimension_numbers = #tpu.dot_dimension_numbers<[1], [0], [0], [1], [0, 0, 1, 1], [], []>} : vector<16x16xf32>, vector<16x16xf32>, vector<16x16xf32> -> vector<16x16xf32>
    %645 = vector.extract_strided_slice %541 {offsets = [0, 16], sizes = [16, 16], strides = [1, 1]} : vector<16x32xf32> to vector<16x16xf32>
    %646 = vector.extract_strided_slice %617 {offsets = [0, 16], sizes = [16, 16], strides = [1, 1]} : vector<16x32xf32> to vector<16x16xf32>
    %647 = vector.extract_strided_slice %620 {offsets = [0, 16], sizes = [16, 16], strides = [1, 1]} : vector<16x32xf32> to vector<16x16xf32>
    %cst_381 = arith.constant dense<0.000000e+00> : vector<16x16xf32>
    %648 = tpu.matmul %645, %646, %cst_381 {dimension_numbers = #tpu.dot_dimension_numbers<[1], [1], [0], [0], [0, 0, 1, 0], [], []>} : vector<16x16xf32>, vector<16x16xf32>, vector<16x16xf32> -> vector<16x16xf32>
    %cst_382 = arith.constant 0.000000e+00 : f32
    %649 = vector.broadcast %cst_382 : f32 to vector<16x16xf32>
    %650 = arith.cmpf ogt, %622, %649 : vector<16x16xf32>
    %cst_383 = arith.constant -1.000000e+30 : f32
    %651 = vector.broadcast %cst_383 : f32 to vector<16x16xf32>
    %652 = arith.select %650, %648, %651 : vector<16x16xi1>, vector<16x16xf32>
    %cst_384 = arith.constant dense<0xFF800000> : vector<16xf32>
    %653 = vector.multi_reduction <maximumf>, %652, %cst_384 [1] : vector<16x16xf32> to vector<16xf32>
    %654 = vector.shape_cast %653 : vector<16xf32> to vector<16x1xf32>
    %655 = vector.broadcast %654 : vector<16x1xf32> to vector<16x16xf32>
    %656 = arith.subf %652, %655 : vector<16x16xf32>
    %657 = math.exp %656 : vector<16x16xf32>
    %658 = arith.mulf %657, %622 : vector<16x16xf32>
    %cst_385 = arith.constant dense<0.000000e+00> : vector<16xf32>
    %659 = vector.multi_reduction <add>, %658, %cst_385 [1] : vector<16x16xf32> to vector<16xf32>
    %660 = vector.shape_cast %659 : vector<16xf32> to vector<16x1xf32>
    %cst_386 = arith.constant 1.000000e-30 : f32
    %661 = vector.broadcast %cst_386 : f32 to vector<16x1xf32>
    %662 = arith.addf %660, %661 : vector<16x1xf32>
    %663 = tpu.reciprocal %662 {approx = true} : vector<16x1xf32> -> vector<16x1xf32>
    %664 = vector.broadcast %663 : vector<16x1xf32> to vector<16x16xf32>
    %665 = arith.mulf %658, %664 : vector<16x16xf32>
    %cst_387 = arith.constant dense<0.000000e+00> : vector<16x16xf32>
    %666 = tpu.matmul %665, %647, %cst_387 {dimension_numbers = #tpu.dot_dimension_numbers<[1], [0], [0], [1], [0, 0, 1, 1], [], []>} : vector<16x16xf32>, vector<16x16xf32>, vector<16x16xf32> -> vector<16x16xf32>
    %667 = tpu.concatenate %644, %666 in 1 : vector<16x16xf32>, vector<16x16xf32> -> vector<16x32xf32>
    %668 = arith.addf %614, %667 : vector<16x32xf32>
    %c1_388 = arith.constant 1 : index
    %c5_389 = arith.constant 5 : index
    %c0_390 = arith.constant 0 : index
    %c0_391 = arith.constant 0 : index
    %669 = vector.load %arg7[%c1_388, %c5_389, %c0_390, %c0_391] : memref<2x6x32x32xf32, #tpu.memory_space<vmem>>, vector<1x1x32x32xf32>
    %670 = vector.shape_cast %669 : vector<1x1x32x32xf32> to vector<32x32xf32>
    %cst_392 = arith.constant dense<0.000000e+00> : vector<16x32xf32>
    %671 = tpu.matmul %558, %670, %cst_392 {dimension_numbers = #tpu.dot_dimension_numbers<[1], [0], [0], [1], [0, 0, 1, 1], [], []>} : vector<16x32xf32>, vector<32x32xf32>, vector<16x32xf32> -> vector<16x32xf32>
    %c1_393 = arith.constant 1 : index
    %c5_394 = arith.constant 5 : index
    %c0_395 = arith.constant 0 : index
    %c0_396 = arith.constant 0 : index
    %672 = vector.load %arg8[%c1_393, %c5_394, %c0_395, %c0_396] : memref<2x6x32x32xf32, #tpu.memory_space<vmem>>, vector<1x1x32x32xf32>
    %673 = vector.shape_cast %672 : vector<1x1x32x32xf32> to vector<32x32xf32>
    %cst_397 = arith.constant dense<0.000000e+00> : vector<16x32xf32>
    %674 = tpu.matmul %559, %673, %cst_397 {dimension_numbers = #tpu.dot_dimension_numbers<[1], [0], [0], [1], [0, 0, 1, 1], [], []>} : vector<16x32xf32>, vector<32x32xf32>, vector<16x32xf32> -> vector<16x32xf32>
    %c5_398 = arith.constant 5 : index
    %c0_399 = arith.constant 0 : index
    %c0_400 = arith.constant 0 : index
    %675 = vector.load %arg2[%c5_398, %c0_399, %c0_400] : memref<6x16x16xf32, #tpu.memory_space<vmem>>, vector<1x16x16xf32>
    %676 = vector.shape_cast %675 : vector<1x16x16xf32> to vector<16x16xf32>
    %677 = vector.extract_strided_slice %541 {offsets = [0, 0], sizes = [16, 16], strides = [1, 1]} : vector<16x32xf32> to vector<16x16xf32>
    %678 = vector.extract_strided_slice %671 {offsets = [0, 0], sizes = [16, 16], strides = [1, 1]} : vector<16x32xf32> to vector<16x16xf32>
    %679 = vector.extract_strided_slice %674 {offsets = [0, 0], sizes = [16, 16], strides = [1, 1]} : vector<16x32xf32> to vector<16x16xf32>
    %cst_401 = arith.constant dense<0.000000e+00> : vector<16x16xf32>
    %680 = tpu.matmul %677, %678, %cst_401 {dimension_numbers = #tpu.dot_dimension_numbers<[1], [1], [0], [0], [0, 0, 1, 0], [], []>} : vector<16x16xf32>, vector<16x16xf32>, vector<16x16xf32> -> vector<16x16xf32>
    %cst_402 = arith.constant 0.000000e+00 : f32
    %681 = vector.broadcast %cst_402 : f32 to vector<16x16xf32>
    %682 = arith.cmpf ogt, %676, %681 : vector<16x16xf32>
    %cst_403 = arith.constant -1.000000e+30 : f32
    %683 = vector.broadcast %cst_403 : f32 to vector<16x16xf32>
    %684 = arith.select %682, %680, %683 : vector<16x16xi1>, vector<16x16xf32>
    %cst_404 = arith.constant dense<0xFF800000> : vector<16xf32>
    %685 = vector.multi_reduction <maximumf>, %684, %cst_404 [1] : vector<16x16xf32> to vector<16xf32>
    %686 = vector.shape_cast %685 : vector<16xf32> to vector<16x1xf32>
    %687 = vector.broadcast %686 : vector<16x1xf32> to vector<16x16xf32>
    %688 = arith.subf %684, %687 : vector<16x16xf32>
    %689 = math.exp %688 : vector<16x16xf32>
    %690 = arith.mulf %689, %676 : vector<16x16xf32>
    %cst_405 = arith.constant dense<0.000000e+00> : vector<16xf32>
    %691 = vector.multi_reduction <add>, %690, %cst_405 [1] : vector<16x16xf32> to vector<16xf32>
    %692 = vector.shape_cast %691 : vector<16xf32> to vector<16x1xf32>
    %cst_406 = arith.constant 1.000000e-30 : f32
    %693 = vector.broadcast %cst_406 : f32 to vector<16x1xf32>
    %694 = arith.addf %692, %693 : vector<16x1xf32>
    %695 = tpu.reciprocal %694 {approx = true} : vector<16x1xf32> -> vector<16x1xf32>
    %696 = vector.broadcast %695 : vector<16x1xf32> to vector<16x16xf32>
    %697 = arith.mulf %690, %696 : vector<16x16xf32>
    %cst_407 = arith.constant dense<0.000000e+00> : vector<16x16xf32>
    %698 = tpu.matmul %697, %679, %cst_407 {dimension_numbers = #tpu.dot_dimension_numbers<[1], [0], [0], [1], [0, 0, 1, 1], [], []>} : vector<16x16xf32>, vector<16x16xf32>, vector<16x16xf32> -> vector<16x16xf32>
    %699 = vector.extract_strided_slice %541 {offsets = [0, 16], sizes = [16, 16], strides = [1, 1]} : vector<16x32xf32> to vector<16x16xf32>
    %700 = vector.extract_strided_slice %671 {offsets = [0, 16], sizes = [16, 16], strides = [1, 1]} : vector<16x32xf32> to vector<16x16xf32>
    %701 = vector.extract_strided_slice %674 {offsets = [0, 16], sizes = [16, 16], strides = [1, 1]} : vector<16x32xf32> to vector<16x16xf32>
    %cst_408 = arith.constant dense<0.000000e+00> : vector<16x16xf32>
    %702 = tpu.matmul %699, %700, %cst_408 {dimension_numbers = #tpu.dot_dimension_numbers<[1], [1], [0], [0], [0, 0, 1, 0], [], []>} : vector<16x16xf32>, vector<16x16xf32>, vector<16x16xf32> -> vector<16x16xf32>
    %cst_409 = arith.constant 0.000000e+00 : f32
    %703 = vector.broadcast %cst_409 : f32 to vector<16x16xf32>
    %704 = arith.cmpf ogt, %676, %703 : vector<16x16xf32>
    %cst_410 = arith.constant -1.000000e+30 : f32
    %705 = vector.broadcast %cst_410 : f32 to vector<16x16xf32>
    %706 = arith.select %704, %702, %705 : vector<16x16xi1>, vector<16x16xf32>
    %cst_411 = arith.constant dense<0xFF800000> : vector<16xf32>
    %707 = vector.multi_reduction <maximumf>, %706, %cst_411 [1] : vector<16x16xf32> to vector<16xf32>
    %708 = vector.shape_cast %707 : vector<16xf32> to vector<16x1xf32>
    %709 = vector.broadcast %708 : vector<16x1xf32> to vector<16x16xf32>
    %710 = arith.subf %706, %709 : vector<16x16xf32>
    %711 = math.exp %710 : vector<16x16xf32>
    %712 = arith.mulf %711, %676 : vector<16x16xf32>
    %cst_412 = arith.constant dense<0.000000e+00> : vector<16xf32>
    %713 = vector.multi_reduction <add>, %712, %cst_412 [1] : vector<16x16xf32> to vector<16xf32>
    %714 = vector.shape_cast %713 : vector<16xf32> to vector<16x1xf32>
    %cst_413 = arith.constant 1.000000e-30 : f32
    %715 = vector.broadcast %cst_413 : f32 to vector<16x1xf32>
    %716 = arith.addf %714, %715 : vector<16x1xf32>
    %717 = tpu.reciprocal %716 {approx = true} : vector<16x1xf32> -> vector<16x1xf32>
    %718 = vector.broadcast %717 : vector<16x1xf32> to vector<16x16xf32>
    %719 = arith.mulf %712, %718 : vector<16x16xf32>
    %cst_414 = arith.constant dense<0.000000e+00> : vector<16x16xf32>
    %720 = tpu.matmul %719, %701, %cst_414 {dimension_numbers = #tpu.dot_dimension_numbers<[1], [0], [0], [1], [0, 0, 1, 1], [], []>} : vector<16x16xf32>, vector<16x16xf32>, vector<16x16xf32> -> vector<16x16xf32>
    %721 = tpu.concatenate %698, %720 in 1 : vector<16x16xf32>, vector<16x16xf32> -> vector<16x32xf32>
    %722 = arith.addf %668, %721 : vector<16x32xf32>
    %723 = arith.mulf %722, %722 : vector<16x32xf32>
    %724 = arith.mulf %722, %723 : vector<16x32xf32>
    %cst_415 = arith.constant 4.471500e-02 : f32
    %725 = vector.broadcast %cst_415 : f32 to vector<16x32xf32>
    %726 = arith.mulf %725, %724 : vector<16x32xf32>
    %727 = arith.addf %722, %726 : vector<16x32xf32>
    %cst_416 = arith.constant 0.797884583 : f32
    %728 = vector.broadcast %cst_416 : f32 to vector<16x32xf32>
    %729 = arith.mulf %728, %727 : vector<16x32xf32>
    %730 = math.tanh %729 : vector<16x32xf32>
    %cst_417 = arith.constant 1.000000e+00 : f32
    %731 = vector.broadcast %cst_417 : f32 to vector<16x32xf32>
    %732 = arith.addf %731, %730 : vector<16x32xf32>
    %cst_418 = arith.constant 5.000000e-01 : f32
    %733 = vector.broadcast %cst_418 : f32 to vector<16x32xf32>
    %734 = arith.mulf %733, %732 : vector<16x32xf32>
    %735 = arith.mulf %722, %734 : vector<16x32xf32>
    %c1_419 = arith.constant 1 : index
    %c1_420 = arith.constant 1 : index
    %c0_421 = arith.constant 0 : index
    %c0_422 = arith.constant 0 : index
    %736 = vector.load %arg9[%c1_419, %c1_420, %c0_421, %c0_422] : memref<2x4x32x32xf32, #tpu.memory_space<vmem>>, vector<1x1x32x32xf32>
    %737 = vector.shape_cast %736 : vector<1x1x32x32xf32> to vector<32x32xf32>
    %cst_423 = arith.constant dense<0.000000e+00> : vector<16x32xf32>
    %738 = tpu.matmul %735, %737, %cst_423 {dimension_numbers = #tpu.dot_dimension_numbers<[1], [0], [0], [1], [0, 0, 1, 1], [], []>} : vector<16x32xf32>, vector<32x32xf32>, vector<16x32xf32> -> vector<16x32xf32>
    %c1_424 = arith.constant 1 : index
    %c1_425 = arith.constant 1 : index
    %c0_426 = arith.constant 0 : index
    %c0_427 = arith.constant 0 : index
    %739 = vector.load %arg10[%c1_424, %c1_425, %c0_426, %c0_427] : memref<2x4x1x32xf32, #tpu.memory_space<vmem>>, vector<1x1x1x32xf32>
    %740 = vector.shape_cast %739 : vector<1x1x1x32xf32> to vector<1x32xf32>
    %741 = vector.broadcast %740 : vector<1x32xf32> to vector<16x32xf32>
    %742 = arith.addf %738, %741 : vector<16x32xf32>
    %743 = vector.extract_strided_slice %44 {offsets = [1, 1], sizes = [1, 1], strides = [1, 1]} : vector<2x4xf32> to vector<1x1xf32>
    %744 = vector.broadcast %743 : vector<1x1xf32> to vector<16x32xf32>
    %745 = arith.mulf %744, %742 : vector<16x32xf32>
    %cst_428 = arith.constant 1.000000e+00 : f32
    %746 = vector.broadcast %cst_428 : f32 to vector<1x1xf32>
    %747 = arith.subf %746, %743 : vector<1x1xf32>
    %748 = vector.broadcast %747 : vector<1x1xf32> to vector<16x32xf32>
    %749 = arith.mulf %748, %468 : vector<16x32xf32>
    %750 = arith.addf %745, %749 : vector<16x32xf32>
    %c0_429 = arith.constant 0 : index
    %c0_430 = arith.constant 0 : index
    %751 = vector.load %arg12[%c0_429, %c0_430] : memref<32x8xf32, #tpu.memory_space<vmem>>, vector<32x8xf32>
    %cst_431 = arith.constant dense<0.000000e+00> : vector<16x8xf32>
    %752 = tpu.matmul %750, %751, %cst_431 {dimension_numbers = #tpu.dot_dimension_numbers<[1], [0], [0], [1], [0, 0, 1, 1], [], []>} : vector<16x32xf32>, vector<32x8xf32>, vector<16x8xf32> -> vector<16x8xf32>
    %c0_432 = arith.constant 0 : index
    %c0_433 = arith.constant 0 : index
    %753 = vector.load %arg13[%c0_432, %c0_433] : memref<1x8xf32, #tpu.memory_space<vmem>>, vector<1x8xf32>
    %754 = vector.broadcast %753 : vector<1x8xf32> to vector<16x8xf32>
    %755 = arith.addf %752, %754 : vector<16x8xf32>
    %c0_434 = arith.constant 0 : index
    %c0_435 = arith.constant 0 : index
    %756 = vector.load %arg14[%c0_434, %c0_435] : memref<16x8xf32, #tpu.memory_space<vmem>>, vector<16x8xf32>
    tpu.vector_store %arg14[%c0_434, %c0_435], %755 {strides = array<i32>} : memref<16x8xf32, #tpu.memory_space<vmem>>, vector<16x8xf32>,
    return
  }
  func.func @transform_0(%arg0: i32) -> (i32, i32, i32) {
    %c0_i32 = arith.constant 0 : i32
    %c0_i32_0 = arith.constant 0 : i32
    %c0_i32_1 = arith.constant 0 : i32
    %c0_i32_2 = arith.constant 0 : i32
    return %c0_i32, %c0_i32_0, %c0_i32_1 : i32, i32, i32
  }
  func.func @transform_1(%arg0: i32) -> (i32, i32, i32) {
    %c0_i32 = arith.constant 0 : i32
    %c0_i32_0 = arith.constant 0 : i32
    %c0_i32_1 = arith.constant 0 : i32
    %c0_i32_2 = arith.constant 0 : i32
    return %c0_i32, %c0_i32_0, %c0_i32_1 : i32, i32, i32
  }
  func.func @transform_2(%arg0: i32) -> (i32, i32, i32) {
    %c0_i32 = arith.constant 0 : i32
    %c0_i32_0 = arith.constant 0 : i32
    %c0_i32_1 = arith.constant 0 : i32
    %c0_i32_2 = arith.constant 0 : i32
    return %c0_i32, %c0_i32_0, %c0_i32_1 : i32, i32, i32
  }
  func.func @transform_3(%arg0: i32) -> (i32, i32, i32) {
    %c0_i32 = arith.constant 0 : i32
    %c0_i32_0 = arith.constant 0 : i32
    %c0_i32_1 = arith.constant 0 : i32
    %c0_i32_2 = arith.constant 0 : i32
    return %c0_i32, %c0_i32_0, %c0_i32_1 : i32, i32, i32
  }
  func.func @transform_4(%arg0: i32) -> (i32, i32, i32, i32) {
    %c0_i32 = arith.constant 0 : i32
    %c0_i32_0 = arith.constant 0 : i32
    %c0_i32_1 = arith.constant 0 : i32
    %c0_i32_2 = arith.constant 0 : i32
    %c0_i32_3 = arith.constant 0 : i32
    return %c0_i32, %c0_i32_0, %c0_i32_1, %c0_i32_2 : i32, i32, i32, i32
  }
  func.func @transform_5(%arg0: i32) -> (i32, i32, i32, i32) {
    %c0_i32 = arith.constant 0 : i32
    %c0_i32_0 = arith.constant 0 : i32
    %c0_i32_1 = arith.constant 0 : i32
    %c0_i32_2 = arith.constant 0 : i32
    %c0_i32_3 = arith.constant 0 : i32
    return %c0_i32, %c0_i32_0, %c0_i32_1, %c0_i32_2 : i32, i32, i32, i32
  }
  func.func @transform_6(%arg0: i32) -> (i32, i32, i32, i32) {
    %c0_i32 = arith.constant 0 : i32
    %c0_i32_0 = arith.constant 0 : i32
    %c0_i32_1 = arith.constant 0 : i32
    %c0_i32_2 = arith.constant 0 : i32
    %c0_i32_3 = arith.constant 0 : i32
    return %c0_i32, %c0_i32_0, %c0_i32_1, %c0_i32_2 : i32, i32, i32, i32
  }
  func.func @transform_7(%arg0: i32) -> (i32, i32, i32, i32) {
    %c0_i32 = arith.constant 0 : i32
    %c0_i32_0 = arith.constant 0 : i32
    %c0_i32_1 = arith.constant 0 : i32
    %c0_i32_2 = arith.constant 0 : i32
    %c0_i32_3 = arith.constant 0 : i32
    return %c0_i32, %c0_i32_0, %c0_i32_1, %c0_i32_2 : i32, i32, i32, i32
  }
  func.func @transform_8(%arg0: i32) -> (i32, i32, i32, i32) {
    %c0_i32 = arith.constant 0 : i32
    %c0_i32_0 = arith.constant 0 : i32
    %c0_i32_1 = arith.constant 0 : i32
    %c0_i32_2 = arith.constant 0 : i32
    %c0_i32_3 = arith.constant 0 : i32
    return %c0_i32, %c0_i32_0, %c0_i32_1, %c0_i32_2 : i32, i32, i32, i32
  }
  func.func @transform_9(%arg0: i32) -> (i32, i32, i32, i32) {
    %c0_i32 = arith.constant 0 : i32
    %c0_i32_0 = arith.constant 0 : i32
    %c0_i32_1 = arith.constant 0 : i32
    %c0_i32_2 = arith.constant 0 : i32
    %c0_i32_3 = arith.constant 0 : i32
    return %c0_i32, %c0_i32_0, %c0_i32_1, %c0_i32_2 : i32, i32, i32, i32
  }
  func.func @transform_10(%arg0: i32) -> (i32, i32) {
    %c0_i32 = arith.constant 0 : i32
    %c0_i32_0 = arith.constant 0 : i32
    %c0_i32_1 = arith.constant 0 : i32
    return %c0_i32, %c0_i32_0 : i32, i32
  }
  func.func @transform_11(%arg0: i32) -> (i32, i32) {
    %c0_i32 = arith.constant 0 : i32
    %c0_i32_0 = arith.constant 0 : i32
    %c0_i32_1 = arith.constant 0 : i32
    return %c0_i32, %c0_i32_0 : i32, i32
  }
  func.func @transform_12(%arg0: i32) -> (i32, i32) {
    %c0_i32 = arith.constant 0 : i32
    %c0_i32_0 = arith.constant 0 : i32
    %c0_i32_1 = arith.constant 0 : i32
    return %c0_i32, %c0_i32_0 : i32, i32
  }
  func.func @transform_13(%arg0: i32) -> (i32, i32) {
    %c0_i32 = arith.constant 0 : i32
    %c0_i32_0 = arith.constant 0 : i32
    %c0_i32_1 = arith.constant 0 : i32
    return %c0_i32, %c0_i32_0 : i32, i32
  }
}

</mosaic_0001>

<bundles_post_ra>
// kernel: tpu_custom_call.1
= control target key start
LH: loop header
LB: loop body
LE: loop exit
PB: predicated region body
PF: predicated region fallthrough
CT: control target
= control target key end

     0   :  { %18 = vsyncpa [#allocation3], 0  ;;  %s5330_s0 = inlined_call_operand.hbm [shape: f32[4,16,16], index: 0, kind: input, shape index: {}]   ;;  %s5331_s1 = inlined_call_operand.hbm [shape: f32[6,16,16], index: 1, kind: input, shape index: {}]   ;;  %s5332_s2 = inlined_call_operand.hbm [shape: f32[4,16,32], index: 2, kind: input, shape index: {}]   ;;  %s5333_s3 = inlined_call_operand.vmem [shape: f32[4,1,32], index: 3, kind: input, shape index: {}]   ;;  %s5334_s4 = inlined_call_operand.hbm [shape: f32[2,4,32,96], index: 4, kind: input, shape index: {}]   ;;  %s5335_s5 = inlined_call_operand.vmem [shape: f32[2,4,1,96], index: 5, kind: input, shape index: {}]   ;;  %s5336_s6 = inlined_call_operand.hbm [shape: f32[2,6,32,32], index: 6, kind: input, shape index: {}]   ;;  %s5337_s7 = inlined_call_operand.hbm [shape: f32[2,6,32,32], index: 7, kind: input, shape index: {}]   ;;  %s5338_s8 = inlined_call_operand.hbm [shape: f32[2,4,32,32], index: 8, kind: input, shape index: {}]   ;;  %s5339_s9 = inlined_call_operand.vmem [shape: f32[2,4,1,32], index: 9, kind: input, shape index: {}]   ;;  %s5340_s10 = inlined_call_operand.vmem [shape: f32[2,4], index: 10, kind: input, shape index: {}]   ;;  %s5341_s11 = inlined_call_operand.vmem [shape: f32[32,8], index: 11, kind: input, shape index: {}]   ;;  %s5342_s12 = inlined_call_operand.vmem [shape: f32[1,8], index: 12, kind: input, shape index: {}]   ;;  %s5343_s13 = inlined_call_operand.vmem [shape: f32[16,8], index: 13, kind: output, shape index: {}]  }
   0x1   :  { %19 = vsyncpa [#allocation5], 0 }
   0x2   :  { %20 = vsyncpa [#allocation8], 0 }
   0x3   :  { %21 = vsyncpa [#allocation11], 0  ;;  %s39_s27 = sshll.u32 %s5331_s1, 4  ;;  %s4142_s28 = smov [#allocation4]   ;;  %s40_s27 = int_to_ptr.hbm [resolvable:$true] %s39_s27 }
   0x4   :  { %s41_s29 = sshll.u32 %s4142_s28, 4  ;;  %s67_s15 = sshll.u32 %s5334_s4, 4  ;;  %s42_s29 = int_to_ptr.vmem [resolvable:$true] %s41_s29  ;;  %s68_s15 = int_to_ptr.hbm [resolvable:$true] %s67_s15 }
   0x5   :  { %s4143_s16 = smov 128   ;;  %s4144_s17 = smov 8  }
   0x6   :  { %47 = dma.hbm_to_vmem [thread:$0]  %s40_s27, 1536, %s42_s29, [#allocation5], %s4143_s16, %s4143_s16, %s4144_s17  }
   0x7   :  { %s4145_s18 = smov [#allocation7]   ;;  %s95_s1 = sshll.u32 %s5337_s7, 4  ;;  %s96_s1 = int_to_ptr.hbm [resolvable:$true] %s95_s1 }
   0x8   :  { %s69_s19 = sshll.u32 %s4145_s18, 4  ;;  %s26_s23 = sshll.u32 %s5330_s0, 4  ;;  %s70_s19 = int_to_ptr.vmem [resolvable:$true] %s69_s19  ;;  %s27_s23 = int_to_ptr.hbm [resolvable:$true] %s26_s23 }
   0x9   :  { %75 = dma.hbm_to_vmem [thread:$0]  %s68_s15, 4096, %s70_s19, [#allocation8], %s4143_s16, %s4143_s16, %s4144_s17  }
   0xa   :  { %s4146_s24 = smov [#allocation10]   ;;  %s4147_s26 = smov [#allocation2]  }
   0xb   :  { %s97_s25 = sshll.u32 %s4146_s24, 4  ;;  %s28_s7 = sshll.u32 %s4147_s26, 4  ;;  %s98_s25 = int_to_ptr.vmem [resolvable:$true] %s97_s25  ;;  %s29_s7 = int_to_ptr.vmem [resolvable:$true] %s28_s7 }
   0xc   :  { %103 = dma.hbm_to_vmem [thread:$0]  %s96_s1, 6144, %s98_s25, [#allocation11], %s4143_s16, %s4143_s16, %s4144_s17  }
   0xd   :  { %s52_s29 = sshll.u32 %s5332_s2, 4  ;;  %s82_s14 = sshll.u32 %s5336_s6, 4  ;;  %s53_s29 = int_to_ptr.hbm [resolvable:$true] %s52_s29  ;;  %s83_s14 = int_to_ptr.hbm [resolvable:$true] %s82_s14 }
   0xe   :  { %34 = dma.hbm_to_vmem [thread:$0]  %s27_s23, 1024, %s29_s7, [#allocation3], %s4143_s16, %s4143_s16, %s4144_s17  }
   0xf   :  { %s4148_s15 = smov [#allocation6]   ;;  %s4149_s19 = smov [#allocation9]  }
  0x10   :  { %s54_s18 = sshll.u32 %s4148_s15, 4  ;;  %s84_s2 = sshll.u32 %s4149_s19, 4  ;;  %s55_s18 = int_to_ptr.vmem [resolvable:$true] %s54_s18  ;;  %s85_s2 = int_to_ptr.vmem [resolvable:$true] %s84_s2 }
  0x11   :  { %60 = dma.hbm_to_vmem [thread:$0]  %s53_s29, 1024, %s55_s18, [#allocation5], %s4143_s16, %s4143_s16, %s4144_s17  }
  0x12   :  { %s108_s1 = sshll.u32 %s5338_s8, 4  ;;  %s4150_s6 = smov [#allocation12]   ;;  %s109_s1 = int_to_ptr.hbm [resolvable:$true] %s108_s1 }
  0x13   :  { %90 = dma.hbm_to_vmem [thread:$0]  %s83_s14, 6144, %s85_s2, [#allocation8], %s4143_s16, %s4143_s16, %s4144_s17  }
  0x14   :  { %s110_s4 = sshll.u32 %s4150_s6, 4  ;;  %s111_s4 = int_to_ptr.vmem [resolvable:$true] %s110_s4 }
  0x15   :  { %116 = dma.hbm_to_vmem [thread:$0]  %s109_s1, 4096, %s111_s4, [#allocation11], %s4143_s16, %s4143_s16, %s4144_s17  }
  0x16   :  { %4134 = dma.done.wait [#allocation3], 1024  }
  0x17   :  { %4135 = vsyncadd [#allocation3], 4294966272 }
  0x18   :  { %4136 = dma.done.wait [#allocation5], 2560  }
  0x19   :  { %4137 = vsyncadd [#allocation5], 4294964736 }
  0x1a   :  { %4138 = dma.done.wait [#allocation8], 10240  }
  0x1b   :  { %4139 = vsyncadd [#allocation8], 4294957056 }
  0x1c   :  { %4140 = dma.done.wait [#allocation11], 10240  }
  0x1d   :  { %4141 = vsyncadd [#allocation11], 4294957056  ;;  %v198_v0 = vld [vmem:[#allocation6 + $0x18] sm:$0xff]  ;;  %v197_v1 = vld [vmem:[#allocation6 + $0x10] sm:$0xff]  ;;  %vm161_vm0 = vcmask 130048   ;;  %vm328_vm1 = vcmask 261120  }
  0x1e   :  { %224 = vmatpush.msra.mxu1 %v198_v0  ;;  %v194_v2 = vld [vmem:[#allocation2 + $0x10] sm:$0xff]  ;;  %v156_v3 = vld [vmem:[#allocation6 + $0x8] sm:$0xff]  ;;  %v155_v4 = vld [vmem:[#allocation6] sm:$0xff]  ;;  %s4151_s0 = smov 64   ;;  %s4152_s30 = smov 96   ;;  %vm3489_vm14 = vcmask 64512  }
  0x1f   :  { %182 = vmatpush.msra.mxu0 %v156_v3  ;;  %v153_v5 = vld [vmem:[#allocation2] sm:$0xff]  ;;  %v362_v8 = vld [vmem:[#allocation7 + $0x38] sm:$0xff]  ;;  %v154_v10 = vld [vmem:[#allocation2 + $0x8] sm:$0xff]  ;;  %s4153_s14 = smov 80   ;;  %s4154_s15 = smov 112  }
  0x20   :  { %v319_v6 = vld [vmem:[%s5340_s10] sm:$0x3]  ;;  %225 = vmatpush.msra.mxu1 %v197_v1  ;;  %v195_v9 = vld [vmem:[#allocation2 + $0x18] sm:$0xff]  ;;  %v361_v11 = vld [vmem:[#allocation7 + $0x30] sm:$0xff]  ;;  %s4155_s1 = smov 16   ;;  %s4156_s6 = smov 127  }
  0x21   :  { %3694 = vpush %v319_v6  ;;  %v4274_v7 = vsub.f32 1.0, %v319_v6  ;;  %3503 = vmatmul.msk.f32.vlgmr.msra.gmra.mxu1 %vm161_vm0, %v194_v2  ;;  %183 = vmatpush.msra.mxu0 %v155_v4  ;;  %v360_v12 = vld [vmem:[#allocation7 + $0x28] sm:$0xff]  ;;  %v359_v13 = vld [vmem:[#allocation7 + $0x20] sm:$0xff]  ;;  %v323_v14 = vld [vmem:[#allocation7 + $0x18] sm:$0xff]  ;;  %s4157_s4 = smov 125   ;;  %s4158_s25 = smov 126  }
  0x22   :  { %3500 = vmatmul.msk.f32.vlgmr.msra.gmra.mxu0 %vm161_vm0, %v153_v5  ;;  %386 = vmatpush.msrb.mxu1 %v362_v8  ;;  %v322_v15 = vld [vmem:[#allocation7 + $0x10] sm:$0xff]  ;;  %v321_v16 = vld [vmem:[#allocation7 + $0x8] sm:$0xff]  ;;  %v320_v17 = vld [vmem:[#allocation7] sm:$0xff] }
  0x23   :  { %3696 = vpush %v4274_v7  ;;  %347 = vmatpush.msrb.mxu0 %v323_v14  ;;  %v240_v18 = vld [vmem:[#allocation6 + $0x28] sm:$0xff]  ;;  %v239_v19 = vld [vmem:[#allocation6 + $0x20] sm:$0xff]  ;;  %v478_v21 = vld [vmem:[#allocation9 + $0x18] sm:$0xff] }
  0x24   :  { %387 = vmatpush.msrb.mxu1 %v361_v11  ;;  %266 = vmatpush.msra.mxu2 %v240_v18  ;;  %v236_v20 = vld [vmem:[#allocation2 + $0x20] sm:$0xff]  ;;  %v477_v22 = vld [vmem:[#allocation9 + $0x10] sm:$0xff]  ;;  %v237_v23 = vld [vmem:[#allocation2 + $0x28] sm:$0xff] }
  0x25   :  { %348 = vmatpush.msrb.mxu0 %v322_v15  ;;  %v3776_v24 = vld [vmem:[%s5333_s3 + $0x1] ss:$0 sm:$0xff]  ;;  %v3777_v25 = vld [vmem:[%s5333_s3] ss:$0 sm:$0xff]  ;;  %v476_v38 = vld [vmem:[#allocation9 + $0x8] sm:$0xff] }
  0x26   :  { %388 = vmatpush.msrb.mxu1 %v360_v12  ;;  %267 = vmatpush.msra.mxu2 %v239_v19  ;;  %v475_v39 = vld [vmem:[#allocation9] sm:$0xff]  ;;  %v401_v40 = vld [vmem:[#allocation7 + $0x58] sm:$0xff]  ;;  %v400_v43 = vld [vmem:[#allocation7 + $0x50] sm:$0xff] }
  0x27   :  { %349 = vmatpush.msrb.mxu0 %v321_v16  ;;  %3506 = vmatmul.msk.f32.vlgmr.msra.gmra.mxu2 %vm161_vm0, %v236_v20  ;;  %v3780_v41 = vld [vmem:[%s5333_s3 + $0x2] ss:$0 sm:$0xff]  ;;  %v511_v44 = vld [vmem:[#allocation10 + $0x18] sm:$0xff]  ;;  %v399_v46 = vld [vmem:[#allocation7 + $0x48] sm:$0xff] }
  0x28   :  { %389 = vmatpush.msrb.mxu1 %v359_v13  ;;  %425 = vmatpush.msrb.mxu2 %v401_v40  ;;  %v510_v47 = vld [vmem:[#allocation10 + $0x10] sm:$0xff]  ;;  %v509_v48 = vld [vmem:[#allocation10 + $0x8] sm:$0xff]  ;;  %v398_v50 = vld [vmem:[#allocation7 + $0x40] sm:$0xff] }
  0x29   :  { %3504 = vmatmul.msk.f32.gmra.mxu1 %vm161_vm0, %v195_v9  ;;  %350 = vmatpush.msrb.mxu0 %v320_v17  ;;  %v508_v51 = vld [vmem:[#allocation10] sm:$0xff]  ;;  %v282_v4 = vld [vmem:[#allocation6 + $0x38] sm:$0xff]  ;;  %v281_v5 = vld [vmem:[#allocation6 + $0x30] sm:$0xff] }
  0x2a   :  { %3501 = vmatmul.msk.f32.gmra.mxu0 %vm161_vm0, %v154_v10  ;;  %532 = vmatpush.msra.mxu1 %v511_v44  ;;  %v3778_v53 = vld [vmem:[%s5335_s5 + $0x1] ss:$0 sm:$0xff]  ;;  %v3779_v55 = vld [vmem:[%s5335_s5] ss:$0 sm:$0xff]  ;;  %v278_v6 = vld [vmem:[#allocation2 + $0x30] sm:$0xff] }
  0x2b   :  { %497 = vmatpush.msra.mxu0 %v478_v21  ;;  %426 = vmatpush.msrb.mxu2 %v400_v43  ;;  %v279_v10 = vld [vmem:[#allocation2 + $0x38] sm:$0xff]  ;;  %v3781_v13 = vld [vmem:[%s5335_s5 + $0x2] ss:$0 sm:$0xff]  ;;  %v762_v14 = vld [vmem:[#allocation9 + $0x30] sm:$0xff] }
  0x2c   :  { %533 = vmatpush.msra.mxu1 %v510_v47  ;;  %308 = vmatpush.msra.mxu3 %v282_v4  ;;  %v763_v11 = vld [vmem:[#allocation9 + $0x38] sm:$0xff]  ;;  %v761_v15 = vld [vmem:[#allocation9 + $0x28] sm:$0xff]  ;;  %v760_v18 = vld [vmem:[#allocation9 + $0x20] sm:$0xff] }
  0x2d   :  { %498 = vmatpush.msra.mxu0 %v477_v22  ;;  %427 = vmatpush.msrb.mxu2 %v399_v46  ;;  %v440_v21 = vld [vmem:[#allocation7 + $0x78] sm:$0xff]  ;;  %v439_v22 = vld [vmem:[#allocation7 + $0x70] sm:$0xff]  ;;  %v4408_v43 = vld [vmem:[#allocation4] sm:$0xff] }
  0x2e   :  { %534 = vmatpush.msra.mxu1 %v509_v48  ;;  %309 = vmatpush.msra.mxu3 %v281_v5  ;;  %vm584_vm2 = vcmp.gt.f32.partialorder %v4408_v43, 0.0  ;;  %v1035_v4 = vld [vmem:[#allocation9 + $0x50] sm:$0xff]  ;;  %v1034_v5 = vld [vmem:[#allocation9 + $0x48] sm:$0xff] }
  0x2f   :  { %3507 = vmatmul.msk.f32.gmra.mxu2 %vm161_vm0, %v237_v23  ;;  %499 = vmatpush.msra.mxu0 %v476_v38  ;;  %v438_v23 = vld [vmem:[#allocation7 + $0x68] sm:$0xff] }
  0x30   :  { %428 = vmatpush.msrb.mxu2 %v398_v50  ;;  %535 = vmatpush.msra.mxu1 %v508_v51  ;;  %v4416_v51 = vld [vmem:[#allocation4 + $0x8] sm:$0xff] }
  0x31   :  { %500 = vmatpush.msra.mxu0 %v475_v39  ;;  %3509 = vmatmul.msk.f32.vlgmr.msra.gmra.mxu3 %vm161_vm0, %v278_v6  ;;  %v3782_v39 = vld [vmem:[%s5333_s3 + $0x3] ss:$0 sm:$0xff]  ;;  %vm585_vm3 = vcmp.gt.f32.partialorder %v4416_v51, 0.0 }
  0x32   :  { %464 = vmatpush.msrb.mxu3 %v440_v21  ;;  %v1033_v6 = vld [vmem:[#allocation9 + $0x40] sm:$0xff] }
  0x34   :  { %465 = vmatpush.msrb.mxu3 %v439_v22 }
  0x36   :  { %466 = vmatpush.msrb.mxu3 %v438_v23 }
  0x39   :  { %3510 = vmatmul.msk.f32.gmra.mxu3 %vm161_vm0, %v279_v10 }
  0x52   :  { %s3695_s8 = spop %3694 }
  0x54   :  { %s3697_s22 = spop %3696 }
  0x9e   :  { %v227_v26 = vpop.f32.mrf.mxu1 }
  0x9f   :  { %v4289_v27 = vadd.f32 %v3776_v24, %v227_v26  ;;  %v185_v28 = vpop.f32.mrf.mxu0 }
  0xa0   :  { %v4291_v29 = vadd.f32 %v3777_v25, %v185_v28 }
  0xa1   :  { %v233_v30 = vmax.f32 %v4289_v27, 0.0 }
  0xa2   :  { %v191_v31 = vmax.f32 %v4291_v29, 0.0  ;;  %v3958_v29 = vld [vmem:[%s5340_s10] sm:$0x3] }
  0xa3   :  { %3514 = vmatmul.msk.f32.vlgmr.msrb.gmra.mxu1 %vm328_vm1, %v233_v30 }
  0xa4   :  { %3511 = vmatmul.msk.f32.vlgmr.msrb.gmra.mxu0 %vm328_vm1, %v191_v31 }
  0xa6   :  { %v230_v32 = vpop.f32.mrf.mxu1 }
  0xa7   :  { %v4301_v33 = vadd.f32 %v3776_v24, %v230_v32  ;;  %v188_v34 = vpop.f32.mrf.mxu0  ;;  %v437_v24 = vld [vmem:[#allocation7 + $0x60] sm:$0xff] }
  0xa8   :  { %v4303_v35 = vadd.f32 %v3777_v25, %v188_v34  ;;  %467 = vmatpush.msrb.mxu3 %v437_v24 }
  0xa9   :  { %v234_v36 = vmax.f32 %v4301_v33, 0.0 }
  0xaa   :  { %v192_v37 = vmax.f32 %v4303_v35, 0.0  ;;  %v269_v42 = vpop.f32.mrf.mxu2  ;;  %v2570_v35 = vld [vmem:[#allocation9 + $0x130] sm:$0xff] }
  0xab   :  { %3515 = vmatmul.msk.f32.gmra.mxu1 %vm328_vm1, %v234_v36  ;;  %v4316_v45 = vadd.f32 %v3780_v41, %v269_v42 }
  0xac   :  { %3512 = vmatmul.msk.f32.gmra.mxu0 %vm328_vm1, %v192_v37 }
  0xad   :  { %v275_v49 = vmax.f32 %v4316_v45, 0.0 }
  0xaf   :  { %3517 = vmatmul.msk.f32.vlgmr.msrb.gmra.mxu2 %vm328_vm1, %v275_v49 }
  0xb2   :  { %v272_v52 = vpop.f32.mrf.mxu2 }
  0xb3   :  { %v4325_v54 = vadd.f32 %v3780_v41, %v272_v52 }
  0xb4   :  { %v311_v40 = vpop.f32.mrf.mxu3 }
  0xb5   :  { %v276_v57 = vmax.f32 %v4325_v54, 0.0  ;;  %v4402_v41 = vadd.f32 %v3782_v39, %v311_v40  ;;  %v3791_v54 = vld [vmem:[%s5335_s5 + $0x5] ss:$0 sm:$0xff] }
  0xb7   :  { %3518 = vmatmul.msk.f32.gmra.mxu2 %vm328_vm1, %v276_v57  ;;  %v317_v42 = vmax.f32 %v4402_v41, 0.0  ;;  %v2602_v41 = vld [vmem:[#allocation10 + $0x120] sm:$0xff] }
  0xb9   :  { %3520 = vmatmul.msk.f32.vlgmr.msrb.gmra.mxu3 %vm328_vm1, %v317_v42 }
  0xbc   :  { %v314_v46 = vpop.f32.mrf.mxu3 }
  0xbd   :  { %v4413_v48 = vadd.f32 %v3782_v39, %v314_v46  ;;  %v4458_v46 = vld [vmem:[#allocation4 + $0x18] sm:$0xff] }
  0xbe   :  { %vm858_vm4 = vcmp.gt.f32.partialorder %v4458_v46, 0.0 }
  0xbf   :  { %v318_v52 = vmax.f32 %v4413_v48, 0.0  ;;  %v2853_v48 = vld [vmem:[#allocation9 + $0x158] sm:$0xff] }
  0xc1   :  { %3521 = vmatmul.msk.f32.gmra.mxu3 %vm328_vm1, %v318_v52 }
 0x120   :  { %v391_v56 = vpop.f32.mrf.mxu1 }
 0x121   :  { %v4331_v58 = vadd.f32 %v3778_v53, %v391_v56  ;;  %v352_v59 = vpop.f32.mrf.mxu0 }
 0x122   :  { %v4333_v60 = vadd.f32 %v3779_v55, %v352_v59 }
 0x123   :  { %512 = vrot.lane.b32.xlu1 %v4331_v58, %s4151_s0  ;;  %3522 = vmatmul.msk.f32.vlgmr.msra.gmra.mxu0 %vm328_vm1, %v4331_v58 }
 0x124   :  { %547 = vrot.lane.b32.xlu0 %v4333_v60, %s4152_s30 }
 0x128   :  { %v394_v61 = vpop.f32.mrf.mxu1 }
 0x129   :  { %v4344_v62 = vadd.f32 %v3778_v53, %v394_v61  ;;  %v355_v63 = vpop.f32.mrf.mxu0 }
 0x12a   :  { %v4346_v0 = vadd.f32 %v3779_v55, %v355_v63  ;;  %v1036_v63 = vld [vmem:[#allocation9 + $0x58] sm:$0xff] }
 0x12b   :  { %514 = vrot.lane.b32.xlu1 %v4344_v62, %s4151_s0  ;;  %3523 = vmatmul.msk.f32.gmra.mxu0 %vm328_vm1, %v4344_v62 }
 0x12c   :  { %549 = vrot.lane.b32.xlu0 %v4346_v0, %s4152_s30 }
 0x132   :  { %v430_v9 = vpop.f32.mrf.mxu2 }
 0x133   :  { %645 = vrot.lane.b32.xlu1 %v4346_v0, %s4153_s14  ;;  %v4380_v19 = vadd.f32 %v3781_v13, %v430_v9 }
 0x134   :  { %643 = vrot.lane.b32.xlu0 %v4333_v60, %s4153_s14 }
 0x13a   :  { %v433_v16 = vpop.f32.mrf.mxu2 }
 0x13b   :  { %v4376_v17 = vadd.f32 %v3781_v13, %v433_v16 }
 0x13c   :  { %v469_v39 = vpop.f32.mrf.mxu3 }
 0x13d   :  { %822 = vrot.lane.b32.xlu0 %v4376_v17, %s4152_s30 }
 0x195   :  { %v4358_v1 = vpop.permute.xlu1 %512 }
 0x196   :  { %3524 = vmatmul.msk.f32.vlgmr.msra.gmra.mxu1 %vm328_vm1, %v4358_v1  ;;  %v548_v12 = vpop.permute.xlu0 %547 }
 0x19d   :  { %v4362_v2 = vpop.permute.xlu1 %514 }
 0x19e   :  { %3525 = vmatmul.msk.f32.gmra.mxu1 %vm328_vm1, %v4362_v2  ;;  %v550_v20 = vpop.permute.xlu0 %549 }
 0x1a0   :  { %v502_v3 = vpop.f32.mrf.mxu0 }
 0x1a5   :  { %v646_v34 = vpop.permute.xlu1 %645 }
 0x1a6   :  { %v644_v28 = vpop.permute.xlu0 %643 }
 0x1a8   :  { %v505_v8 = vpop.f32.mrf.mxu0 }
 0x1a9   :  { %649 = vrot.lane.b32.xlu2 %v505_v8, %s4154_s15  ;;  %3526 = vmatpush.xpose.msk.msra.mxu2 %vm161_vm0, %v505_v8 }
 0x1ad   :  { %3527 = vmatpush.xpose.msk.msra.mxu2 %vm161_vm0, %v502_v3 }
 0x1af   :  { %v823_v8 = vpop.permute.xlu0 %822 }
 0x1b0   :  { %3528 = vmatmul.msk.f32.vlgmr.msra.gmra.mxu2 %vm161_vm0, %v548_v12 }
 0x1b1   :  { %776 = vmatpush.msrb.mxu2 %v763_v11  ;;  %647 = vrot.lane.b32.xlu2 %v502_v3, %s4154_s15 }
 0x1b3   :  { %777 = vmatpush.msrb.mxu2 %v762_v14 }
 0x1b5   :  { %778 = vmatpush.msrb.mxu2 %v761_v15 }
 0x1b7   :  { %779 = vmatpush.msrb.mxu2 %v760_v18 }
 0x1b8   :  { %3529 = vmatmul.msk.f32.gmra.mxu2 %vm161_vm0, %v550_v20 }
 0x1b9   :  { %820 = vrot.lane.b32.xlu2 %v4380_v19, %s4152_s30 }
 0x1c0   :  { %3538 = vmatmul.msk.f32.vlgmr.msrb.gmra.mxu2 %vm328_vm1, %v4331_v58 }
 0x1c8   :  { %3539 = vmatmul.msk.f32.gmra.mxu2 %vm328_vm1, %v4344_v62 }
 0x203   :  { %v650_v25 = vpop.permute.xlu2 %649 }
 0x204   :  { %3532 = vmatpush.xpose.msk.msrb.mxu0 %vm161_vm0, %v650_v25 }
 0x20b   :  { %v648_v26 = vpop.permute.xlu2 %647 }
 0x20c   :  { %3533 = vmatpush.xpose.msk.msrb.mxu0 %vm161_vm0, %v648_v26 }
 0x20f   :  { %3534 = vmatmul.msk.f32.vlgmr.msrb.gmra.mxu0 %vm161_vm0, %v644_v28 }
 0x213   :  { %v4392_v32 = vpop.f32.mrf.mxu1  ;;  %v821_v3 = vpop.permute.xlu2 %820 }
 0x217   :  { %3535 = vmatmul.msk.f32.gmra.mxu0 %vm161_vm0, %v646_v34  ;;  %v3783_v34 = vld [vmem:[%s5335_s5 + $0x3] ss:$0 sm:$0xff] }
 0x21b   :  { %v4395_v38 = vpop.f32.mrf.mxu1 }
 0x21c   :  { %634 = vmatpush.msra.mxu3 %v4395_v38 }
 0x21e   :  { %635 = vmatpush.msra.mxu3 %v4392_v32 }
 0x233   :  { %v578_v44 = vpop.f32.mrf.mxu2 }
 0x234   :  { %v586_v47 = vsel %vm584_vm2, %v578_v44, -1e+30  ;;  %v4456_v44 = vadd.f32 %v3783_v34, %v469_v39 }
 0x235   :  { %v588_v50 = vsel %vm161_vm0, %v586_v47, -inf }
 0x236   :  { %589 = vmax.xlane.f32.xlu1 %v588_v50 }
 0x23b   :  { %v581_v53 = vpop.f32.mrf.mxu2 }
 0x23c   :  { %v587_v55 = vsel %vm585_vm3, %v581_v53, -1e+30  ;;  %v472_v53 = vpop.f32.mrf.mxu3 }
 0x23d   :  { %v591_v56 = vsel %vm161_vm0, %v587_v55, -inf }
 0x23e   :  { %592 = vmax.xlane.f32.xlu2 %v591_v56  ;;  %v4470_v56 = vadd.f32 %v3783_v34, %v472_v53  ;;  %v1307_v53 = vld [vmem:[#allocation9 + $0x68] sm:$0xff] }
 0x243   :  { %v781_v59 = vpop.f32.mrf.mxu2 }
 0x24b   :  { %v784_v61 = vpop.f32.mrf.mxu2 }
 0x24c   :  { %3542 = vmatpush.xpose.msk.msra.mxu0 %vm161_vm0, %v784_v61 }
 0x24f   :  { %922 = vrot.lane.b32.xlu1 %v784_v61, %s4154_s15  ;;  %v3731_v61 = vpack.i.bf16 %v4392_v32, %v4395_v38 }
 0x250   :  { %3543 = vmatpush.xpose.msk.msra.mxu0 %vm161_vm0, %v781_v59 }
 0x253   :  { %3544 = vmatmul.msk.f32.vlgmr.msra.gmra.mxu0 %vm161_vm0, %v821_v3 }
 0x254   :  { %1049 = vmatpush.msrb.mxu0 %v1036_v63 }
 0x256   :  { %1050 = vmatpush.msrb.mxu0 %v1035_v4  ;;  %v4485_v4 = vld [vmem:[#allocation4 + $0x10] sm:$0xff] }
 0x257   :  { %918 = vrot.lane.b32.xlu1 %v4376_v17, %s4153_s14  ;;  %vm857_vm5 = vcmp.gt.f32.partialorder %v4485_v4, 0.0 }
 0x258   :  { %1051 = vmatpush.msrb.mxu0 %v1034_v5 }
 0x25a   :  { %1052 = vmatpush.msrb.mxu0 %v1033_v6 }
 0x25b   :  { %3545 = vmatmul.msk.f32.gmra.mxu0 %vm161_vm0, %v823_v8 }
 0x263   :  { %3554 = vmatmul.msk.f32.vlgmr.msrb.gmra.mxu0 %vm328_vm1, %v4331_v58 }
 0x26b   :  { %3555 = vmatmul.msk.f32.gmra.mxu0 %vm328_vm1, %v4344_v62 }
 0x28c   :  { %v676_v9 = vpop.f32.mrf.mxu0 }
 0x28d   :  { %v682_v10 = vsel %vm584_vm2, %v676_v9, -1e+30 }
 0x28e   :  { %v684_v11 = vsel %vm161_vm0, %v682_v10, -inf }
 0x28f   :  { %685 = vmax.xlane.f32.xlu1 %v684_v11 }
 0x294   :  { %v679_v28 = vpop.f32.mrf.mxu0 }
 0x295   :  { %v4479_v63 = vsel %vm585_vm3, %v679_v28, -1e+30 }
 0x296   :  { %v687_v3 = vsel %vm161_vm0, %v4479_v63, -inf }
 0x2a9   :  { %v590_v12 = vpop.xlane.xlu1 %589 }
 0x2aa   :  { %v594_v13 = vsub.f32 %v586_v47, %v590_v12  ;;  %v791_v12 = vld [vmem:[#allocation10 + $0x38] sm:$0xff] }
 0x2ab   :  { %804 = vmatpush.msrb.mxu3 %v791_v12 }
 0x2ac   :  { %v596_v14 = vmul.f32 1.442695, %v594_v13  ;;  %v790_v13 = vld [vmem:[#allocation10 + $0x30] sm:$0xff] }
 0x2ad   :  { %805 = vmatpush.msrb.mxu3 %v790_v13 }
 0x2ae   :  { %3794 = vpow2.f32 %v596_v14  ;;  %v789_v14 = vld [vmem:[#allocation10 + $0x28] sm:$0xff] }
 0x2af   :  { %806 = vmatpush.msrb.mxu3 %v789_v14 }
 0x2b1   :  { %v593_v15 = vpop.xlane.xlu2 %592 }
 0x2b2   :  { %v595_v16 = vsub.f32 %v587_v55, %v593_v15  ;;  %v788_v15 = vld [vmem:[#allocation10 + $0x20] sm:$0xff] }
 0x2b3   :  { %807 = vmatpush.msrb.mxu3 %v788_v15 }
 0x2b4   :  { %v3795_v18 = vpop.eup %3794  ;;  %v598_v20 = vmul.f32 1.442695, %v595_v16 }
 0x2b5   :  { %v4441_v21 = vmul.f32 %v3795_v18, %v4408_v43 }
 0x2b6   :  { %3796 = vpow2.f32 %v598_v20 }
 0x2b7   :  { %v602_v22 = vsel %vm161_vm0, %v4441_v21, 0.0 }
 0x2b8   :  { %603 = vadd.xlane.f32.xlu0 %v602_v22 }
 0x2bc   :  { %v3797_v23 = vpop.eup %3796 }
 0x2bd   :  { %v4446_v24 = vmul.f32 %v3797_v23, %v4416_v51 }
 0x2bf   :  { %v605_v25 = vsel %vm161_vm0, %v4446_v24, 0.0 }
 0x2c0   :  { %606 = vadd.xlane.f32.xlu2 %v605_v25 }
 0x2c1   :  { %v923_v26 = vpop.permute.xlu1 %922 }
 0x2c2   :  { %3548 = vmatpush.xpose.msk.msra.mxu2 %vm161_vm0, %v923_v26 }
 0x2cc   :  { %916 = vrot.lane.b32.xlu0 %v4380_v19, %s4153_s14 }
 0x2d0   :  { %v851_v40 = vpop.f32.mrf.mxu0 }
 0x2d1   :  { %v4492_v6 = vsel %vm857_vm5, %v851_v40, -1e+30 }
 0x2d2   :  { %v861_v8 = vsel %vm161_vm0, %v4492_v6, -inf }
 0x2d4   :  { %1093 = vrot.lane.b32.xlu0 %v4456_v44, %s4152_s30 }
 0x2d8   :  { %920 = vrot.lane.b32.xlu2 %v781_v59, %s4154_s15  ;;  %v854_v47 = vpop.f32.mrf.mxu0  ;;  %v919_v59 = vpop.permute.xlu1 %918 }
 0x2d9   :  { %v4466_v50 = vsel %vm858_vm4, %v854_v47, -1e+30  ;;  %v1309_v47 = vld [vmem:[#allocation9 + $0x78] sm:$0xff] }
 0x2da   :  { %v864_v55 = vsel %vm161_vm0, %v4466_v50, -inf }
 0x2db   :  { %865 = vmax.xlane.f32.xlu1 %v864_v55  ;;  %v1306_v55 = vld [vmem:[#allocation9 + $0x60] sm:$0xff] }
 0x2e0   :  { %1095 = vrot.lane.b32.xlu2 %v4470_v56, %s4152_s30  ;;  %v4501_v20 = vpop.f32.mrf.mxu0 }
 0x2e8   :  { %v1057_v34 = vpop.f32.mrf.mxu0 }
 0x2f4   :  { %3732 = vrot.lane.b32.xlu1 %v3731_v61, %s4154_s15 }
 0x2fc   :  { %1189 = vrot.lane.b32.xlu1 %v4456_v44, %s4153_s14 }
 0x2fe   :  { %688 = vmax.xlane.f32.xlu0 %v687_v3 }
 0x302   :  { %v686_v5 = vpop.xlane.xlu1 %685 }
 0x303   :  { %v690_v32 = vsub.f32 %v682_v10, %v686_v5 }
 0x304   :  { %1376 = vrot.lane.b32.xlu1 %v4331_v58, %s4152_s30 }
 0x305   :  { %v692_v38 = vmul.f32 1.442695, %v690_v32 }
 0x307   :  { %3798 = vpow2.f32 %v692_v38 }
 0x309   :  { %862 = vmax.xlane.f32.xlu2 %v861_v8 }
 0x30d   :  { %v3799_v9 = vpop.eup %3798 }
 0x30e   :  { %v4497_v11 = vmul.f32 %v3799_v9, %v4408_v43 }
 0x310   :  { %v698_v10 = vsel %vm161_vm0, %v4497_v11, 0.0 }
 0x311   :  { %699 = vadd.xlane.f32.xlu0 %v698_v10 }
 0x32b   :  { %v604_v16 = vpop.xlane.xlu0 %603 }
 0x32c   :  { %v608_v18 = vadd.f32 1e-30, %v604_v16 }
 0x32e   :  { %3800 = vrcp.f32 %v608_v18 }
 0x333   :  { %v607_v22 = vpop.xlane.xlu2 %606 }
 0x334   :  { %v3801_v43 = vpop.eup %3800  ;;  %v609_v23 = vadd.f32 1e-30, %v607_v22 }
 0x335   :  { %v612_v25 = vmul.f32 %v3801_v43, %v4441_v21  ;;  %v1308_v21 = vld [vmem:[#allocation9 + $0x70] sm:$0xff] }
 0x336   :  { %3802 = vrcp.f32 %v609_v23 }
 0x337   :  { %3530 = vmatmul.msk.f32.vlgmr.msra.gmra.mxu3 %vm161_vm0, %v612_v25 }
 0x33b   :  { %v921_v26 = vpop.permute.xlu2 %920 }
 0x33c   :  { %v3803_v28 = vpop.eup %3802  ;;  %3549 = vmatpush.xpose.msk.msra.mxu2 %vm161_vm0, %v921_v26 }
 0x33d   :  { %v613_v39 = vmul.f32 %v3803_v28, %v4446_v24 }
 0x33e   :  { %v917_v40 = vpop.permute.xlu0 %916 }
 0x33f   :  { %3531 = vmatmul.msk.f32.gmra.mxu3 %vm161_vm0, %v613_v39  ;;  %3550 = vmatmul.msk.f32.vlgmr.msra.gmra.mxu2 %vm161_vm0, %v917_v40 }
 0x340   :  { %3558 = vmatpush.xpose.msk.msrb.mxu2 %vm161_vm0, %v1057_v34 }
 0x343   :  { %v1096_v61 = vpop.permute.xlu2 %1095 }
 0x344   :  { %3559 = vmatpush.xpose.msk.msrb.mxu2 %vm161_vm0, %v4501_v20 }
 0x346   :  { %v1094_v24 = vpop.permute.xlu0 %1093 }
 0x347   :  { %3540 = vmatmul.msk.f32.vlgmr.msrb.gmra.mxu3 %vm328_vm1, %v4358_v1  ;;  %3551 = vmatmul.msk.f32.gmra.mxu2 %vm161_vm0, %v919_v59 }
 0x348   :  { %1326 = vmatpush.msra.mxu2 %v1309_v47 }
 0x34a   :  { %1327 = vmatpush.msra.mxu2 %v1308_v21 }
 0x34c   :  { %1328 = vmatpush.msra.mxu2 %v1307_v53 }
 0x34e   :  { %1329 = vmatpush.msra.mxu2 %v1306_v55  ;;  %v866_v3 = vpop.xlane.xlu1 %865 }
 0x34f   :  { %3541 = vmatmul.msk.f32.gmra.mxu3 %vm328_vm1, %v4362_v2  ;;  %3560 = vmatmul.msk.f32.vlgmr.msrb.gmra.mxu2 %vm161_vm0, %v1094_v24  ;;  %v868_v8 = vsub.f32 %v4466_v50, %v866_v3 }
 0x351   :  { %v871_v12 = vmul.f32 1.442695, %v868_v8 }
 0x357   :  { %3561 = vmatmul.msk.f32.gmra.mxu2 %vm161_vm0, %v1096_v61  ;;  %v4566_v61 = vld [vmem:[#allocation4 + $0x20] sm:$0xff] }
 0x358   :  { %vm1130_vm6 = vcmp.gt.f32.partialorder %v4566_v61, 0.0 }
 0x35f   :  { %3570 = vmatmul.msk.f32.vlgmr.msra.gmra.mxu2 %vm328_vm1, %v4333_v60 }
 0x366   :  { %v3733_v5 = vpop.permute.xlu1 %3732 }
 0x367   :  { %v3734_v32 = vunpack.i.l.bf16 %v3733_v5  ;;  %3571 = vmatmul.msk.f32.gmra.mxu2 %vm328_vm1, %v4346_v0  ;;  %v3735_v59 = vunpack.i.h.bf16 %v3733_v5 }
 0x369   :  { %738 = vmatpush.msrb.mxu1 %v3734_v32 }
 0x36b   :  { %739 = vmatpush.msrb.mxu1 %v3735_v59  ;;  %v4573_v59 = vld [vmem:[#allocation4 + $0x28] sm:$0xff] }
 0x36c   :  { %vm1131_vm7 = vcmp.gt.f32.partialorder %v4573_v59, 0.0 }
 0x371   :  { %v689_v38 = vpop.xlane.xlu0 %688 }
 0x372   :  { %v691_v9 = vsub.f32 %v4479_v63, %v689_v38 }
 0x374   :  { %v694_v10 = vmul.f32 1.442695, %v691_v9 }
 0x376   :  { %3804 = vpow2.f32 %v694_v10 }
 0x377   :  { %3806 = vpow2.f32 %v871_v12 }
 0x37c   :  { %v3805_v13 = vpop.eup %3804  ;;  %v863_v14 = vpop.xlane.xlu2 %862 }
 0x37d   :  { %v867_v15 = vsub.f32 %v4492_v6, %v863_v14  ;;  %v4527_v16 = vmul.f32 %v3805_v13, %v4416_v51  ;;  %v3807_v43 = vpop.eup %3806  ;;  %v1064_v14 = vld [vmem:[#allocation10 + $0x58] sm:$0xff] }
 0x37e   :  { %v4532_v50 = vmul.f32 %v3807_v43, %v4458_v46 }
 0x37f   :  { %v869_v18 = vmul.f32 1.442695, %v867_v15  ;;  %v701_v22 = vsel %vm161_vm0, %v4527_v16, 0.0  ;;  %v1063_v15 = vld [vmem:[#allocation10 + $0x50] sm:$0xff] }
 0x380   :  { %702 = vadd.xlane.f32.xlu2 %v701_v22  ;;  %v878_v6 = vsel %vm161_vm0, %v4532_v50, 0.0 }
 0x381   :  { %3808 = vpow2.f32 %v869_v18 }
 0x384   :  { %v700_v63 = vpop.xlane.xlu0 %699 }
 0x385   :  { %v704_v23 = vadd.f32 1e-30, %v700_v63  ;;  %v1062_v63 = vld [vmem:[#allocation10 + $0x48] sm:$0xff] }
 0x387   :  { %v3809_v25 = vpop.eup %3808  ;;  %3810 = vrcp.f32 %v704_v23  ;;  %v1061_v23 = vld [vmem:[#allocation10 + $0x40] sm:$0xff] }
 0x388   :  { %879 = vadd.xlane.f32.xlu2 %v878_v6  ;;  %v4537_v51 = vmul.f32 %v3809_v25, %v4485_v4 }
 0x38a   :  { %v875_v26 = vsel %vm161_vm0, %v4537_v51, 0.0 }
 0x38b   :  { %876 = vadd.xlane.f32.xlu0 %v875_v26 }
 0x38d   :  { %v3811_v28 = vpop.eup %3810 }
 0x38e   :  { %v708_v39 = vmul.f32 %v3811_v28, %v4497_v11 }
 0x390   :  { %3536 = vmatmul.msk.f32.vlgmr.msrb.gmra.mxu1 %vm161_vm0, %v708_v39 }
 0x39f   :  { %1195 = vrot.lane.b32.xlu0 %v1057_v34, %s4154_s15 }
 0x3a0   :  { %1193 = vrot.lane.b32.xlu2 %v4501_v20, %s4154_s15 }
 0x3a7   :  { %1191 = vrot.lane.b32.xlu0 %v4470_v56, %s4153_s14 }
 0x3af   :  { %1378 = vrot.lane.b32.xlu0 %v4344_v62, %s4152_s30 }
 0x3ba   :  { %v4550_v40 = vpop.f32.mrf.mxu3 }
 0x3c2   :  { %v4552_v47 = vpop.f32.mrf.mxu3  ;;  %v949_v21 = vpop.f32.mrf.mxu2 }
 0x3c3   :  { %v4556_v11 = vsel %vm857_vm5, %v949_v21, -1e+30 }
 0x3c4   :  { %v957_v34 = vsel %vm161_vm0, %v4556_v11, -inf }
 0x3c9   :  { %958 = vmax.xlane.f32.xlu2 %v957_v34 }
 0x3ca   :  { %v809_v20 = vpop.f32.mrf.mxu3  ;;  %v952_v53 = vpop.f32.mrf.mxu2 }
 0x3cb   :  { %v4562_v55 = vsel %vm858_vm4, %v952_v53, -1e+30 }
 0x3cc   :  { %v960_v24 = vsel %vm161_vm0, %v4562_v55, -inf }
 0x3cd   :  { %961 = vmax.xlane.f32.xlu1 %v960_v24 }
 0x3d2   :  { %v812_v3 = vpop.f32.mrf.mxu3  ;;  %v1124_v5 = vpop.f32.mrf.mxu2 }
 0x3d3   :  { %907 = vmatpush.msra.mxu1 %v812_v3  ;;  %v4571_v32 = vsel %vm1130_vm6, %v1124_v5, -1e+30  ;;  %v3736_v13 = vpack.i.bf16 %v809_v20, %v812_v3  ;;  %v1592_v5 = vld [vmem:[#allocation9 + $0x98] sm:$0xff] }
 0x3d4   :  { %v1134_v38 = vsel %vm161_vm0, %v4571_v32, -inf }
 0x3d5   :  { %908 = vmatpush.msra.mxu1 %v809_v20 }
 0x3d7   :  { %1077 = vmatpush.msrb.mxu1 %v1064_v14 }
 0x3d9   :  { %1135 = vmax.xlane.f32.xlu0 %v1134_v38  ;;  %1078 = vmatpush.msrb.mxu1 %v1063_v15  ;;  %v1589_v38 = vld [vmem:[#allocation9 + $0x80] sm:$0xff] }
 0x3da   :  { %v1127_v8 = vpop.f32.mrf.mxu2 }
 0x3db   :  { %v4580_v9 = vsel %vm1131_vm7, %v1127_v8, -1e+30  ;;  %1079 = vmatpush.msrb.mxu1 %v1062_v63 }
 0x3dc   :  { %v1137_v10 = vsel %vm161_vm0, %v4580_v9, -inf }
 0x3dd   :  { %1138 = vmax.xlane.f32.xlu2 %v1137_v10  ;;  %1080 = vmatpush.msrb.mxu1 %v1061_v23 }
 0x3e2   :  { %v1331_v12 = vpop.f32.mrf.mxu2 }
 0x3ea   :  { %v1334_v22 = vpop.f32.mrf.mxu2 }
 0x3ed   :  { %3737 = vrot.lane.b32.xlu0 %v3736_v13, %s4154_s15 }
 0x3f3   :  { %v703_v18 = vpop.xlane.xlu2 %702 }
 0x3f4   :  { %v705_v43 = vadd.f32 1e-30, %v703_v18 }
 0x3f5   :  { %1478 = vrot.lane.b32.xlu0 %v1334_v22, %s4154_s15 }
 0x3f6   :  { %3812 = vrcp.f32 %v705_v43 }
 0x3fb   :  { %v880_v39 = vpop.xlane.xlu2 %879 }
 0x3fc   :  { %v3813_v25 = vpop.eup %3812  ;;  %v882_v21 = vadd.f32 1e-30, %v880_v39 }
 0x3fd   :  { %1476 = vrot.lane.b32.xlu0 %v1331_v12, %s4154_s15  ;;  %v709_v6 = vmul.f32 %v3813_v25, %v4527_v16 }
 0x3fe   :  { %v877_v26 = vpop.xlane.xlu0 %876 }
 0x3ff   :  { %v881_v28 = vadd.f32 1e-30, %v877_v26  ;;  %3537 = vmatmul.msk.f32.gmra.mxu1 %vm161_vm0, %v709_v6 }
 0x401   :  { %3814 = vrcp.f32 %v881_v28 }
 0x402   :  { %3816 = vrcp.f32 %v882_v21 }
 0x403   :  { %v1194_v3 = vpop.permute.xlu2 %1193 }
 0x405   :  { %1474 = vrot.lane.b32.xlu0 %v4344_v62, %s4153_s14  ;;  %v1190_v62 = vpop.permute.xlu1 %1189 }
 0x407   :  { %v3815_v34 = vpop.eup %3814 }
 0x408   :  { %v885_v20 = vmul.f32 %v3815_v34, %v4537_v51  ;;  %v3817_v53 = vpop.eup %3816  ;;  %v1590_v51 = vld [vmem:[#allocation9 + $0x88] sm:$0xff] }
 0x409   :  { %v886_v24 = vmul.f32 %v3817_v53, %v4532_v50  ;;  %v1591_v50 = vld [vmem:[#allocation9 + $0x90] sm:$0xff] }
 0x40a   :  { %3546 = vmatmul.msk.f32.vlgmr.msra.gmra.mxu1 %vm161_vm0, %v885_v20 }
 0x40d   :  { %v4605_v10 = vpop.permute.xlu1 %1376 }
 0x411   :  { %v1196_v16 = vpop.permute.xlu0 %1195 }
 0x412   :  { %3547 = vmatmul.msk.f32.gmra.mxu1 %vm161_vm0, %v886_v24  ;;  %3564 = vmatpush.xpose.msk.msra.mxu0 %vm161_vm0, %v1196_v16 }
 0x416   :  { %3565 = vmatpush.xpose.msk.msra.mxu0 %vm161_vm0, %v1194_v3 }
 0x419   :  { %3566 = vmatmul.msk.f32.vlgmr.msra.gmra.mxu0 %vm161_vm0, %v1190_v62  ;;  %v1192_v8 = vpop.permute.xlu0 %1191 }
 0x41a   :  { %3574 = vmatpush.xpose.msk.msrb.mxu0 %vm161_vm0, %v1334_v22  ;;  %3556 = vmatmul.msk.f32.vlgmr.msrb.gmra.mxu1 %vm328_vm1, %v4358_v1 }
 0x41e   :  { %3575 = vmatpush.xpose.msk.msrb.mxu0 %vm161_vm0, %v1331_v12 }
 0x421   :  { %3567 = vmatmul.msk.f32.gmra.mxu0 %vm161_vm0, %v1192_v8  ;;  %v4609_v1 = vpop.permute.xlu0 %1378 }
 0x422   :  { %1609 = vmatpush.msra.mxu0 %v1592_v5  ;;  %3557 = vmatmul.msk.f32.gmra.mxu1 %vm328_vm1, %v4362_v2  ;;  %v4645_v5 = vpop.f32.mrf.mxu1 }
 0x424   :  { %1610 = vmatpush.msra.mxu0 %v1591_v50 }
 0x426   :  { %1611 = vmatpush.msra.mxu0 %v1590_v51 }
 0x428   :  { %1612 = vmatpush.msra.mxu0 %v1589_v38 }
 0x429   :  { %3576 = vmatmul.msk.f32.vlgmr.msrb.gmra.mxu0 %vm161_vm0, %v4605_v10 }
 0x431   :  { %3577 = vmatmul.msk.f32.gmra.mxu0 %vm161_vm0, %v4609_v1 }
 0x439   :  { %3586 = vmatmul.msk.f32.vlgmr.msra.gmra.mxu0 %vm328_vm1, %v4380_v19 }
 0x43c   :  { %v959_v12 = vpop.xlane.xlu2 %958 }
 0x43d   :  { %v963_v13 = vsub.f32 %v4556_v11, %v959_v12 }
 0x43f   :  { %v965_v14 = vmul.f32 1.442695, %v963_v13 }
 0x440   :  { %v962_v15 = vpop.xlane.xlu1 %961 }
 0x441   :  { %3818 = vpow2.f32 %v965_v14  ;;  %v964_v2 = vsub.f32 %v4562_v55, %v962_v15  ;;  %3587 = vmatmul.msk.f32.gmra.mxu0 %vm328_vm1, %v4376_v17 }
 0x443   :  { %v967_v18 = vmul.f32 1.442695, %v964_v2 }
 0x445   :  { %3820 = vpow2.f32 %v967_v18 }
 0x447   :  { %v3819_v22 = vpop.eup %3818 }
 0x448   :  { %v4620_v43 = vmul.f32 %v3819_v22, %v4485_v4 }
 0x44a   :  { %v971_v63 = vsel %vm161_vm0, %v4620_v43, 0.0 }
 0x44b   :  { %v3821_v23 = vpop.eup %3820  ;;  %972 = vadd.xlane.f32.xlu1 %v971_v63 }
 0x44c   :  { %v1136_v11 = vpop.xlane.xlu0 %1135  ;;  %v4625_v25 = vmul.f32 %v3821_v23, %v4458_v46  ;;  %v4678_v23 = vld [vmem:[#allocation4 + $0x38] sm:$0xff] }
 0x44d   :  { %v1140_v55 = vsub.f32 %v4571_v32, %v1136_v11  ;;  %vm1414_vm9 = vcmp.gt.f32.partialorder %v4678_v23, 0.0 }
 0x44e   :  { %v974_v6 = vsel %vm161_vm0, %v4625_v25, 0.0 }
 0x44f   :  { %v1142_v26 = vmul.f32 1.442695, %v1140_v55  ;;  %975 = vadd.xlane.f32.xlu2 %v974_v6 }
 0x450   :  { %v1139_v28 = vpop.xlane.xlu2 %1138 }
 0x451   :  { %3822 = vpow2.f32 %v1142_v26  ;;  %v1141_v4 = vsub.f32 %v4580_v9, %v1139_v28 }
 0x453   :  { %v1144_v39 = vmul.f32 1.442695, %v1141_v4 }
 0x455   :  { %3824 = vpow2.f32 %v1144_v39 }
 0x457   :  { %v3823_v21 = vpop.eup %3822 }
 0x458   :  { %v4632_v34 = vmul.f32 %v3823_v21, %v4566_v61 }
 0x45a   :  { %v1148_v46 = vsel %vm161_vm0, %v4632_v34, 0.0 }
 0x45b   :  { %v3825_v20 = vpop.eup %3824  ;;  %1149 = vadd.xlane.f32.xlu1 %v1148_v46 }
 0x45c   :  { %v4637_v32 = vmul.f32 %v3825_v20, %v4573_v59 }
 0x45e   :  { %v1151_v53 = vsel %vm161_vm0, %v4637_v32, 0.0 }
 0x45f   :  { %1152 = vadd.xlane.f32.xlu2 %v1151_v53  ;;  %v3738_v24 = vpop.permute.xlu0 %3737 }
 0x460   :  { %v3739_v9 = vunpack.i.l.bf16 %v3738_v24  ;;  %v3740_v16 = vunpack.i.h.bf16 %v3738_v24 }
 0x462   :  { %1011 = vmatpush.msra.mxu3 %v3739_v9  ;;  %v1341_v9 = vld [vmem:[#allocation10 + $0x78] sm:$0xff] }
 0x464   :  { %1012 = vmatpush.msra.mxu3 %v3740_v16  ;;  %v1340_v16 = vld [vmem:[#allocation10 + $0x70] sm:$0xff] }
 0x467   :  { %v1479_v3 = vpop.permute.xlu0 %1478 }
 0x468   :  { %3580 = vmatpush.xpose.msk.msrb.mxu2 %vm161_vm0, %v1479_v3  ;;  %v1339_v3 = vld [vmem:[#allocation10 + $0x68] sm:$0xff] }
 0x46f   :  { %v1477_v62 = vpop.permute.xlu0 %1476 }
 0x470   :  { %3581 = vmatpush.xpose.msk.msrb.mxu2 %vm161_vm0, %v1477_v62 }
 0x474   :  { %1342 = vrot.lane.b32.xlu1 %v4333_v60, %s4151_s0 }
 0x477   :  { %1344 = vrot.lane.b32.xlu2 %v4346_v0, %s4151_s0 }
 0x47c   :  { %1472 = vrot.lane.b32.xlu1 %v4331_v58, %s4153_s14  ;;  %v4651_v50 = vpop.f32.mrf.mxu1  ;;  %v4663_v58 = vld [vmem:[#allocation4 + $0x30] sm:$0xff] }
 0x47d   :  { %vm1413_vm8 = vcmp.gt.f32.partialorder %v4663_v58, 0.0 }
 0x487   :  { %v4653_v51 = vpop.f32.mrf.mxu1 }
 0x48f   :  { %v4655_v38 = vpop.f32.mrf.mxu1 }
 0x496   :  { %v1222_v8 = vpop.f32.mrf.mxu0 }
 0x497   :  { %v1082_v12 = vpop.f32.mrf.mxu1  ;;  %v4659_v13 = vsel %vm1130_vm6, %v1222_v8, -1e+30 }
 0x498   :  { %v1230_v0 = vsel %vm161_vm0, %v4659_v13, -inf }
 0x49e   :  { %v1225_v60 = vpop.f32.mrf.mxu0 }
 0x49f   :  { %v1085_v14 = vpop.f32.mrf.mxu1  ;;  %v4667_v15 = vsel %vm1131_vm7, %v1225_v60, -1e+30  ;;  %v1338_v60 = vld [vmem:[#allocation10 + $0x60] sm:$0xff] }
 0x4a0   :  { %1231 = vmax.xlane.f32.xlu2 %v1230_v0  ;;  %1180 = vmatpush.msrb.mxu3 %v1085_v14  ;;  %v1233_v2 = vsel %vm161_vm0, %v4667_v15, -inf  ;;  %v3741_v53 = vpack.i.bf16 %v1082_v12, %v1085_v14 }
 0x4a2   :  { %1181 = vmatpush.msrb.mxu3 %v1082_v12 }
 0x4a6   :  { %v1407_v18 = vpop.f32.mrf.mxu0  ;;  %1234 = vmax.xlane.f32.xlu1 %v1233_v2 }
 0x4a7   :  { %v4674_v22 = vsel %vm1413_vm8, %v1407_v18, -1e+30 }
 0x4a8   :  { %v1417_v63 = vsel %vm161_vm0, %v4674_v22, -inf }
 0x4a9   :  { %1418 = vmax.xlane.f32.xlu0 %v1417_v63 }
 0x4ae   :  { %v1410_v11 = vpop.f32.mrf.mxu0 }
 0x4af   :  { %v4683_v55 = vsel %vm1414_vm9, %v1410_v11, -1e+30 }
 0x4b0   :  { %v1420_v6 = vsel %vm161_vm0, %v4683_v55, -inf }
 0x4b1   :  { %1421 = vmax.xlane.f32.xlu2 %v1420_v6 }
 0x4b6   :  { %v4687_v26 = vpop.f32.mrf.mxu0 }
 0x4be   :  { %v973_v28 = vpop.xlane.xlu1 %972  ;;  %v4689_v4 = vpop.f32.mrf.mxu0 }
 0x4bf   :  { %v977_v39 = vadd.f32 1e-30, %v973_v28  ;;  %3590 = vmatpush.xpose.msk.msra.mxu2 %vm161_vm0, %v4689_v4 }
 0x4c1   :  { %3826 = vrcp.f32 %v977_v39  ;;  %v1858_v39 = vld [vmem:[#allocation9 + $0xb0] sm:$0xff] }
 0x4c2   :  { %v976_v21 = vpop.xlane.xlu2 %975 }
 0x4c3   :  { %v978_v46 = vadd.f32 1e-30, %v976_v21  ;;  %3591 = vmatpush.xpose.msk.msra.mxu2 %vm161_vm0, %v4687_v26 }
 0x4c5   :  { %3828 = vrcp.f32 %v978_v46  ;;  %v1856_v46 = vld [vmem:[#allocation9 + $0xa0] sm:$0xff] }
 0x4c7   :  { %v3827_v20 = vpop.eup %3826 }
 0x4c8   :  { %v981_v24 = vmul.f32 %v3827_v20, %v4620_v43 }
 0x4c9   :  { %3742 = vrot.lane.b32.xlu2 %v3741_v53, %s4154_s15 }
 0x4ca   :  { %3552 = vmatmul.msk.f32.vlgmr.msra.gmra.mxu3 %vm161_vm0, %v981_v24 }
 0x4cb   :  { %1362 = vmatpush.msra.mxu3 %v1341_v9  ;;  %v3829_v62 = vpop.eup %3828 }
 0x4cc   :  { %v982_v2 = vmul.f32 %v3829_v62, %v4625_v25  ;;  %v1859_v25 = vld [vmem:[#allocation9 + $0xb8] sm:$0xff] }
 0x4cd   :  { %1363 = vmatpush.msra.mxu3 %v1340_v16 }
 0x4ce   :  { %v1150_v8 = vpop.xlane.xlu1 %1149 }
 0x4cf   :  { %v1154_v0 = vadd.f32 1e-30, %v1150_v8  ;;  %1364 = vmatpush.msra.mxu3 %v1339_v3 }
 0x4d1   :  { %3830 = vrcp.f32 %v1154_v0  ;;  %1365 = vmatpush.msra.mxu3 %v1338_v60 }
 0x4d2   :  { %v1153_v12 = vpop.xlane.xlu2 %1152  ;;  %3553 = vmatmul.msk.f32.gmra.mxu3 %vm161_vm0, %v982_v2 }
 0x4d3   :  { %v1155_v43 = vadd.f32 1e-30, %v1153_v12 }
 0x4d5   :  { %3832 = vrcp.f32 %v1155_v43 }
 0x4d7   :  { %v3831_v14 = vpop.eup %3830 }
 0x4d8   :  { %v1158_v18 = vmul.f32 %v3831_v14, %v4632_v34  ;;  %v1857_v34 = vld [vmem:[#allocation9 + $0xa8] sm:$0xff] }
 0x4da   :  { %3562 = vmatmul.msk.f32.vlgmr.msrb.gmra.mxu3 %vm161_vm0, %v1158_v18  ;;  %v1345_v21 = vpop.permute.xlu2 %1344 }
 0x4db   :  { %v3833_v63 = vpop.eup %3832 }
 0x4dc   :  { %v1159_v11 = vmul.f32 %v3833_v63, %v4637_v32  ;;  %v4710_v32 = vpop.permute.xlu0 %1474 }
 0x4e2   :  { %3563 = vmatmul.msk.f32.gmra.mxu3 %vm161_vm0, %v1159_v11 }
 0x4e6   :  { %v1343_v6 = vpop.permute.xlu1 %1342 }
 0x4ea   :  { %3572 = vmatmul.msk.f32.vlgmr.msra.gmra.mxu3 %vm328_vm1, %v1343_v6 }
 0x4ee   :  { %v4705_v28 = vpop.permute.xlu1 %1472 }
 0x4ef   :  { %3582 = vmatmul.msk.f32.vlgmr.msrb.gmra.mxu2 %vm161_vm0, %v4705_v28 }
 0x4f0   :  { %1876 = vmatpush.msrb.mxu2 %v1859_v25 }
 0x4f2   :  { %3573 = vmatmul.msk.f32.gmra.mxu3 %vm328_vm1, %v1345_v21  ;;  %1877 = vmatpush.msrb.mxu2 %v1858_v39 }
 0x4f4   :  { %1878 = vmatpush.msrb.mxu2 %v1857_v34 }
 0x4f6   :  { %1879 = vmatpush.msrb.mxu2 %v1856_v46 }
 0x4f7   :  { %3583 = vmatmul.msk.f32.gmra.mxu2 %vm161_vm0, %v4710_v32 }
 0x4ff   :  { %3592 = vmatmul.msk.f32.vlgmr.msra.gmra.mxu2 %vm161_vm0, %v4605_v10 }
 0x507   :  { %3593 = vmatmul.msk.f32.gmra.mxu2 %vm161_vm0, %v4609_v1 }
 0x50f   :  { %3602 = vmatmul.msk.f32.vlgmr.msrb.gmra.mxu2 %vm328_vm1, %v4456_v44 }
 0x513   :  { %v1232_v20 = vpop.xlane.xlu2 %1231 }
 0x514   :  { %v1236_v53 = vsub.f32 %v4659_v13, %v1232_v20 }
 0x516   :  { %v1238_v24 = vmul.f32 1.442695, %v1236_v53 }
 0x517   :  { %3603 = vmatmul.msk.f32.gmra.mxu2 %vm328_vm1, %v4470_v56 }
 0x518   :  { %3834 = vpow2.f32 %v1238_v24 }
 0x519   :  { %v1235_v9 = vpop.xlane.xlu1 %1234 }
 0x51a   :  { %v1237_v16 = vsub.f32 %v4667_v15, %v1235_v9 }
 0x51c   :  { %v1240_v3 = vmul.f32 1.442695, %v1237_v16  ;;  %v1419_v62 = vpop.xlane.xlu0 %1418 }
 0x51d   :  { %v1423_v8 = vsub.f32 %v4674_v22, %v1419_v62 }
 0x51e   :  { %v3835_v60 = vpop.eup %3834  ;;  %3836 = vpow2.f32 %v1240_v3 }
 0x51f   :  { %v1425_v0 = vmul.f32 1.442695, %v1423_v8  ;;  %v4726_v2 = vmul.f32 %v3835_v60, %v4566_v61  ;;  %v4772_v8 = vld [vmem:[#allocation4 + $0x40] sm:$0xff] }
 0x520   :  { %vm1688_vm10 = vcmp.gt.f32.partialorder %v4772_v8, 0.0 }
 0x521   :  { %3838 = vpow2.f32 %v1425_v0  ;;  %v1244_v13 = vsel %vm161_vm0, %v4726_v2, 0.0 }
 0x522   :  { %1245 = vadd.xlane.f32.xlu1 %v1244_v13 }
 0x524   :  { %v3837_v12 = vpop.eup %3836  ;;  %v1422_v43 = vpop.xlane.xlu2 %1421 }
 0x525   :  { %v1424_v14 = vsub.f32 %v4683_v55, %v1422_v43  ;;  %v4732_v15 = vmul.f32 %v3837_v12, %v4573_v59 }
 0x527   :  { %v3839_v18 = vpop.eup %3838  ;;  %v1427_v22 = vmul.f32 1.442695, %v1424_v14  ;;  %v1247_v63 = vsel %vm161_vm0, %v4732_v15, 0.0 }
 0x528   :  { %1248 = vadd.xlane.f32.xlu0 %v1247_v63  ;;  %v4737_v61 = vmul.f32 %v3839_v18, %v4663_v58 }
 0x529   :  { %3840 = vpow2.f32 %v1427_v22 }
 0x52a   :  { %v1431_v11 = vsel %vm161_vm0, %v4737_v61, 0.0 }
 0x52b   :  { %1432 = vadd.xlane.f32.xlu1 %v1431_v11 }
 0x52c   :  { %v3743_v6 = vpop.permute.xlu2 %3742 }
 0x52d   :  { %v3744_v25 = vunpack.i.l.bf16 %v3743_v6  ;;  %v3745_v39 = vunpack.i.h.bf16 %v3743_v6 }
 0x52f   :  { %v3841_v55 = vpop.eup %3840  ;;  %1284 = vmatpush.msra.mxu1 %v3744_v25 }
 0x530   :  { %v4742_v59 = vmul.f32 %v3841_v55, %v4678_v23 }
 0x531   :  { %1285 = vmatpush.msra.mxu1 %v3745_v39  ;;  %v1624_v39 = vld [vmem:[#allocation10 + $0x98] sm:$0xff] }
 0x532   :  { %v1434_v21 = vsel %vm161_vm0, %v4742_v59, 0.0 }
 0x533   :  { %1435 = vadd.xlane.f32.xlu0 %v1434_v21 }
 0x544   :  { %1625 = vrot.lane.b32.xlu1 %v4380_v19, %s4151_s0 }
 0x547   :  { %1627 = vrot.lane.b32.xlu0 %v4376_v17, %s4151_s0 }
 0x54c   :  { %1749 = vrot.lane.b32.xlu1 %v4689_v4, %s4154_s15 }
 0x54d   :  { %v4752_v34 = vpop.f32.mrf.mxu3 }
 0x555   :  { %v4754_v46 = vpop.f32.mrf.mxu3 }
 0x55d   :  { %v4756_v20 = vpop.f32.mrf.mxu3 }
 0x565   :  { %v4758_v53 = vpop.f32.mrf.mxu3 }
 0x56d   :  { %v1367_v24 = vpop.f32.mrf.mxu3 }
 0x572   :  { %v1505_v9 = vpop.f32.mrf.mxu2 }
 0x573   :  { %v4762_v16 = vsel %vm1413_vm8, %v1505_v9, -1e+30  ;;  %v1622_v9 = vld [vmem:[#allocation10 + $0x88] sm:$0xff] }
 0x574   :  { %v1513_v17 = vsel %vm161_vm0, %v4762_v16, -inf }
 0x575   :  { %1514 = vmax.xlane.f32.xlu2 %v1513_v17  ;;  %v1370_v19 = vpop.f32.mrf.mxu3 }
 0x576   :  { %1463 = vmatpush.msrb.mxu1 %v1370_v19  ;;  %v3746_v63 = vpack.i.bf16 %v1367_v24, %v1370_v19 }
 0x578   :  { %1464 = vmatpush.msrb.mxu1 %v1367_v24 }
 0x57a   :  { %v1508_v4 = vpop.f32.mrf.mxu2 }
 0x57b   :  { %v4768_v3 = vsel %vm1414_vm9, %v1508_v4, -1e+30  ;;  %v1621_v4 = vld [vmem:[#allocation10 + $0x80] sm:$0xff] }
 0x57c   :  { %v1516_v62 = vsel %vm161_vm0, %v4768_v3, -inf }
 0x57d   :  { %1517 = vmax.xlane.f32.xlu0 %v1516_v62 }
 0x582   :  { %v1682_v60 = vpop.f32.mrf.mxu2 }
 0x583   :  { %v4777_v0 = vsel %vm1688_vm10, %v1682_v60, -1e+30  ;;  %v4792_v60 = vld [vmem:[#allocation4 + $0x48] sm:$0xff] }
 0x584   :  { %v1692_v13 = vsel %vm161_vm0, %v4777_v0, -inf  ;;  %vm1689_vm11 = vcmp.gt.f32.partialorder %v4792_v60, 0.0 }
 0x585   :  { %1693 = vmax.xlane.f32.xlu1 %v1692_v13 }
 0x58a   :  { %v1685_v12 = vpop.f32.mrf.mxu2 }
 0x58d   :  { %1747 = vrot.lane.b32.xlu2 %v4687_v26, %s4154_s15  ;;  %v1623_v26 = vld [vmem:[#allocation10 + $0x90] sm:$0xff] }
 0x592   :  { %v4783_v43 = vpop.f32.mrf.mxu2 }
 0x593   :  { %2014 = vrot.lane.b32.xlu0 %v4783_v43, %s4154_s15 }
 0x595   :  { %v1246_v14 = vpop.xlane.xlu1 %1245 }
 0x596   :  { %v1250_v18 = vadd.f32 1e-30, %v1246_v14  ;;  %v1691_v14 = vsel %vm1689_vm11, %v1685_v12, -1e+30 }
 0x598   :  { %3842 = vrcp.f32 %v1250_v18 }
 0x59b   :  { %v1249_v22 = vpop.xlane.xlu0 %1248 }
 0x59c   :  { %v1251_v11 = vadd.f32 1e-30, %v1249_v22 }
 0x59e   :  { %v3843_v6 = vpop.eup %3842  ;;  %3844 = vrcp.f32 %v1251_v11  ;;  %3747 = vrot.lane.b32.xlu1 %v3746_v63, %s4154_s15  ;;  %v1433_v55 = vpop.xlane.xlu1 %1432 }
 0x59f   :  { %v1254_v25 = vmul.f32 %v3843_v6, %v4726_v2  ;;  %v1437_v21 = vadd.f32 1e-30, %v1433_v55  ;;  %v1884_v6 = vpop.f32.mrf.mxu2 }
 0x5a1   :  { %3568 = vmatmul.msk.f32.vlgmr.msra.gmra.mxu1 %vm161_vm0, %v1254_v25  ;;  %3846 = vrcp.f32 %v1437_v21 }
 0x5a2   :  { %1645 = vmatpush.msra.mxu1 %v1624_v39 }
 0x5a4   :  { %v3845_v17 = vpop.eup %3844  ;;  %1646 = vmatpush.msra.mxu1 %v1623_v26 }
 0x5a5   :  { %v1255_v19 = vmul.f32 %v3845_v17, %v4732_v15  ;;  %v1695_v15 = vsel %vm161_vm0, %v1691_v14, -inf }
 0x5a6   :  { %1647 = vmatpush.msra.mxu1 %v1622_v9  ;;  %v1436_v24 = vpop.xlane.xlu0 %1435 }
 0x5a7   :  { %v1438_v2 = vadd.f32 1e-30, %v1436_v24  ;;  %v3847_v62 = vpop.eup %3846 }
 0x5a8   :  { %1648 = vmatpush.msra.mxu1 %v1621_v4  ;;  %v1441_v13 = vmul.f32 %v3847_v62, %v4737_v61 }
 0x5a9   :  { %3569 = vmatmul.msk.f32.gmra.mxu1 %vm161_vm0, %v1255_v19  ;;  %3848 = vrcp.f32 %v1438_v2 }
 0x5af   :  { %v3849_v18 = vpop.eup %3848 }
 0x5b0   :  { %v1442_v63 = vmul.f32 %v3849_v18, %v4742_v59 }
 0x5b1   :  { %3578 = vmatmul.msk.f32.vlgmr.msrb.gmra.mxu1 %vm161_vm0, %v1441_v13 }
 0x5b6   :  { %1696 = vmax.xlane.f32.xlu2 %v1695_v15  ;;  %v1626_v22 = vpop.permute.xlu1 %1625 }
 0x5b9   :  { %3579 = vmatmul.msk.f32.gmra.mxu1 %vm161_vm0, %v1442_v63  ;;  %v1628_v61 = vpop.permute.xlu0 %1627 }
 0x5be   :  { %v1750_v11 = vpop.permute.xlu1 %1749 }
 0x5bf   :  { %3596 = vmatpush.xpose.msk.msrb.mxu0 %vm161_vm0, %v1750_v11 }
 0x5c1   :  { %3588 = vmatmul.msk.f32.vlgmr.msra.gmra.mxu1 %vm328_vm1, %v1626_v22 }
 0x5c9   :  { %3589 = vmatmul.msk.f32.gmra.mxu1 %vm328_vm1, %v1628_v61 }
 0x5ce   :  { %2016 = vrot.lane.b32.xlu2 %v1884_v6, %s4154_s15 }
 0x5e8   :  { %v1515_v12 = vpop.xlane.xlu2 %1514 }
 0x5e9   :  { %v1519_v25 = vsub.f32 %v4762_v16, %v1515_v12 }
 0x5eb   :  { %v1521_v55 = vmul.f32 1.442695, %v1519_v25 }
 0x5ed   :  { %3850 = vpow2.f32 %v1521_v55 }
 0x5f0   :  { %v1748_v39 = vpop.permute.xlu2 %1747  ;;  %v1518_v59 = vpop.xlane.xlu0 %1517 }
 0x5f1   :  { %v1520_v26 = vsub.f32 %v4768_v3, %v1518_v59  ;;  %3597 = vmatpush.xpose.msk.msrb.mxu0 %vm161_vm0, %v1748_v39 }
 0x5f3   :  { %v3851_v21 = vpop.eup %3850  ;;  %v1523_v9 = vmul.f32 1.442695, %v1520_v26 }
 0x5f4   :  { %3598 = vmatmul.msk.f32.vlgmr.msrb.gmra.mxu0 %vm161_vm0, %v4705_v28  ;;  %v1525_v17 = vmul.f32 %v3851_v21, %v4663_v58 }
 0x5f5   :  { %3606 = vmatpush.xpose.msk.msra.mxu0 %vm161_vm0, %v1884_v6  ;;  %3852 = vpow2.f32 %v1523_v9 }
 0x5f6   :  { %v1527_v16 = vsel %vm161_vm0, %v1525_v17, 0.0 }
 0x5f7   :  { %1528 = vadd.xlane.f32.xlu0 %v1527_v16 }
 0x5f8   :  { %v1694_v4 = vpop.xlane.xlu1 %1693 }
 0x5f9   :  { %3607 = vmatpush.xpose.msk.msra.mxu0 %vm161_vm0, %v4783_v43  ;;  %v1698_v3 = vsub.f32 %v4777_v0, %v1694_v4 }
 0x5fb   :  { %v3853_v24 = vpop.eup %3852  ;;  %v1700_v19 = vmul.f32 1.442695, %v1698_v3 }
 0x5fc   :  { %3599 = vmatmul.msk.f32.gmra.mxu0 %vm161_vm0, %v4710_v32  ;;  %v1526_v2 = vmul.f32 %v3853_v24, %v4678_v23 }
 0x5fd   :  { %3854 = vpow2.f32 %v1700_v19 }
 0x5fe   :  { %v1530_v62 = vsel %vm161_vm0, %v1526_v2, 0.0 }
 0x5ff   :  { %1531 = vadd.xlane.f32.xlu2 %v1530_v62 }
 0x603   :  { %v3855_v13 = vpop.eup %3854 }
 0x604   :  { %3608 = vmatmul.msk.f32.vlgmr.msra.gmra.mxu0 %vm161_vm0, %v4605_v10  ;;  %v1704_v43 = vmul.f32 %v3855_v13, %v4772_v8 }
 0x605   :  { %v2015_v55 = vpop.permute.xlu0 %2014 }
 0x606   :  { %v1706_v18 = vsel %vm161_vm0, %v1704_v43, 0.0 }
 0x607   :  { %1707 = vadd.xlane.f32.xlu1 %v1706_v18 }
 0x60c   :  { %3609 = vmatmul.msk.f32.gmra.mxu0 %vm161_vm0, %v4609_v1 }
 0x610   :  { %v3748_v0 = vpop.permute.xlu1 %3747 }
 0x611   :  { %v3749_v15 = vunpack.i.l.bf16 %v3748_v0  ;;  %v3750_v22 = vunpack.i.h.bf16 %v3748_v0 }
 0x613   :  { %1567 = vmatpush.msrb.mxu3 %v3749_v15 }
 0x615   :  { %1568 = vmatpush.msrb.mxu3 %v3750_v22 }
 0x617   :  { %1892 = vrot.lane.b32.xlu2 %v4456_v44, %s4151_s0 }
 0x61e   :  { %v4829_v63 = vpop.f32.mrf.mxu1 }
 0x626   :  { %v4831_v11 = vpop.f32.mrf.mxu1 }
 0x629   :  { %v1697_v10 = vpop.xlane.xlu2 %1696 }
 0x62a   :  { %v1699_v61 = vsub.f32 %v1691_v14, %v1697_v10 }
 0x62c   :  { %v1702_v6 = vmul.f32 1.442695, %v1699_v61  ;;  %v1891_v61 = vld [vmem:[#allocation10 + $0xb8] sm:$0xff] }
 0x62e   :  { %3856 = vpow2.f32 %v1702_v6  ;;  %v4833_v12 = vpop.f32.mrf.mxu1  ;;  %v1890_v6 = vld [vmem:[#allocation10 + $0xb0] sm:$0xff] }
 0x631   :  { %v2017_v25 = vpop.permute.xlu2 %2016 }
 0x632   :  { %3612 = vmatpush.xpose.msk.msra.mxu2 %vm161_vm0, %v2017_v25  ;;  %v1889_v25 = vld [vmem:[#allocation10 + $0xa8] sm:$0xff] }
 0x634   :  { %v3857_v1 = vpop.eup %3856 }
 0x635   :  { %v1705_v39 = vmul.f32 %v3857_v1, %v4792_v60  ;;  %v1888_v1 = vld [vmem:[#allocation10 + $0xa0] sm:$0xff] }
 0x636   :  { %v4837_v59 = vpop.f32.mrf.mxu1  ;;  %3613 = vmatpush.xpose.msk.msra.mxu2 %vm161_vm0, %v2015_v55 }
 0x637   :  { %v1709_v44 = vsel %vm161_vm0, %v1705_v39, 0.0 }
 0x638   :  { %1710 = vadd.xlane.f32.xlu0 %v1709_v44 }
 0x639   :  { %3614 = vmatmul.msk.f32.vlgmr.msra.gmra.mxu2 %vm161_vm0, %v4705_v28 }
 0x63e   :  { %v4843_v14 = vpop.f32.mrf.mxu1 }
 0x641   :  { %3615 = vmatmul.msk.f32.gmra.mxu2 %vm161_vm0, %v4710_v32 }
 0x646   :  { %v4847_v26 = vpop.f32.mrf.mxu1 }
 0x647   :  { %1738 = vmatpush.msra.mxu3 %v4847_v26 }
 0x649   :  { %1739 = vmatpush.msra.mxu3 %v4843_v14 }
 0x64c   :  { %1894 = vrot.lane.b32.xlu0 %v4470_v56, %s4151_s0 }
 0x66a   :  { %v1529_v21 = vpop.xlane.xlu0 %1528 }
 0x66b   :  { %v1533_v9 = vadd.f32 1e-30, %v1529_v21 }
 0x66d   :  { %3858 = vrcp.f32 %v1533_v9  ;;  %v4863_v9 = vld [vmem:[#allocation4 + $0x50] sm:$0xff] }
 0x66e   :  { %vm1955_vm12 = vcmp.gt.f32.partialorder %v4863_v9, 0.0 }
 0x671   :  { %v1772_v16 = vpop.f32.mrf.mxu0 }
 0x672   :  { %v1778_v28 = vsel %vm1688_vm10, %v1772_v16, -1e+30  ;;  %v1532_v4 = vpop.xlane.xlu2 %1531 }
 0x673   :  { %v3859_v3 = vpop.eup %3858  ;;  %v1534_v24 = vadd.f32 1e-30, %v1532_v4  ;;  %v1780_v32 = vsel %vm161_vm0, %v1778_v28, -inf }
 0x674   :  { %v1537_v19 = vmul.f32 %v3859_v3, %v1525_v17  ;;  %1781 = vmax.xlane.f32.xlu1 %v1780_v32  ;;  %v4870_v32 = vld [vmem:[#allocation4 + $0x58] sm:$0xff] }
 0x675   :  { %3860 = vrcp.f32 %v1534_v24  ;;  %vm1956_vm13 = vcmp.gt.f32.partialorder %v4870_v32, 0.0 }
 0x676   :  { %3584 = vmatmul.msk.f32.vlgmr.msrb.gmra.mxu3 %vm161_vm0, %v1537_v19 }
 0x677   :  { %1912 = vmatpush.msrb.mxu3 %v1891_v61 }
 0x679   :  { %v1775_v62 = vpop.f32.mrf.mxu0  ;;  %1913 = vmatpush.msrb.mxu3 %v1890_v6 }
 0x67a   :  { %v1779_v56 = vsel %vm1689_vm11, %v1775_v62, -1e+30  ;;  %v1708_v13 = vpop.xlane.xlu1 %1707  ;;  %v1893_v4 = vpop.permute.xlu2 %1892 }
 0x67b   :  { %v3861_v18 = vpop.eup %3860  ;;  %v1712_v0 = vadd.f32 1e-30, %v1708_v13  ;;  %v1783_v15 = vsel %vm161_vm0, %v1779_v56, -inf  ;;  %1914 = vmatpush.msrb.mxu3 %v1889_v25 }
 0x67c   :  { %1784 = vmax.xlane.f32.xlu2 %v1783_v15  ;;  %v1538_v22 = vmul.f32 %v3861_v18, %v1526_v2 }
 0x67d   :  { %3862 = vrcp.f32 %v1712_v0  ;;  %1915 = vmatpush.msrb.mxu3 %v1888_v1 }
 0x67e   :  { %3585 = vmatmul.msk.f32.gmra.mxu3 %vm161_vm0, %v1538_v22 }
 0x681   :  { %v1949_v3 = vpop.f32.mrf.mxu0 }
 0x683   :  { %v3863_v10 = vpop.eup %3862 }
 0x684   :  { %v1716_v17 = vmul.f32 %v3863_v10, %v1704_v43 }
 0x686   :  { %3594 = vmatmul.msk.f32.vlgmr.msra.gmra.mxu3 %vm161_vm0, %v1716_v17 }
 0x689   :  { %v1952_v15 = vpop.f32.mrf.mxu0 }
 0x68a   :  { %v1958_v22 = vsel %vm1956_vm13, %v1952_v15, -1e+30 }
 0x68b   :  { %v1962_v10 = vsel %vm161_vm0, %v1958_v22, -inf }
 0x6ab   :  { %v1711_v55 = vpop.xlane.xlu0 %1710 }
 0x6ac   :  { %v1713_v44 = vadd.f32 1e-30, %v1711_v55 }
 0x6ae   :  { %3864 = vrcp.f32 %v1713_v44 }
 0x6b4   :  { %v3865_v21 = vpop.eup %3864 }
 0x6b5   :  { %v1717_v2 = vmul.f32 %v3865_v21, %v1705_v39  ;;  %v1957_v39 = vsel %vm1955_vm12, %v1949_v3, -1e+30 }
 0x6b6   :  { %v1959_v18 = vsel %vm161_vm0, %v1957_v39, -inf }
 0x6b7   :  { %3595 = vmatmul.msk.f32.gmra.mxu3 %vm161_vm0, %v1717_v2 }
 0x6bc   :  { %v2039_v43 = vpop.f32.mrf.mxu2 }
 0x6bd   :  { %v2045_v16 = vsel %vm1955_vm12, %v2039_v43, -1e+30 }
 0x6be   :  { %v2047_v24 = vsel %vm161_vm0, %v2045_v16, -inf  ;;  %v1895_v0 = vpop.permute.xlu0 %1894 }
 0x6bf   :  { %2048 = vmax.xlane.f32.xlu1 %v2047_v24  ;;  %3604 = vmatmul.msk.f32.vlgmr.msrb.gmra.mxu3 %vm328_vm1, %v1893_v4 }
 0x6c4   :  { %v2042_v19 = vpop.f32.mrf.mxu2 }
 0x6c5   :  { %v2046_v62 = vsel %vm1956_vm13, %v2042_v19, -1e+30 }
 0x6c6   :  { %v2050_v13 = vsel %vm161_vm0, %v2046_v62, -inf }
 0x6c7   :  { %2051 = vmax.xlane.f32.xlu0 %v2050_v13  ;;  %1960 = vmax.xlane.f32.xlu1 %v1959_v18 }
 0x6c8   :  { %3605 = vmatmul.msk.f32.gmra.mxu3 %vm328_vm1, %v1895_v0 }
 0x6cf   :  { %1963 = vmax.xlane.f32.xlu1 %v1962_v10 }
 0x6e7   :  { %v1782_v17 = vpop.xlane.xlu1 %1781 }
 0x6e8   :  { %v1786_v61 = vsub.f32 %v1778_v28, %v1782_v17 }
 0x6ea   :  { %v1788_v6 = vmul.f32 1.442695, %v1786_v61 }
 0x6ec   :  { %3866 = vpow2.f32 %v1788_v6 }
 0x6ef   :  { %v1785_v25 = vpop.xlane.xlu2 %1784 }
 0x6f0   :  { %v1787_v1 = vsub.f32 %v1779_v56, %v1785_v25 }
 0x6f2   :  { %v3867_v55 = vpop.eup %3866  ;;  %v1790_v44 = vmul.f32 1.442695, %v1787_v1 }
 0x6f3   :  { %v4884_v21 = vmul.f32 %v3867_v55, %v4772_v8 }
 0x6f4   :  { %3868 = vpow2.f32 %v1790_v44 }
 0x6f5   :  { %v1794_v2 = vsel %vm161_vm0, %v4884_v21, 0.0 }
 0x6f6   :  { %1795 = vadd.xlane.f32.xlu1 %v1794_v2 }
 0x6f9   :  { %v1570_v3 = vpop.f32.mrf.mxu3 }
 0x6fa   :  { %v3869_v43 = vpop.eup %3868 }
 0x6fb   :  { %v4889_v4 = vmul.f32 %v3869_v43, %v4792_v60 }
 0x6fd   :  { %v1797_v28 = vsel %vm161_vm0, %v4889_v4, 0.0 }
 0x6fe   :  { %1798 = vadd.xlane.f32.xlu2 %v1797_v28 }
 0x701   :  { %v4893_v56 = vpop.f32.mrf.mxu3 }
 0x709   :  { %v4895_v19 = vpop.f32.mrf.mxu3 }
 0x732   :  { %v2049_v24 = vpop.xlane.xlu1 %2048 }
 0x733   :  { %v2053_v13 = vsub.f32 %v2045_v16, %v2049_v24 }
 0x735   :  { %v2055_v18 = vmul.f32 1.442695, %v2053_v13 }
 0x737   :  { %3870 = vpow2.f32 %v2055_v18 }
 0x73a   :  { %v2052_v0 = vpop.xlane.xlu0 %2051  ;;  %v1961_v15 = vpop.xlane.xlu1 %1960 }
 0x73b   :  { %v2054_v10 = vsub.f32 %v2046_v62, %v2052_v0  ;;  %v1965_v17 = vsub.f32 %v1957_v39, %v1961_v15  ;;  %v4897_v61 = vpop.f32.mrf.mxu3 }
 0x73d   :  { %v3871_v6 = vpop.eup %3870  ;;  %v2057_v25 = vmul.f32 1.442695, %v2054_v10  ;;  %v1967_v1 = vmul.f32 1.442695, %v1965_v17 }
 0x73e   :  { %v2059_v55 = vmul.f32 %v3871_v6, %v4863_v9 }
 0x73f   :  { %3872 = vpow2.f32 %v2057_v25  ;;  %v3756_v25 = vpack.i.bf16 %v4843_v14, %v4847_v26  ;;  %v2143_v14 = vld [vmem:[#allocation12 + $0x18] sm:$0xff]  ;;  %v2142_v26 = vld [vmem:[#allocation12 + $0x10] sm:$0xff] }
 0x740   :  { %3874 = vpow2.f32 %v1967_v1  ;;  %v2061_v44 = vsel %vm161_vm0, %v2059_v55, 0.0  ;;  %2166 = vmatpush.msrb.mxu0 %v2143_v14 }
 0x741   :  { %2062 = vadd.xlane.f32.xlu1 %v2061_v44 }
 0x742   :  { %v1964_v2 = vpop.xlane.xlu1 %1963  ;;  %2167 = vmatpush.msrb.mxu0 %v2142_v26  ;;  %v2285_v26 = vld [vmem:[#allocation12 + $0x48] sm:$0xff] }
 0x743   :  { %v1966_v16 = vsub.f32 %v1958_v22, %v1964_v2  ;;  %v4901_v43 = vpop.f32.mrf.mxu3 }
 0x745   :  { %v3873_v28 = vpop.eup %3872  ;;  %v1969_v24 = vmul.f32 1.442695, %v1966_v16 }
 0x746   :  { %v3875_v62 = vpop.eup %3874  ;;  %v2060_v39 = vmul.f32 %v3873_v28, %v4870_v32  ;;  %v2140_v28 = vld [vmem:[#allocation12] sm:$0xff] }
 0x747   :  { %3876 = vpow2.f32 %v1969_v24  ;;  %v4905_v13 = vmul.f32 %v3875_v62, %v4863_v9 }
 0x748   :  { %v2064_v18 = vsel %vm161_vm0, %v2060_v39, 0.0 }
 0x749   :  { %2065 = vadd.xlane.f32.xlu1 %v2064_v18  ;;  %v1973_v0 = vsel %vm161_vm0, %v4905_v13, 0.0 }
 0x74a   :  { %1974 = vadd.xlane.f32.xlu2 %v1973_v0 }
 0x74b   :  { %v4910_v15 = vpop.f32.mrf.mxu3 }
 0x74c   :  { %v3751_v22 = vpack.i.bf16 %v4901_v43, %v4910_v15 }
 0x74d   :  { %v3877_v10 = vpop.eup %3876 }
 0x74e   :  { %3752 = vrot.lane.b32.xlu0 %v3751_v22, %s4154_s15  ;;  %v4916_v17 = vmul.f32 %v3877_v10, %v4870_v32  ;;  %v2287_v10 = vld [vmem:[#allocation12 + $0x58] sm:$0xff] }
 0x74f   :  { %2311 = vmatpush.msrb.mxu2 %v2287_v10 }
 0x750   :  { %v1976_v6 = vsel %vm161_vm0, %v4916_v17, 0.0 }
 0x752   :  { %1977 = vadd.xlane.f32.xlu2 %v1976_v6 }
 0x756   :  { %749 = vrot.lane.b32.xlu0 %v4645_v5, %s4155_s1 }
 0x75e   :  { %1578 = vrot.lane.b32.xlu0 %v1570_v3, %s4155_s1 }
 0x762   :  { %3757 = vrot.lane.b32.xlu1 %v3756_v25, %s4154_s15  ;;  %v2286_v25 = vld [vmem:[#allocation12 + $0x50] sm:$0xff] }
 0x763   :  { %2312 = vmatpush.msrb.mxu2 %v2286_v25 }
 0x765   :  { %2313 = vmatpush.msrb.mxu2 %v2285_v26 }
 0x769   :  { %v1796_v5 = vpop.xlane.xlu1 %1795 }
 0x76a   :  { %751 = vrot.lane.b32.xlu2 %v4651_v50, %s4155_s1 }
 0x771   :  { %v1799_v1 = vpop.xlane.xlu2 %1798 }
 0x772   :  { %1022 = vrot.lane.b32.xlu2 %v4752_v34, %s4155_s1  ;;  %v2141_v34 = vld [vmem:[#allocation12 + $0x8] sm:$0xff]  ;;  %v1801_v10 = vadd.f32 1e-30, %v1799_v1  ;;  %v2359_v1 = vld [vmem:[#allocation12 + $0x70] sm:$0xff] }
 0x773   :  { %2168 = vmatpush.msrb.mxu0 %v2141_v34 }
 0x775   :  { %2169 = vmatpush.msrb.mxu0 %v2140_v28 }
 0x77a   :  { %2256 = vrot.lane.b32.xlu2 %v4274_v7, %s4156_s6 }
 0x782   :  { %1295 = vrot.lane.b32.xlu2 %v4829_v63, %s4155_s1 }
 0x78a   :  { %2402 = vrot.lane.b32.xlu2 %v4274_v7, %s4157_s4 }
 0x7b4   :  { %v2063_v3 = vpop.xlane.xlu1 %2062 }
 0x7b5   :  { %v2067_v44 = vadd.f32 1e-30, %v2063_v3 }
 0x7b7   :  { %3878 = vrcp.f32 %v2067_v44 }
 0x7bc   :  { %v2066_v2 = vpop.xlane.xlu1 %2065 }
 0x7bd   :  { %v4934_v50 = vpop.xlane.xlu2 %1974  ;;  %v2068_v16 = vadd.f32 1e-30, %v2066_v2  ;;  %v3879_v62 = vpop.eup %3878  ;;  %v1800_v2 = vadd.f32 1e-30, %v1796_v5 }
 0x7be   :  { %v2071_v0 = vmul.f32 %v3879_v62, %v2059_v55 }
 0x7bf   :  { %3880 = vrcp.f32 %v2068_v16  ;;  %v2284_v16 = vld [vmem:[#allocation12 + $0x40] sm:$0xff] }
 0x7c0   :  { %v3753_v24 = vpop.permute.xlu0 %3752  ;;  %2314 = vmatpush.msrb.mxu2 %v2284_v16  ;;  %3882 = vrcp.f32 %v1800_v2 }
 0x7c1   :  { %v3754_v63 = vunpack.i.l.bf16 %v3753_v24  ;;  %v3755_v18 = vunpack.i.h.bf16 %v3753_v24 }
 0x7c3   :  { %2101 = vmatpush.msra.mxu3 %v3754_v63 }
 0x7c5   :  { %v4936_v22 = vpop.xlane.xlu2 %1977  ;;  %2102 = vmatpush.msra.mxu3 %v3755_v18  ;;  %v3881_v3 = vpop.eup %3880 }
 0x7c6   :  { %3616 = vmatmul.msk.f32.vlgmr.msra.gmra.mxu3 %vm161_vm0, %v2071_v0  ;;  %v2072_v55 = vmul.f32 %v3881_v3, %v2060_v39  ;;  %v3883_v25 = vpop.eup %3882 }
 0x7c7   :  { %v1804_v16 = vmul.f32 %v3883_v25, %v4884_v21 }
 0x7c8   :  { %v750_v6 = vpop.permute.xlu0 %749 }
 0x7c9   :  { %v755_v44 = vsel %vm161_vm0, %v4550_v40, %v750_v6 }
 0x7ca   :  { %v2122_v14 = vmul.f32 %v755_v44, %v755_v44 }
 0x7cc   :  { %v2124_v34 = vmul.f32 %v2122_v14, %v755_v44 }
 0x7cd   :  { %v752_v28 = vpop.permute.xlu2 %751 }
 0x7ce   :  { %v2126_v24 = vmul.f32 0.044715, %v2124_v34  ;;  %v756_v62 = vsel %vm161_vm0, %v4552_v47, %v752_v28  ;;  %3617 = vmatmul.msk.f32.gmra.mxu3 %vm161_vm0, %v2072_v55  ;;  %v2360_v34 = vld [vmem:[#allocation12 + $0x78] sm:$0xff] }
 0x7cf   :  { %v2123_v63 = vmul.f32 %v756_v62, %v756_v62  ;;  %2384 = vmatpush.msrb.mxu3 %v2360_v34 }
 0x7d0   :  { %v2128_v18 = vadd.f32 %v2126_v24, %v755_v44 }
 0x7d1   :  { %v2125_v40 = vmul.f32 %v2123_v63, %v756_v62  ;;  %2385 = vmatpush.msrb.mxu3 %v2359_v1  ;;  %v2358_v63 = vld [vmem:[#allocation12 + $0x68] sm:$0xff] }
 0x7d2   :  { %v2130_v0 = vmul.f32 0.7978846, %v2128_v18 }
 0x7d3   :  { %v2127_v6 = vmul.f32 0.044715, %v2125_v40  ;;  %2386 = vmatpush.msrb.mxu3 %v2358_v63 }
 0x7d4   :  { %3884 = vtanh.f32 %v2130_v0  ;;  %v3758_v5 = vpop.permute.xlu1 %3757  ;;  %v2357_v0 = vld [vmem:[#allocation12 + $0x60] sm:$0xff] }
 0x7d5   :  { %v2129_v39 = vadd.f32 %v2127_v6, %v756_v62  ;;  %v1023_v3 = vpop.permute.xlu2 %1022  ;;  %v3759_v14 = vunpack.i.l.bf16 %v3758_v5  ;;  %3886 = vrcp.f32 %v1801_v10  ;;  %v3760_v2 = vunpack.i.h.bf16 %v3758_v5  ;;  %2387 = vmatpush.msrb.mxu3 %v2357_v0 }
 0x7d6   :  { %v1028_v26 = vsel %vm161_vm0, %v4653_v51, %v1023_v3  ;;  %v1979_v51 = vadd.f32 1e-30, %v4934_v50 }
 0x7d7   :  { %v2131_v47 = vmul.f32 0.7978846, %v2129_v39  ;;  %v2265_v55 = vmul.f32 %v1028_v26, %v1028_v26  ;;  %1834 = vmatpush.msrb.mxu1 %v3759_v14 }
 0x7d9   :  { %3888 = vtanh.f32 %v2131_v47  ;;  %v2267_v28 = vmul.f32 %v2265_v55, %v1028_v26  ;;  %1835 = vmatpush.msrb.mxu1 %v3760_v2 }
 0x7da   :  { %v3885_v24 = vpop.eup %3884  ;;  %3600 = vmatmul.msk.f32.vlgmr.msrb.gmra.mxu1 %vm161_vm0, %v1804_v16  ;;  %3890 = vrcp.f32 %v1979_v51 }
 0x7db   :  { %v2134_v18 = vadd.f32 1.0, %v3885_v24  ;;  %v2269_v40 = vmul.f32 0.044715, %v2267_v28  ;;  %2005 = vmatpush.msra.mxu1 %v4910_v15  ;;  %v3887_v10 = vpop.eup %3886  ;;  %v1980_v15 = vadd.f32 1e-30, %v4936_v22 }
 0x7dc   :  { %v1805_v50 = vmul.f32 %v3887_v10, %v4889_v4 }
 0x7dd   :  { %v2136_v6 = vmul.f32 0.5, %v2134_v18  ;;  %v2271_v21 = vadd.f32 %v2269_v40, %v1028_v26  ;;  %v4950_v5 = vpop.permute.xlu2 %2256  ;;  %2006 = vmatpush.msra.mxu1 %v4901_v43 }
 0x7df   :  { %v3889_v25 = vpop.eup %3888  ;;  %v2138_v39 = vmul.f32 %v2136_v6, %v755_v44  ;;  %v2273_v3 = vmul.f32 0.7978846, %v2271_v21  ;;  %v2414_v6 = vld [vmem:[#allocation7 + $0x90] sm:$0xff]  ;;  %v2413_v21 = vld [vmem:[#allocation7 + $0x88] sm:$0xff] }
 0x7e0   :  { %v2135_v14 = vadd.f32 1.0, %v3889_v25  ;;  %v3891_v47 = vpop.eup %3890 }
 0x7e1   :  { %3892 = vtanh.f32 %v2273_v3  ;;  %3618 = vmatmul.msk.f32.vlgmr.msrb.gmra.mxu0 %vm328_vm1, %v2138_v39  ;;  %v1983_v4 = vmul.f32 %v3891_v47, %v4905_v13  ;;  %v3784_v3 = vld [vmem:[%s5339_s9] ss:$0 sm:$0xff] }
 0x7e2   :  { %3601 = vmatmul.msk.f32.gmra.mxu1 %vm161_vm0, %v1805_v50  ;;  %v2137_v34 = vmul.f32 0.5, %v2135_v14  ;;  %3894 = vrcp.f32 %v1980_v15  ;;  %v2179_v50 = vstv %s3695_s8  ;;  %v2186_v14 = vstv %s3697_s22 }
 0x7e4   :  { %v2139_v16 = vmul.f32 %v2137_v34, %v756_v62 }
 0x7e5   :  { %v1296_v55 = vpop.permute.xlu2 %1295 }
 0x7e6   :  { %v1301_v43 = vsel %vm161_vm0, %v4756_v20, %v1296_v55  ;;  %v2188_v55 = vmul.f32 %v2186_v14, %v191_v31  ;;  %v2571_v31 = vld [vmem:[#allocation9 + $0x138] sm:$0xff] }
 0x7e7   :  { %v3893_v2 = vpop.eup %3892  ;;  %v2338_v44 = vmul.f32 %v1301_v43, %v1301_v43 }
 0x7e8   :  { %v2277_v1 = vadd.f32 1.0, %v3893_v2  ;;  %v3895_v51 = vpop.eup %3894 }
 0x7e9   :  { %v2340_v28 = vmul.f32 %v2338_v44, %v1301_v43  ;;  %3619 = vmatmul.msk.f32.gmra.mxu0 %vm328_vm1, %v2139_v16  ;;  %v1984_v40 = vmul.f32 %v3895_v51, %v4916_v17  ;;  %v2412_v17 = vld [vmem:[#allocation7 + $0x80] sm:$0xff]  ;;  %v2212_v51 = vld [vmem:[#allocation12 + $0x28] sm:$0xff] }
 0x7ea   :  { %v2279_v24 = vmul.f32 0.5, %v2277_v1  ;;  %3610 = vmatmul.msk.f32.vlgmr.msra.gmra.mxu1 %vm161_vm0, %v1983_v4 }
 0x7eb   :  { %v2342_v22 = vmul.f32 0.044715, %v2340_v28 }
 0x7ec   :  { %v2281_v63 = vmul.f32 %v2279_v24, %v1028_v26  ;;  %v2415_v26 = vld [vmem:[#allocation7 + $0x98] sm:$0xff]  ;;  %v1579_v24 = vpop.permute.xlu0 %1578 }
 0x7ed   :  { %v2344_v18 = vadd.f32 %v2342_v22, %v1301_v43  ;;  %2439 = vmatpush.msra.mxu0 %v2415_v26  ;;  %v2213_v22 = vld [vmem:[#allocation12 + $0x30] sm:$0xff] }
 0x7ee   :  { %3624 = vmatmul.msk.f32.vlgmr.msrb.gmra.mxu2 %vm328_vm1, %v2281_v63  ;;  %v2568_v63 = vld [vmem:[#allocation9 + $0x120] sm:$0xff] }
 0x7ef   :  { %v2346_v20 = vmul.f32 0.7978846, %v2344_v18  ;;  %2440 = vmatpush.msra.mxu0 %v2414_v6  ;;  %v2211_v18 = vld [vmem:[#allocation12 + $0x20] sm:$0xff] }
 0x7f1   :  { %3896 = vtanh.f32 %v2346_v20  ;;  %2441 = vmatpush.msra.mxu0 %v2413_v21 }
 0x7f2   :  { %3611 = vmatmul.msk.f32.gmra.mxu1 %vm161_vm0, %v1984_v40  ;;  %v1584_v40 = vsel %vm161_vm0, %v4833_v12, %v1579_v24 }
 0x7f3   :  { %2442 = vmatpush.msra.mxu0 %v2412_v17 }
 0x7f5   :  { %2590 = vmatpush.msrb.mxu0 %v2571_v31 }
 0x7f7   :  { %v3897_v13 = vpop.eup %3896  ;;  %2591 = vmatpush.msrb.mxu0 %v2570_v35 }
 0x7f8   :  { %v2350_v62 = vadd.f32 1.0, %v3897_v13 }
 0x7fa   :  { %v2352_v0 = vmul.f32 0.5, %v2350_v62 }
 0x7fc   :  { %v2354_v10 = vmul.f32 %v2352_v0, %v1301_v43 }
 0x7fe   :  { %3627 = vmatmul.msk.f32.vlgmr.msrb.gmra.mxu3 %vm328_vm1, %v2354_v10 }
 0x849   :  { %v2104_v25 = vpop.f32.mrf.mxu3 }
 0x84a   :  { %2112 = vrot.lane.b32.xlu0 %v2104_v25, %s4155_s1 }
 0x851   :  { %v2107_v16 = vpop.f32.mrf.mxu3 }
 0x857   :  { %v1837_v39 = vpop.f32.mrf.mxu1 }
 0x858   :  { %1845 = vrot.lane.b32.xlu1 %v1837_v39, %s4155_s1 }
 0x85e   :  { %v2171_v15 = vpop.f32.mrf.mxu0 }
 0x85f   :  { %v2172_v34 = vadd.f32 %v3784_v3, %v2171_v15  ;;  %v1840_v47 = vpop.f32.mrf.mxu1 }
 0x860   :  { %1580 = vrot.lane.b32.xlu1 %v4893_v56, %s4155_s1  ;;  %1847 = vrot.lane.b32.xlu0 %v1840_v47, %s4155_s1  ;;  %v2189_v56 = vmul.f32 %v2186_v14, %v192_v37  ;;  %v2214_v37 = vld [vmem:[#allocation12 + $0x38] sm:$0xff] }
 0x861   :  { %v2181_v43 = vmul.f32 %v2179_v50, %v2172_v34  ;;  %2238 = vmatpush.msrb.mxu1 %v2214_v37 }
 0x863   :  { %v2190_v2 = vadd.f32 %v2188_v55, %v2181_v43  ;;  %2239 = vmatpush.msrb.mxu1 %v2213_v22 }
 0x865   :  { %3630 = vmatmul.msk.f32.vlgmr.msra.gmra.mxu0 %vm328_vm1, %v2190_v2  ;;  %2240 = vmatpush.msrb.mxu1 %v2212_v51 }
 0x866   :  { %v2174_v44 = vpop.f32.mrf.mxu0 }
 0x867   :  { %v2175_v4 = vadd.f32 %v3784_v3, %v2174_v44  ;;  %2241 = vmatpush.msrb.mxu1 %v2211_v18  ;;  %v2008_v62 = vpop.f32.mrf.mxu1 }
 0x868   :  { %1024 = vrot.lane.b32.xlu0 %v4754_v46, %s4155_s1  ;;  %2114 = vrot.lane.b32.xlu1 %v2107_v16, %s4155_s1  ;;  %v2569_v46 = vld [vmem:[#allocation9 + $0x128] sm:$0xff] }
 0x869   :  { %v2182_v1 = vmul.f32 %v2179_v50, %v2175_v4  ;;  %2592 = vmatpush.msrb.mxu0 %v2569_v46 }
 0x86b   :  { %v2191_v28 = vadd.f32 %v2189_v56, %v2182_v1  ;;  %2593 = vmatpush.msrb.mxu0 %v2568_v63 }
 0x86d   :  { %3631 = vmatmul.msk.f32.gmra.mxu0 %vm328_vm1, %v2191_v28 }
 0x86f   :  { %v2011_v15 = vpop.f32.mrf.mxu1 }
 0x870   :  { %2322 = vrot.lane.b32.xlu0 %v3958_v29, %s4158_s25  ;;  %2249 = vrot.lane.b32.xlu1 %v3958_v29, %s4156_s6 }
 0x878   :  { %1297 = vrot.lane.b32.xlu0 %v4831_v11, %s4155_s1  ;;  %2329 = vrot.lane.b32.xlu1 %v4274_v7, %s4158_s25 }
 0x880   :  { %2395 = vrot.lane.b32.xlu1 %v3958_v29, %s4157_s4 }
 0x8bc   :  { %v2113_v11 = vpop.permute.xlu0 %2112 }
 0x8bd   :  { %v2118_v10 = vsel %vm161_vm0, %v2008_v62, %v2113_v11 }
 0x8ca   :  { %v1846_v20 = vpop.permute.xlu1 %1845 }
 0x8cb   :  { %v1851_v13 = vsel %vm161_vm0, %v4895_v19, %v1846_v20 }
 0x8cc   :  { %v1853_v0 = vadd.f32 %v1851_v13, %v1584_v40 }
 0x8ce   :  { %v2120_v26 = vadd.f32 %v2118_v10, %v1853_v0 }
 0x8d0   :  { %v2192_v6 = vmul.f32 %v2120_v26, %v2120_v26 }
 0x8d2   :  { %v2194_v21 = vmul.f32 %v2192_v6, %v2120_v26  ;;  %v1581_v17 = vpop.permute.xlu1 %1580  ;;  %v1848_v25 = vpop.permute.xlu0 %1847 }
 0x8d3   :  { %v1585_v50 = vsel %vm161_vm0, %v4837_v59, %v1581_v17  ;;  %v1852_v12 = vsel %vm161_vm0, %v4897_v61, %v1848_v25  ;;  %v3787_v59 = vld [vmem:[%s5335_s5 + $0x4] ss:$0 sm:$0xff] }
 0x8d4   :  { %v2196_v39 = vmul.f32 0.044715, %v2194_v21  ;;  %v1854_v19 = vadd.f32 %v1852_v12, %v1585_v50  ;;  %v2403_v12 = vpop.permute.xlu2 %2402 }
 0x8d6   :  { %v2198_v3 = vadd.f32 %v2196_v39, %v2120_v26 }
 0x8d8   :  { %v2200_v14 = vmul.f32 0.7978846, %v2198_v3 }
 0x8da   :  { %3898 = vtanh.f32 %v2200_v14  ;;  %v1025_v34 = vpop.permute.xlu0 %1024  ;;  %v2115_v47 = vpop.permute.xlu1 %2114 }
 0x8db   :  { %v1029_v55 = vsel %vm161_vm0, %v4655_v38, %v1025_v34  ;;  %v2119_v43 = vsel %vm161_vm0, %v2011_v15, %v2115_v47 }
 0x8dc   :  { %v2266_v2 = vmul.f32 %v1029_v55, %v1029_v55  ;;  %v2121_v44 = vadd.f32 %v2119_v43, %v1854_v19  ;;  %v2493_v19 = vld [vmem:[#allocation7 + $0xd8] sm:$0xff] }
 0x8dd   :  { %2517 = vmatpush.msra.mxu2 %v2493_v19 }
 0x8de   :  { %v2268_v16 = vmul.f32 %v2266_v2, %v1029_v55  ;;  %v2193_v4 = vmul.f32 %v2121_v44, %v2121_v44  ;;  %v2492_v2 = vld [vmem:[#allocation7 + $0xd0] sm:$0xff] }
 0x8df   :  { %2518 = vmatpush.msra.mxu2 %v2492_v2 }
 0x8e0   :  { %v3899_v61 = vpop.eup %3898  ;;  %v2270_v56 = vmul.f32 0.044715, %v2268_v16  ;;  %v2195_v1 = vmul.f32 %v2193_v4, %v2121_v44  ;;  %v2491_v16 = vld [vmem:[#allocation7 + $0xc8] sm:$0xff]  ;;  %v2490_v4 = vld [vmem:[#allocation7 + $0xc0] sm:$0xff] }
 0x8e1   :  { %v2204_v28 = vadd.f32 1.0, %v3899_v61  ;;  %2519 = vmatpush.msra.mxu2 %v2491_v16  ;;  %v2530_v61 = vld [vmem:[#allocation7 + $0xe8] sm:$0xff] }
 0x8e2   :  { %v2272_v29 = vadd.f32 %v2270_v56, %v1029_v55  ;;  %v2444_v31 = vpop.f32.mrf.mxu0  ;;  %v2323_v35 = vpop.permute.xlu0 %2322  ;;  %v2197_v37 = vmul.f32 0.044715, %v2195_v1  ;;  %v2529_v56 = vld [vmem:[#allocation7 + $0xe0] sm:$0xff] }
 0x8e3   :  { %v2445_v46 = vadd.f32 %v3787_v59, %v2444_v31  ;;  %v2250_v38 = vpop.permute.xlu1 %2249  ;;  %v2206_v24 = vmul.f32 0.5, %v2204_v28  ;;  %2520 = vmatpush.msra.mxu2 %v2490_v4  ;;  %v3785_v1 = vld [vmem:[%s5339_s9 + $0x2] ss:$0 sm:$0xff]  ;;  %v2316_v28 = vpop.f32.mrf.mxu2 }
 0x8e4   :  { %v2274_v22 = vmul.f32 0.7978846, %v2272_v29  ;;  %3698 = vpush %v2250_v38  ;;  %v2199_v63 = vadd.f32 %v2197_v37, %v2121_v44  ;;  %v2317_v31 = vadd.f32 %v3785_v1, %v2316_v28  ;;  %v3786_v38 = vld [vmem:[%s5339_s9 + $0x3] ss:$0 sm:$0xff]  ;;  %v2851_v28 = vld [vmem:[#allocation9 + $0x148] sm:$0xff] }
 0x8e5   :  { %3700 = vpush %v4950_v5  ;;  %2606 = vrot.lane.b32.xlu2 %v2445_v46, %s4151_s0  ;;  %3641 = vmatmul.msk.f32.vlgmr.msrb.gmra.mxu0 %vm328_vm1, %v2445_v46  ;;  %v2208_v51 = vmul.f32 %v2206_v24, %v2120_v26 }
 0x8e6   :  { %3900 = vtanh.f32 %v2274_v22  ;;  %3702 = vpush %v2323_v35  ;;  %v2201_v18 = vmul.f32 0.7978846, %v2199_v63  ;;  %v2389_v22 = vpop.f32.mrf.mxu3 }
 0x8e7   :  { %3621 = vmatmul.msk.f32.vlgmr.msrb.gmra.mxu1 %vm328_vm1, %v2208_v51  ;;  %v2390_v63 = vadd.f32 %v3786_v38, %v2389_v22 }
 0x8e8   :  { %3902 = vtanh.f32 %v2201_v18 }
 0x8ea   :  { %v2447_v11 = vpop.f32.mrf.mxu0  ;;  %v1298_v20 = vpop.permute.xlu0 %1297 }
 0x8eb   :  { %v5012_v40 = vadd.f32 %v3787_v59, %v2447_v11  ;;  %v1302_v13 = vsel %vm161_vm0, %v4758_v53, %v1298_v20  ;;  %v2330_v62 = vpop.permute.xlu1 %2329  ;;  %v2531_v59 = vld [vmem:[#allocation7 + $0xf0] sm:$0xff]  ;;  %v2454_v20 = vld [vmem:[#allocation7 + $0xb8] sm:$0xff] }
 0x8ec   :  { %v3901_v5 = vpop.eup %3900  ;;  %v2339_v0 = vmul.f32 %v1302_v13, %v1302_v13  ;;  %3704 = vpush %v2330_v62  ;;  %2478 = vmatpush.msra.mxu1 %v2454_v20  ;;  %v2452_v62 = vld [vmem:[#allocation7 + $0xa8] sm:$0xff] }
 0x8ed   :  { %3642 = vmatmul.msk.f32.gmra.mxu0 %vm328_vm1, %v5012_v40  ;;  %v2278_v10 = vadd.f32 1.0, %v3901_v5  ;;  %v2451_v5 = vld [vmem:[#allocation7 + $0xa0] sm:$0xff] }
 0x8ee   :  { %v3903_v26 = vpop.eup %3902  ;;  %v2341_v6 = vmul.f32 %v2339_v0, %v1302_v13  ;;  %v2605_v0 = vld [vmem:[#allocation10 + $0x138] sm:$0xff] }
 0x8ef   :  { %v2280_v21 = vmul.f32 0.5, %v2278_v10  ;;  %v2205_v17 = vadd.f32 1.0, %v3903_v26  ;;  %v2604_v10 = vld [vmem:[#allocation10 + $0x130] sm:$0xff]  ;;  %v2603_v26 = vld [vmem:[#allocation10 + $0x128] sm:$0xff] }
 0x8f0   :  { %v2343_v25 = vmul.f32 0.044715, %v2341_v6 }
 0x8f1   :  { %v2282_v39 = vmul.f32 %v2280_v21, %v1029_v55  ;;  %v2207_v3 = vmul.f32 0.5, %v2205_v17 }
 0x8f2   :  { %v2345_v50 = vadd.f32 %v2343_v25, %v1302_v13 }
 0x8f3   :  { %v2396_v14 = vpop.permute.xlu1 %2395  ;;  %3625 = vmatmul.msk.f32.gmra.mxu2 %vm328_vm1, %v2282_v39  ;;  %v2209_v53 = vmul.f32 %v2207_v3, %v2121_v44  ;;  %v2532_v44 = vld [vmem:[#allocation7 + $0xf8] sm:$0xff] }
 0x8f4   :  { %v2347_v15 = vmul.f32 0.7978846, %v2345_v50  ;;  %3706 = vpush %v2396_v14  ;;  %2556 = vmatpush.msra.mxu3 %v2532_v44 }
 0x8f5   :  { %3708 = vpush %v2403_v12  ;;  %3622 = vmatmul.msk.f32.gmra.mxu1 %vm328_vm1, %v2209_v53 }
 0x8f6   :  { %3904 = vtanh.f32 %v2347_v15  ;;  %2557 = vmatpush.msra.mxu3 %v2531_v59 }
 0x8f8   :  { %2558 = vmatpush.msra.mxu3 %v2530_v61 }
 0x8fa   :  { %2559 = vmatpush.msra.mxu3 %v2529_v56 }
 0x8fc   :  { %v3905_v34 = vpop.eup %3904 }
 0x8fd   :  { %v2351_v47 = vadd.f32 1.0, %v3905_v34 }
 0x8ff   :  { %v2353_v43 = vmul.f32 0.5, %v2351_v47 }
 0x901   :  { %v2355_v55 = vmul.f32 %v2353_v43, %v1302_v13  ;;  %v2453_v13 = vld [vmem:[#allocation7 + $0xb0] sm:$0xff] }
 0x902   :  { %2479 = vmatpush.msra.mxu1 %v2453_v13 }
 0x903   :  { %3628 = vmatmul.msk.f32.gmra.mxu3 %vm328_vm1, %v2355_v55 }
 0x904   :  { %2480 = vmatpush.msra.mxu1 %v2452_v62 }
 0x906   :  { %2481 = vmatpush.msra.mxu1 %v2451_v5 }
 0x908   :  { %2626 = vmatpush.msrb.mxu1 %v2605_v0 }
 0x90a   :  { %2627 = vmatpush.msrb.mxu1 %v2604_v10 }
 0x90c   :  { %2628 = vmatpush.msrb.mxu1 %v2603_v26 }
 0x90e   :  { %2629 = vmatpush.msrb.mxu1 %v2602_v41 }
 0x915   :  { %s5021_s27 = spop %3698 }
 0x916   :  { %s5023_s28 = spop %3700  ;;  %v2252_v21 = vstv %s5021_s27 }
 0x917   :  { %s5028_s19 = spop %3702  ;;  %v2259_v17 = vstv %s5023_s28 }
 0x918   :  { %v2325_v29 = vstv %s5028_s19  ;;  %v2261_v3 = vmul.f32 %v2259_v17, %v233_v30  ;;  %v2262_v19 = vmul.f32 %v2259_v17, %v234_v36  ;;  %v3114_v17 = vld [vmem:[#allocation9 + $0x160] sm:$0xff] }
 0x919   :  { %v2327_v37 = vmul.f32 %v2325_v29, %v2317_v31 }
 0x91d   :  { %s5031_s2 = spop %3704 }
 0x91e   :  { %v2332_v35 = vstv %s5031_s2 }
 0x91f   :  { %v2334_v46 = vmul.f32 %v2332_v35, %v275_v49  ;;  %v2335_v43 = vmul.f32 %v2332_v35, %v276_v57 }
 0x921   :  { %v2336_v24 = vadd.f32 %v2334_v46, %v2327_v37  ;;  %v3789_v37 = vld [vmem:[%s5335_s5 + $0x6] ss:$0 sm:$0xff] }
 0x923   :  { %3636 = vmatmul.msk.f32.vlgmr.msra.gmra.mxu2 %vm328_vm1, %v2336_v24 }
 0x925   :  { %s5040_s21 = spop %3706 }
 0x926   :  { %v2398_v51 = vstv %s5040_s21  ;;  %s5043_s4 = spop %3708 }
 0x927   :  { %v2400_v18 = vmul.f32 %v2398_v51, %v2390_v63  ;;  %v2405_v11 = vstv %s5043_s4 }
 0x928   :  { %v2407_v45 = vmul.f32 %v2405_v11, %v317_v42  ;;  %v3788_v42 = vld [vmem:[%s5339_s9 + $0x1] ss:$0 sm:$0xff]  ;;  %v2408_v4 = vmul.f32 %v2405_v11, %v318_v52  ;;  %v2852_v52 = vld [vmem:[#allocation9 + $0x150] sm:$0xff] }
 0x92a   :  { %v2409_v49 = vadd.f32 %v2407_v45, %v2400_v18 }
 0x92c   :  { %3639 = vmatmul.msk.f32.vlgmr.msra.gmra.mxu3 %vm328_vm1, %v2409_v49 }
 0x93f   :  { %v2607_v16 = vpop.permute.xlu2 %2606 }
 0x962   :  { %v2595_v6 = vpop.f32.mrf.mxu0 }
 0x963   :  { %2737 = vrot.lane.b32.xlu2 %v2595_v6, %s4154_s15 }
 0x964   :  { %v2243_v25 = vpop.f32.mrf.mxu1 }
 0x965   :  { %v2244_v39 = vadd.f32 %v3788_v42, %v2243_v25  ;;  %v3790_v25 = vld [vmem:[%s5335_s5 + $0x7] ss:$0 sm:$0xff] }
 0x967   :  { %v2254_v50 = vmul.f32 %v2252_v21, %v2244_v39 }
 0x969   :  { %v5057_v12 = vadd.f32 %v2261_v3, %v2254_v50 }
 0x96a   :  { %v2598_v14 = vpop.f32.mrf.mxu0 }
 0x96b   :  { %3645 = vmatpush.xpose.msk.msrb.mxu2 %vm161_vm0, %v2598_v14  ;;  %3633 = vmatmul.msk.f32.vlgmr.msra.gmra.mxu1 %vm328_vm1, %v5057_v12 }
 0x96f   :  { %3646 = vmatpush.xpose.msk.msrb.mxu2 %vm161_vm0, %v2595_v6  ;;  %v3116_v6 = vld [vmem:[#allocation9 + $0x170] sm:$0xff] }
 0x972   :  { %v2246_v53 = vpop.f32.mrf.mxu1 }
 0x973   :  { %v2247_v15 = vadd.f32 %v3788_v42, %v2246_v53  ;;  %2872 = vmatpush.msra.mxu2 %v2853_v48  ;;  %v3117_v42 = vld [vmem:[#allocation9 + $0x178] sm:$0xff] }
 0x975   :  { %v2255_v34 = vmul.f32 %v2252_v21, %v2247_v15  ;;  %2873 = vmatpush.msra.mxu2 %v2852_v52  ;;  %v3115_v21 = vld [vmem:[#allocation9 + $0x168] sm:$0xff] }
 0x976   :  { %v2319_v47 = vpop.f32.mrf.mxu2 }
 0x977   :  { %v5065_v27 = vadd.f32 %v2262_v19, %v2255_v34  ;;  %v2320_v30 = vadd.f32 %v3785_v1, %v2319_v47  ;;  %2874 = vmatpush.msra.mxu2 %v2851_v28  ;;  %v5137_v47 = vld [vmem:[#allocation4 + $0x30] sm:$0xff] }
 0x979   :  { %v2328_v2 = vmul.f32 %v2325_v29, %v2320_v30  ;;  %3634 = vmatmul.msk.f32.gmra.mxu1 %vm328_vm1, %v5065_v27  ;;  %v2850_v29 = vld [vmem:[#allocation9 + $0x140] sm:$0xff] }
 0x97a   :  { %2875 = vmatpush.msra.mxu2 %v2850_v29 }
 0x97b   :  { %v2337_v55 = vadd.f32 %v2335_v43, %v2328_v2 }
 0x97d   :  { %3637 = vmatmul.msk.f32.gmra.mxu2 %vm328_vm1, %v2337_v55 }
 0x981   :  { %3643 = vmatmul.msk.f32.vlgmr.msrb.gmra.mxu1 %vm328_vm1, %v2607_v16 }
 0x986   :  { %v2392_v33 = vpop.f32.mrf.mxu3 }
 0x987   :  { %v2393_v36 = vadd.f32 %v3786_v38, %v2392_v33 }
 0x989   :  { %v2401_v44 = vmul.f32 %v2398_v51, %v2393_v36  ;;  %v5141_v36 = vld [vmem:[#allocation4 + $0x38] sm:$0xff] }
 0x98b   :  { %v2410_v59 = vadd.f32 %v2408_v4, %v2401_v44 }
 0x98d   :  { %3640 = vmatmul.msk.f32.gmra.mxu3 %vm328_vm1, %v2410_v59 }
 0x9a6   :  { %v2522_v46 = vpop.f32.mrf.mxu2 }
 0x9a7   :  { %v2523_v38 = vadd.f32 %v3789_v37, %v2522_v46 }
 0x9af   :  { %v2561_v39 = vpop.f32.mrf.mxu3 }
 0x9b0   :  { %v2562_v3 = vadd.f32 %v3790_v25, %v2561_v39 }
 0x9bd   :  { %v2738_v22 = vpop.permute.xlu2 %2737 }
 0x9e8   :  { %v2483_v57 = vpop.f32.mrf.mxu1 }
 0x9e9   :  { %v2484_v61 = vadd.f32 %v3791_v54, %v2483_v57 }
 0x9eb   :  { %2639 = vrot.lane.b32.xlu0 %v2484_v61, %s4152_s30 }
 0x9f3   :  { %2608 = vrot.lane.b32.xlu0 %v5012_v40, %s4151_s0 }
 0x9f6   :  { %v2486_v56 = vpop.f32.mrf.mxu1 }
 0x9f7   :  { %v2487_v1 = vadd.f32 %v3791_v54, %v2486_v56 }
 0x9f9   :  { %2641 = vrot.lane.b32.xlu1 %v2487_v1, %s4152_s30 }
 0x9fb   :  { %2733 = vrot.lane.b32.xlu0 %v2484_v61, %s4153_s14 }
 0x9fe   :  { %v5110_v45 = vpop.f32.mrf.mxu1 }
 0xa00   :  { %v2525_v63 = vpop.f32.mrf.mxu2 }
 0xa01   :  { %2739 = vrot.lane.b32.xlu1 %v2598_v14, %s4154_s15  ;;  %v2526_v51 = vadd.f32 %v3789_v37, %v2525_v63 }
 0xa09   :  { %2735 = vrot.lane.b32.xlu1 %v2487_v1, %s4153_s14 }
 0xa10   :  { %v2564_v50 = vpop.f32.mrf.mxu3 }
 0xa11   :  { %v5133_v14 = vadd.f32 %v3790_v25, %v2564_v50 }
 0xa5d   :  { %v5086_v31 = vpop.permute.xlu0 %2639 }
 0xa5e   :  { %3647 = vmatmul.msk.f32.vlgmr.msrb.gmra.mxu2 %vm161_vm0, %v5086_v31 }
 0xa65   :  { %v2609_v40 = vpop.permute.xlu0 %2608 }
 0xa66   :  { %3644 = vmatmul.msk.f32.gmra.mxu1 %vm328_vm1, %v2609_v40 }
 0xa6b   :  { %v5091_v35 = vpop.permute.xlu1 %2641 }
 0xa6c   :  { %3648 = vmatmul.msk.f32.gmra.mxu2 %vm161_vm0, %v5091_v35 }
 0xa6d   :  { %v5101_v18 = vpop.permute.xlu0 %2733 }
 0xa73   :  { %v2740_v24 = vpop.permute.xlu1 %2739 }
 0xa74   :  { %3651 = vmatpush.xpose.msk.msra.mxu0 %vm161_vm0, %v2740_v24  ;;  %3657 = vmatmul.msk.f32.vlgmr.msra.gmra.mxu2 %vm328_vm1, %v2523_v38  ;;  %v2886_v24 = vld [vmem:[#allocation10 + $0x150] sm:$0xff] }
 0xa78   :  { %3652 = vmatpush.xpose.msk.msra.mxu0 %vm161_vm0, %v2738_v22 }
 0xa7b   :  { %3653 = vmatmul.msk.f32.vlgmr.msra.gmra.mxu0 %vm161_vm0, %v5101_v18  ;;  %v5106_v11 = vpop.permute.xlu1 %2735 }
 0xa7c   :  { %3658 = vmatmul.msk.f32.gmra.mxu2 %vm328_vm1, %v2526_v51 }
 0xa83   :  { %3654 = vmatmul.msk.f32.gmra.mxu0 %vm161_vm0, %v5106_v11 }
 0xae1   :  { %v2670_v49 = vpop.f32.mrf.mxu2 }
 0xae2   :  { %v2676_v20 = vsel %vm1413_vm8, %v2670_v49, -1e+30  ;;  %v2884_v49 = vld [vmem:[#allocation10 + $0x140] sm:$0xff] }
 0xae3   :  { %v5114_v13 = vpop.f32.mrf.mxu1  ;;  %v2678_v62 = vsel %vm161_vm0, %v2676_v20, -inf }
 0xae4   :  { %2679 = vmax.xlane.f32.xlu2 %v2678_v62  ;;  %2724 = vmatpush.msrb.mxu3 %v5114_v13  ;;  %v3761_v46 = vpack.i.bf16 %v5110_v45, %v5114_v13 }
 0xae6   :  { %2725 = vmatpush.msrb.mxu3 %v5110_v45 }
 0xaef   :  { %v2673_v5 = vpop.f32.mrf.mxu2 }
 0xaf0   :  { %v2677_v0 = vsel %vm1414_vm9, %v2673_v5, -1e+30 }
 0xaf1   :  { %v2681_v10 = vsel %vm161_vm0, %v2677_v0, -inf }
 0xaf2   :  { %2682 = vmax.xlane.f32.xlu0 %v2681_v10 }
 0xaf7   :  { %v2877_v26 = vpop.f32.mrf.mxu2 }
 0xaf8   :  { %v2766_v44 = vpop.f32.mrf.mxu0 }
 0xaf9   :  { %v2772_v54 = vsel %vm1413_vm8, %v2766_v44, -1e+30 }
 0xafa   :  { %v2774_v57 = vsel %vm161_vm0, %v2772_v54, -inf }
 0xaff   :  { %v2880_v41 = vpop.f32.mrf.mxu2 }
 0xb00   :  { %3661 = vmatpush.xpose.msk.msrb.mxu0 %vm161_vm0, %v2880_v41  ;;  %v2769_v61 = vpop.f32.mrf.mxu0 }
 0xb01   :  { %v2773_v56 = vsel %vm1414_vm9, %v2769_v61, -1e+30 }
 0xb02   :  { %v2777_v1 = vsel %vm161_vm0, %v2773_v56, -inf }
 0xb04   :  { %3662 = vmatpush.xpose.msk.msrb.mxu0 %vm161_vm0, %v2877_v26 }
 0xb06   :  { %2888 = vrot.lane.b32.xlu0 %v2523_v38, %s4151_s0  ;;  %v2887_v38 = vld [vmem:[#allocation10 + $0x158] sm:$0xff] }
 0xb07   :  { %3663 = vmatmul.msk.f32.vlgmr.msrb.gmra.mxu0 %vm161_vm0, %v5086_v31  ;;  %2908 = vmatpush.msra.mxu3 %v2887_v38 }
 0xb08   :  { %3136 = vmatpush.msra.mxu0 %v3117_v42 }
 0xb09   :  { %2909 = vmatpush.msra.mxu3 %v2886_v24 }
 0xb0a   :  { %3137 = vmatpush.msra.mxu0 %v3116_v6 }
 0xb0c   :  { %3138 = vmatpush.msra.mxu0 %v3115_v21 }
 0xb0e   :  { %3139 = vmatpush.msra.mxu0 %v3114_v17 }
 0xb0f   :  { %3664 = vmatmul.msk.f32.gmra.mxu0 %vm161_vm0, %v5091_v35 }
 0xb17   :  { %3673 = vmatmul.msk.f32.vlgmr.msra.gmra.mxu0 %vm328_vm1, %v2562_v3 }
 0xb1f   :  { %3674 = vmatmul.msk.f32.gmra.mxu0 %vm328_vm1, %v5133_v14 }
 0xb57   :  { %v2680_v53 = vpop.xlane.xlu2 %2679 }
 0xb58   :  { %v2684_v15 = vsub.f32 %v2676_v20, %v2680_v53 }
 0xb5a   :  { %v2686_v19 = vmul.f32 1.442695, %v2684_v15 }
 0xb5c   :  { %3906 = vpow2.f32 %v2686_v19 }
 0xb62   :  { %v3907_v34 = vpop.eup %3906 }
 0xb63   :  { %v2690_v30 = vmul.f32 %v5137_v47, %v3907_v34 }
 0xb65   :  { %v2683_v43 = vpop.xlane.xlu0 %2682  ;;  %v2692_v2 = vsel %vm161_vm0, %v2690_v30, 0.0 }
 0xb66   :  { %v2685_v55 = vsub.f32 %v2677_v0, %v2683_v43  ;;  %2693 = vadd.xlane.f32.xlu1 %v2692_v2 }
 0xb68   :  { %v2688_v16 = vmul.f32 1.442695, %v2685_v55 }
 0xb6a   :  { %3908 = vpow2.f32 %v2688_v16 }
 0xb70   :  { %v3909_v33 = vpop.eup %3908 }
 0xb71   :  { %v2691_v4 = vmul.f32 %v5141_v36, %v3909_v33 }
 0xb73   :  { %v2695_v59 = vsel %vm161_vm0, %v2691_v4, 0.0 }
 0xb74   :  { %2696 = vadd.xlane.f32.xlu2 %v2695_v59 }
 0xb7c   :  { %2775 = vmax.xlane.f32.xlu2 %v2774_v57 }
 0xb7f   :  { %2890 = vrot.lane.b32.xlu1 %v2526_v51, %s4151_s0  ;;  %v2885_v51 = vld [vmem:[#allocation10 + $0x148] sm:$0xff] }
 0xb80   :  { %2910 = vmatpush.msra.mxu3 %v2885_v51 }
 0xb82   :  { %2911 = vmatpush.msra.mxu3 %v2884_v49  ;;  %v3151_v49 = vld [vmem:[#allocation10 + $0x178] sm:$0xff] }
 0xb84   :  { %v2942_v48 = vpop.f32.mrf.mxu0  ;;  %2778 = vmax.xlane.f32.xlu2 %v2777_v1 }
 0xb85   :  { %v2948_v52 = vsel %vm1688_vm10, %v2942_v48, -1e+30 }
 0xb86   :  { %v2950_v28 = vsel %vm161_vm0, %v2948_v52, -inf }
 0xb87   :  { %2951 = vmax.xlane.f32.xlu0 %v2950_v28 }
 0xb8c   :  { %v2945_v58 = vpop.f32.mrf.mxu0 }
 0xb8d   :  { %v5161_v23 = vsel %vm1689_vm11, %v2945_v58, -1e+30 }
 0xb8e   :  { %v2953_v40 = vsel %vm161_vm0, %v5161_v23, -inf }
 0xb94   :  { %v5156_v29 = vpop.f32.mrf.mxu0 }
 0xb9c   :  { %3007 = vrot.lane.b32.xlu2 %v2880_v41, %s4154_s15  ;;  %v3144_v37 = vpop.f32.mrf.mxu0  ;;  %v2889_v41 = vpop.permute.xlu0 %2888 }
 0xba4   :  { %3005 = vrot.lane.b32.xlu2 %v2877_v26, %s4154_s15 }
 0xba9   :  { %2954 = vmax.xlane.f32.xlu1 %v2953_v40 }
 0xbac   :  { %3271 = vrot.lane.b32.xlu2 %v3144_v37, %s4154_s15 }
 0xbb4   :  { %3269 = vrot.lane.b32.xlu2 %v5156_v29, %s4154_s15 }
 0xbbc   :  { %3762 = vrot.lane.b32.xlu2 %v3761_v46, %s4154_s15 }
 0xbc4   :  { %3152 = vrot.lane.b32.xlu2 %v2562_v3, %s4151_s0 }
 0xbd9   :  { %v2694_v22 = vpop.xlane.xlu1 %2693 }
 0xbda   :  { %v2698_v63 = vadd.f32 1e-30, %v2694_v22 }
 0xbdc   :  { %3910 = vrcp.f32 %v2698_v63 }
 0xbe2   :  { %v3911_v20 = vpop.eup %3910 }
 0xbe3   :  { %v2702_v62 = vmul.f32 %v3911_v20, %v2690_v30 }
 0xbe5   :  { %3649 = vmatmul.msk.f32.vlgmr.msrb.gmra.mxu3 %vm161_vm0, %v2702_v62  ;;  %v3150_v62 = vld [vmem:[#allocation10 + $0x170] sm:$0xff] }
 0xbe7   :  { %v2697_v45 = vpop.xlane.xlu2 %2696 }
 0xbe8   :  { %v2699_v13 = vadd.f32 1e-30, %v2697_v45  ;;  %v3149_v45 = vld [vmem:[#allocation10 + $0x168] sm:$0xff] }
 0xbea   :  { %3912 = vrcp.f32 %v2699_v13 }
 0xbef   :  { %v2776_v5 = vpop.xlane.xlu2 %2775 }
 0xbf0   :  { %v3913_v0 = vpop.eup %3912  ;;  %v2780_v10 = vsub.f32 %v2772_v54, %v2776_v5 }
 0xbf1   :  { %v2703_v26 = vmul.f32 %v3913_v0, %v2691_v4  ;;  %v2891_v30 = vpop.permute.xlu1 %2890  ;;  %v3148_v0 = vld [vmem:[#allocation10 + $0x160] sm:$0xff] }
 0xbf2   :  { %v2782_v42 = vmul.f32 1.442695, %v2780_v10 }
 0xbf3   :  { %3650 = vmatmul.msk.f32.gmra.mxu3 %vm161_vm0, %v2703_v26 }
 0xbf4   :  { %3914 = vpow2.f32 %v2782_v42 }
 0xbf7   :  { %v2779_v6 = vpop.xlane.xlu2 %2778 }
 0xbf8   :  { %v2781_v21 = vsub.f32 %v2773_v56, %v2779_v6 }
 0xbfa   :  { %v3915_v17 = vpop.eup %3914  ;;  %v2784_v25 = vmul.f32 1.442695, %v2781_v21  ;;  %v2952_v39 = vpop.xlane.xlu0 %2951 }
 0xbfb   :  { %v2956_v3 = vsub.f32 %v2948_v52, %v2952_v39  ;;  %3659 = vmatmul.msk.f32.vlgmr.msra.gmra.mxu3 %vm328_vm1, %v2889_v41  ;;  %v2786_v50 = vmul.f32 %v5137_v47, %v3915_v17  ;;  %v5181_v47 = vld [vmem:[#allocation4 + $0x40] sm:$0xff] }
 0xbfc   :  { %3916 = vpow2.f32 %v2784_v25 }
 0xbfd   :  { %v2958_v53 = vmul.f32 1.442695, %v2956_v3  ;;  %v2788_v15 = vsel %vm161_vm0, %v2786_v50, 0.0 }
 0xbfe   :  { %2789 = vadd.xlane.f32.xlu0 %v2788_v15 }
 0xbff   :  { %3918 = vpow2.f32 %v2958_v53  ;;  %v3008_v19 = vpop.permute.xlu2 %3007 }
 0xc00   :  { %3667 = vmatpush.xpose.msk.msrb.mxu2 %vm161_vm0, %v3008_v19 }
 0xc02   :  { %v3917_v34 = vpop.eup %3916 }
 0xc03   :  { %3660 = vmatmul.msk.f32.gmra.mxu3 %vm328_vm1, %v2891_v30  ;;  %v2787_v43 = vmul.f32 %v5141_v36, %v3917_v34 }
 0xc05   :  { %v3919_v2 = vpop.eup %3918  ;;  %v2791_v55 = vsel %vm161_vm0, %v2787_v43, 0.0 }
 0xc06   :  { %2792 = vadd.xlane.f32.xlu1 %v2791_v55  ;;  %v2962_v16 = vmul.f32 %v5181_v47, %v3919_v2 }
 0xc07   :  { %v3006_v33 = vpop.permute.xlu2 %3005 }
 0xc08   :  { %3668 = vmatpush.xpose.msk.msrb.mxu2 %vm161_vm0, %v3006_v33  ;;  %v2964_v4 = vsel %vm161_vm0, %v2962_v16, 0.0 }
 0xc09   :  { %2965 = vadd.xlane.f32.xlu0 %v2964_v4 }
 0xc0b   :  { %3669 = vmatmul.msk.f32.vlgmr.msrb.gmra.mxu2 %vm161_vm0, %v5101_v18 }
 0xc0c   :  { %3677 = vmatpush.xpose.msk.msra.mxu2 %vm161_vm0, %v3144_v37 }
 0xc0f   :  { %v3272_v36 = vpop.permute.xlu2 %3271 }
 0xc10   :  { %3678 = vmatpush.xpose.msk.msra.mxu2 %vm161_vm0, %v5156_v29  ;;  %3683 = vmatpush.xpose.msk.msrb.mxu0 %vm161_vm0, %v3272_v36 }
 0xc13   :  { %3670 = vmatmul.msk.f32.gmra.mxu2 %vm161_vm0, %v5106_v11 }
 0xc17   :  { %v3270_v44 = vpop.permute.xlu2 %3269 }
 0xc18   :  { %3684 = vmatpush.xpose.msk.msrb.mxu0 %vm161_vm0, %v3270_v44 }
 0xc1b   :  { %3679 = vmatmul.msk.f32.vlgmr.msra.gmra.mxu2 %vm161_vm0, %v5086_v31  ;;  %3685 = vmatmul.msk.f32.vlgmr.msrb.gmra.mxu0 %vm161_vm0, %v5101_v18  ;;  %v5206_v18 = vld [vmem:[#allocation4 + $0x48] sm:$0xff] }
 0xc1c   :  { %v2955_v59 = vpop.xlane.xlu1 %2954 }
 0xc1d   :  { %v2957_v54 = vsub.f32 %v5161_v23, %v2955_v59  ;;  %3154 = vrot.lane.b32.xlu0 %v5133_v14, %s4151_s0 }
 0xc1f   :  { %v2960_v57 = vmul.f32 1.442695, %v2957_v54  ;;  %v3763_v61 = vpop.permute.xlu2 %3762 }
 0xc20   :  { %v3764_v56 = vunpack.i.l.bf16 %v3763_v61  ;;  %v3765_v1 = vunpack.i.h.bf16 %v3763_v61 }
 0xc21   :  { %3920 = vpow2.f32 %v2960_v57 }
 0xc22   :  { %2828 = vmatpush.msra.mxu1 %v3764_v56 }
 0xc23   :  { %3680 = vmatmul.msk.f32.gmra.mxu2 %vm161_vm0, %v5091_v35  ;;  %3686 = vmatmul.msk.f32.gmra.mxu0 %vm161_vm0, %v5106_v11 }
 0xc24   :  { %2829 = vmatpush.msra.mxu1 %v3765_v1 }
 0xc27   :  { %v3921_v31 = vpop.eup %3920  ;;  %v3153_v2 = vpop.permute.xlu2 %3152 }
 0xc28   :  { %v2963_v48 = vmul.f32 %v5206_v18, %v3921_v31 }
 0xc2a   :  { %v2967_v14 = vsel %vm161_vm0, %v2963_v48, 0.0 }
 0xc2b   :  { %2968 = vadd.xlane.f32.xlu1 %v2967_v14 }
 0xc68   :  { %v5210_v52 = vpop.f32.mrf.mxu3 }
 0xc71   :  { %v2790_v28 = vpop.xlane.xlu0 %2789 }
 0xc72   :  { %v2794_v58 = vadd.f32 1e-30, %v2790_v28 }
 0xc74   :  { %3922 = vrcp.f32 %v2794_v58 }
 0xc76   :  { %v5212_v29 = vpop.f32.mrf.mxu3 }
 0xc79   :  { %v2793_v35 = vpop.xlane.xlu1 %2792 }
 0xc7a   :  { %v3923_v23 = vpop.eup %3922  ;;  %v2795_v40 = vadd.f32 1e-30, %v2793_v35 }
 0xc7b   :  { %v2798_v11 = vmul.f32 %v3923_v23, %v2786_v50 }
 0xc7c   :  { %3924 = vrcp.f32 %v2795_v40  ;;  %v2966_v37 = vpop.xlane.xlu0 %2965 }
 0xc7d   :  { %3655 = vmatmul.msk.f32.vlgmr.msra.gmra.mxu1 %vm161_vm0, %v2798_v11  ;;  %v2970_v46 = vadd.f32 1e-30, %v2966_v37 }
 0xc7e   :  { %v5215_v38 = vpop.f32.mrf.mxu3 }
 0xc7f   :  { %3926 = vrcp.f32 %v2970_v46  ;;  %v3963_v46 = vld [vmem:[#allocation4 + $0x50] sm:$0xff] }
 0xc82   :  { %v3925_v24 = vpop.eup %3924 }
 0xc83   :  { %v2799_v22 = vmul.f32 %v3925_v24, %v2787_v43 }
 0xc85   :  { %3656 = vmatmul.msk.f32.gmra.mxu1 %vm161_vm0, %v2799_v22  ;;  %v3927_v51 = vpop.eup %3926 }
 0xc86   :  { %v5218_v63 = vpop.f32.mrf.mxu3  ;;  %v2974_v20 = vmul.f32 %v3927_v51, %v2962_v16 }
 0xc87   :  { %2996 = vmatpush.msrb.mxu1 %v5218_v63 }
 0xc89   :  { %2997 = vmatpush.msrb.mxu1 %v5215_v38 }
 0xc8b   :  { %3172 = vmatpush.msra.mxu1 %v3151_v49 }
 0xc8d   :  { %3665 = vmatmul.msk.f32.vlgmr.msrb.gmra.mxu1 %vm161_vm0, %v2974_v20 }
 0xc8e   :  { %v3030_v13 = vpop.f32.mrf.mxu2  ;;  %3173 = vmatpush.msra.mxu1 %v3150_v62 }
 0xc8f   :  { %v3036_v5 = vsel %vm1688_vm10, %v3030_v13, -1e+30  ;;  %v3155_v55 = vpop.permute.xlu0 %3154 }
 0xc90   :  { %v3038_v10 = vsel %vm161_vm0, %v3036_v5, -inf  ;;  %3174 = vmatpush.msra.mxu1 %v3149_v45  ;;  %v3964_v45 = vld [vmem:[#allocation4 + $0x58] sm:$0xff] }
 0xc91   :  { %3039 = vmax.xlane.f32.xlu1 %v3038_v10 }
 0xc92   :  { %3175 = vmatpush.msra.mxu1 %v3148_v0 }
 0xc96   :  { %v3033_v26 = vpop.f32.mrf.mxu2 }
 0xc97   :  { %v3037_v41 = vsel %vm1689_vm11, %v3033_v26, -1e+30 }
 0xc98   :  { %v3294_v42 = vpop.f32.mrf.mxu0  ;;  %v3041_v6 = vsel %vm161_vm0, %v3037_v41, -inf }
 0xc99   :  { %v3300_v21 = vsel %vm1955_vm12, %v3294_v42, -1e+30  ;;  %3042 = vmax.xlane.f32.xlu2 %v3041_v6 }
 0xc9a   :  { %v3302_v8 = vsel %vm161_vm0, %v3300_v21, -inf }
 0xc9b   :  { %3303 = vmax.xlane.f32.xlu1 %v3302_v8 }
 0xc9e   :  { %v3206_v17 = vpop.f32.mrf.mxu2  ;;  %v2969_v25 = vpop.xlane.xlu1 %2968 }
 0xc9f   :  { %v3212_v39 = vsel %vm1955_vm12, %v3206_v17, -1e+30  ;;  %v2971_v3 = vadd.f32 1e-30, %v2969_v25  ;;  %v3766_v17 = vpack.i.bf16 %v5215_v38, %v5218_v63 }
 0xca0   :  { %v3297_v50 = vpop.f32.mrf.mxu0  ;;  %v3214_v15 = vsel %vm161_vm0, %v3212_v39, -inf }
 0xca1   :  { %3928 = vrcp.f32 %v2971_v3  ;;  %v3301_v60 = vsel %vm1956_vm13, %v3297_v50, -1e+30 }
 0xca2   :  { %v3305_v53 = vsel %vm161_vm0, %v3301_v60, -inf }
 0xca3   :  { %3306 = vmax.xlane.f32.xlu0 %v3305_v53  ;;  %3215 = vmax.xlane.f32.xlu1 %v3214_v15 }
 0xca6   :  { %v3209_v19 = vpop.f32.mrf.mxu2 }
 0xca7   :  { %v3929_v34 = vpop.eup %3928  ;;  %v3213_v30 = vsel %vm1956_vm13, %v3209_v19, -1e+30 }
 0xca8   :  { %v2975_v43 = vmul.f32 %v3929_v34, %v2963_v48  ;;  %v3217_v9 = vsel %vm161_vm0, %v3213_v30, -inf }
 0xcaa   :  { %3666 = vmatmul.msk.f32.gmra.mxu1 %vm161_vm0, %v2975_v43 }
 0xcab   :  { %3218 = vmax.xlane.f32.xlu1 %v3217_v9 }
 0xcb2   :  { %3675 = vmatmul.msk.f32.vlgmr.msra.gmra.mxu1 %vm328_vm1, %v3153_v2 }
 0xcba   :  { %3676 = vmatmul.msk.f32.gmra.mxu1 %vm328_vm1, %v3155_v55 }
 0xcfa   :  { %v2831_v36 = vpop.f32.mrf.mxu1 }
 0xd02   :  { %v2834_v48 = vpop.f32.mrf.mxu1 }
 0xd04   :  { %v3040_v16 = vpop.xlane.xlu1 %3039 }
 0xd05   :  { %v3044_v33 = vsub.f32 %v3036_v5, %v3040_v16 }
 0xd07   :  { %v3046_v4 = vmul.f32 1.442695, %v3044_v33 }
 0xd09   :  { %3930 = vpow2.f32 %v3046_v4 }
 0xd0a   :  { %v5258_v20 = vpop.f32.mrf.mxu1 }
 0xd0c   :  { %v3043_v44 = vpop.xlane.xlu2 %3042 }
 0xd0d   :  { %v3045_v32 = vsub.f32 %v3037_v41, %v3043_v44 }
 0xd0e   :  { %v3304_v59 = vpop.xlane.xlu1 %3303 }
 0xd0f   :  { %v3931_v54 = vpop.eup %3930  ;;  %v3048_v57 = vmul.f32 1.442695, %v3045_v32  ;;  %v3308_v61 = vsub.f32 %v3300_v21, %v3304_v59 }
 0xd10   :  { %v5245_v56 = vmul.f32 %v5181_v47, %v3931_v54 }
 0xd11   :  { %3932 = vpow2.f32 %v3048_v57  ;;  %v3310_v1 = vmul.f32 1.442695, %v3308_v61 }
 0xd12   :  { %v3052_v31 = vsel %vm161_vm0, %v5245_v56, 0.0 }
 0xd13   :  { %3934 = vpow2.f32 %v3310_v1  ;;  %3053 = vadd.xlane.f32.xlu1 %v3052_v31 }
 0xd16   :  { %v3307_v14 = vpop.xlane.xlu0 %3306  ;;  %v3216_v28 = vpop.xlane.xlu1 %3215 }
 0xd17   :  { %v3933_v58 = vpop.eup %3932  ;;  %v3309_v35 = vsub.f32 %v3301_v60, %v3307_v14  ;;  %v3220_v23 = vsub.f32 %v3212_v39, %v3216_v28 }
 0xd18   :  { %v5250_v40 = vmul.f32 %v5206_v18, %v3933_v58 }
 0xd19   :  { %v3935_v11 = vpop.eup %3934  ;;  %v3312_v37 = vmul.f32 1.442695, %v3309_v35  ;;  %v3222_v22 = vmul.f32 1.442695, %v3220_v23 }
 0xd1a   :  { %v3055_v47 = vsel %vm161_vm0, %v5250_v40, 0.0  ;;  %v5254_v24 = vmul.f32 %v3963_v46, %v3935_v11 }
 0xd1b   :  { %3936 = vpow2.f32 %v3312_v37  ;;  %3056 = vadd.xlane.f32.xlu1 %v3055_v47  ;;  %v3442_v37 = vrot.slane %v4274_v7, 1  ;;  %v3965_v47 = vld [vmem:[%s5340_s10] sm:$0x3] }
 0xd1c   :  { %v3316_v51 = vsel %vm161_vm0, %v5254_v24, 0.0  ;;  %3938 = vpow2.f32 %v3222_v22  ;;  %v3399_v22 = vld [vmem:[#allocation12 + $0xb8] sm:$0xff] }
 0xd1d   :  { %3317 = vadd.xlane.f32.xlu2 %v3316_v51  ;;  %3423 = vmatpush.msrb.mxu2 %v3399_v22  ;;  %v3398_v51 = vld [vmem:[#allocation12 + $0xb0] sm:$0xff] }
 0xd1e   :  { %v3219_v49 = vpop.xlane.xlu1 %3218 }
 0xd1f   :  { %v3221_v18 = vsub.f32 %v3213_v30, %v3219_v49  ;;  %3424 = vmatpush.msrb.mxu2 %v3398_v51  ;;  %v3397_v49 = vld [vmem:[#allocation12 + $0xa8] sm:$0xff] }
 0xd21   :  { %v3937_v62 = vpop.eup %3936  ;;  %v3224_v5 = vmul.f32 1.442695, %v3221_v18  ;;  %3425 = vmatpush.msrb.mxu2 %v3397_v49 }
 0xd22   :  { %v3315_v13 = vmul.f32 %v3964_v45, %v3937_v62  ;;  %v3939_v10 = vpop.eup %3938  ;;  %v3396_v62 = vld [vmem:[#allocation12 + $0xa0] sm:$0xff] }
 0xd23   :  { %3940 = vpow2.f32 %v3224_v5  ;;  %v3226_v41 = vmul.f32 %v3963_v46, %v3939_v10  ;;  %v3434_v46 = vrot.slane %v3965_v47, 1  ;;  %3426 = vmatpush.msrb.mxu2 %v3396_v62 }
 0xd24   :  { %v3319_v0 = vsel %vm161_vm0, %v3315_v13, 0.0 }
 0xd25   :  { %3320 = vadd.xlane.f32.xlu2 %v3319_v0  ;;  %v3228_v42 = vsel %vm161_vm0, %v3226_v41, 0.0 }
 0xd27   :  { %v5261_v26 = vpop.f32.mrf.mxu1 }
 0xd29   :  { %v3941_v6 = vpop.eup %3940 }
 0xd2a   :  { %v3227_v8 = vmul.f32 %v3964_v45, %v3941_v6 }
 0xd2c   :  { %v3231_v25 = vsel %vm161_vm0, %v3227_v8, 0.0 }
 0xd2d   :  { %3229 = vadd.xlane.f32.xlu2 %v3228_v42 }
 0xd2f   :  { %v3177_v21 = vpop.f32.mrf.mxu1 }
 0xd34   :  { %3767 = vrot.lane.b32.xlu1 %v3766_v17, %s4154_s15 }
 0xd35   :  { %3232 = vadd.xlane.f32.xlu2 %v3231_v25 }
 0xd37   :  { %v3180_v39 = vpop.f32.mrf.mxu1 }
 0xd38   :  { %v3771_v3 = vpack.i.bf16 %v3177_v21, %v3180_v39 }
 0xd3a   :  { %3772 = vrot.lane.b32.xlu0 %v3771_v3, %s4154_s15 }
 0xd3c   :  { %2839 = vrot.lane.b32.xlu1 %v2831_v36, %s4155_s1 }
 0xd44   :  { %2841 = vrot.lane.b32.xlu1 %v2834_v48, %s4155_s1 }
 0xd86   :  { %v3054_v50 = vpop.xlane.xlu1 %3053 }
 0xd87   :  { %v3058_v53 = vadd.f32 1e-30, %v3054_v50 }
 0xd89   :  { %3942 = vrcp.f32 %v3058_v53 }
 0xd8e   :  { %v3057_v15 = vpop.xlane.xlu1 %3056 }
 0xd8f   :  { %v3059_v63 = vadd.f32 1e-30, %v3057_v15  ;;  %v3943_v30 = vpop.eup %3942 }
 0xd90   :  { %v3318_v60 = vpop.xlane.xlu2 %3317  ;;  %v3062_v55 = vmul.f32 %v3943_v30, %v5245_v56 }
 0xd91   :  { %v3322_v38 = vadd.f32 1e-30, %v3318_v60 }
 0xd93   :  { %3944 = vrcp.f32 %v3322_v38 }
 0xd94   :  { %3946 = vrcp.f32 %v3059_v63 }
 0xd98   :  { %v3321_v19 = vpop.xlane.xlu2 %3320 }
 0xd99   :  { %v3323_v16 = vadd.f32 1e-30, %v3321_v19  ;;  %v3945_v4 = vpop.eup %3944 }
 0xd9a   :  { %v3947_v32 = vpop.eup %3946  ;;  %v3326_v54 = vmul.f32 %v3945_v4, %v5254_v24 }
 0xd9b   :  { %3948 = vrcp.f32 %v3323_v16  ;;  %v3063_v61 = vmul.f32 %v3947_v32, %v5250_v40  ;;  %v3454_v32 = vld [vmem:[%s5341_s11 + $0x10] sm:$0xff] }
 0xda0   :  { %v3230_v9 = vpop.xlane.xlu2 %3229 }
 0xda1   :  { %v3234_v36 = vadd.f32 1e-30, %v3230_v9  ;;  %v3949_v56 = vpop.eup %3948 }
 0xda2   :  { %v3327_v48 = vmul.f32 %v3949_v56, %v3315_v13 }
 0xda3   :  { %3950 = vrcp.f32 %v3234_v36 }
 0xda6   :  { %v3768_v34 = vpop.permute.xlu1 %3767 }
 0xda7   :  { %v3769_v43 = vunpack.i.l.bf16 %v3768_v34  ;;  %v3770_v2 = vunpack.i.h.bf16 %v3768_v34 }
 0xda8   :  { %v3233_v57 = vpop.xlane.xlu2 %3232 }
 0xda9   :  { %3092 = vmatpush.msrb.mxu3 %v3769_v43  ;;  %v3235_v1 = vadd.f32 1e-30, %v3233_v57  ;;  %v3951_v31 = vpop.eup %3950  ;;  %v3792_v57 = vld [vmem:[%s5339_s9 + $0x5] ss:$0 sm:$0xff] }
 0xdaa   :  { %v3238_v14 = vmul.f32 %v3951_v31, %v3226_v41 }
 0xdab   :  { %3093 = vmatpush.msrb.mxu3 %v3770_v2  ;;  %3952 = vrcp.f32 %v3235_v1 }
 0xdac   :  { %v3773_v33 = vpop.permute.xlu0 %3772  ;;  %3671 = vmatmul.msk.f32.vlgmr.msrb.gmra.mxu3 %vm161_vm0, %v3062_v55 }
 0xdad   :  { %v3774_v44 = vunpack.i.l.bf16 %v3773_v33  ;;  %3260 = vmatpush.msra.mxu3 %v3180_v39  ;;  %v3775_v59 = vunpack.i.h.bf16 %v3773_v33 }
 0xdae   :  { %v2840_v24 = vpop.permute.xlu1 %2839 }
 0xdaf   :  { %3261 = vmatpush.msra.mxu3 %v3177_v21  ;;  %3356 = vmatpush.msrb.mxu1 %v3774_v44  ;;  %v2845_v45 = vsel %vm161_vm0, %v5210_v52, %v2840_v24  ;;  %v3455_v44 = vld [vmem:[%s5341_s11 + $0x18] sm:$0xff] }
 0xdb1   :  { %3357 = vmatpush.msrb.mxu1 %v3775_v59  ;;  %v3953_v28 = vpop.eup %3952  ;;  %3478 = vmatpush.msrb.mxu3 %v3455_v44  ;;  %v3453_v59 = vld [vmem:[%s5341_s11 + $0x8] sm:$0xff] }
 0xdb2   :  { %3687 = vmatmul.msk.f32.vlgmr.msrb.gmra.mxu1 %vm161_vm0, %v3326_v54  ;;  %v3239_v58 = vmul.f32 %v3953_v28, %v3227_v8  ;;  %v3452_v54 = vld [vmem:[%s5341_s11] sm:$0xff] }
 0xdb3   :  { %3479 = vmatpush.msrb.mxu3 %v3454_v32 }
 0xdb4   :  { %3672 = vmatmul.msk.f32.gmra.mxu3 %vm161_vm0, %v3063_v61 }
 0xdb5   :  { %3480 = vmatpush.msrb.mxu3 %v3453_v59 }
 0xdb6   :  { %v2842_v13 = vpop.permute.xlu1 %2841 }
 0xdb7   :  { %v2846_v39 = vsel %vm161_vm0, %v5212_v29, %v2842_v13  ;;  %3481 = vmatpush.msrb.mxu3 %v3452_v54 }
 0xdba   :  { %3688 = vmatmul.msk.f32.gmra.mxu1 %vm161_vm0, %v3327_v48 }
 0xdbc   :  { %3681 = vmatmul.msk.f32.vlgmr.msra.gmra.mxu3 %vm161_vm0, %v3238_v14 }
 0xdc4   :  { %3682 = vmatmul.msk.f32.gmra.mxu3 %vm161_vm0, %v3239_v58 }
 0xe2f   :  { %v3095_v35 = vpop.f32.mrf.mxu3  ;;  %v3359_v23 = vpop.f32.mrf.mxu1 }
 0xe30   :  { %3367 = vrot.lane.b32.xlu0 %v3359_v23, %s4155_s1  ;;  %3103 = vrot.lane.b32.xlu2 %v3095_v35, %s4155_s1 }
 0xe37   :  { %v3098_v40 = vpop.f32.mrf.mxu3  ;;  %v3362_v11 = vpop.f32.mrf.mxu1 }
 0xe38   :  { %3369 = vrot.lane.b32.xlu1 %v3362_v11, %s4155_s1  ;;  %3105 = vrot.lane.b32.xlu0 %v3098_v40, %s4155_s1 }
 0xe3f   :  { %v3263_v5 = vpop.f32.mrf.mxu3 }
 0xe40   :  { %3443 = vrot.lane.b32.xlu1 %v3442_v37, %s4156_s6  ;;  %3435 = vrot.lane.b32.xlu0 %v3434_v46, %s4156_s6  ;;  %v3793_v37 = vld [vmem:[%s5342_s12] ss:$0 sm:$0xff] }
 0xe47   :  { %v3266_v3 = vpop.f32.mrf.mxu3 }
 0xe8a   :  { %v3104_v18 = vpop.permute.xlu2 %3103 }
 0xe8b   :  { %v3109_v7 = vsel %vm161_vm0, %v5258_v20, %v3104_v18 }
 0xe8c   :  { %v3111_v0 = vadd.f32 %v3109_v7, %v2845_v45 }
 0xea2   :  { %v3368_v10 = vpop.permute.xlu0 %3367 }
 0xea3   :  { %v3373_v41 = vsel %vm161_vm0, %v3263_v5, %v3368_v10 }
 0xea4   :  { %v3375_v42 = vadd.f32 %v3373_v41, %v3111_v0 }
 0xea6   :  { %v3377_v6 = vmul.f32 %v3375_v42, %v3375_v42 }
 0xea8   :  { %v3379_v21 = vmul.f32 %v3377_v6, %v3375_v42 }
 0xeaa   :  { %v3381_v8 = vmul.f32 0.044715, %v3379_v21  ;;  %v3370_v17 = vpop.permute.xlu1 %3369  ;;  %v3106_v25 = vpop.permute.xlu0 %3105 }
 0xeab   :  { %v3110_v20 = vsel %vm161_vm0, %v5261_v26, %v3106_v25  ;;  %v3374_v60 = vsel %vm161_vm0, %v3266_v3, %v3370_v17 }
 0xeac   :  { %v3383_v52 = vadd.f32 %v3381_v8, %v3375_v42  ;;  %v3112_v50 = vadd.f32 %v3110_v20, %v2846_v39 }
 0xeae   :  { %v3385_v53 = vmul.f32 0.7978846, %v3383_v52  ;;  %v3376_v15 = vadd.f32 %v3374_v60, %v3112_v50 }
 0xeb0   :  { %3954 = vtanh.f32 %v3385_v53  ;;  %v3378_v19 = vmul.f32 %v3376_v15, %v3376_v15 }
 0xeb2   :  { %v3380_v38 = vmul.f32 %v3378_v19, %v3376_v15  ;;  %v3444_v63 = vpop.permute.xlu1 %3443  ;;  %v3436_v34 = vpop.permute.xlu0 %3435 }
 0xeb3   :  { %3710 = vpush %v3436_v34 }
 0xeb4   :  { %v3382_v30 = vmul.f32 0.044715, %v3380_v38  ;;  %3712 = vpush %v3444_v63 }
 0xeb6   :  { %v3955_v43 = vpop.eup %3954  ;;  %v3384_v29 = vadd.f32 %v3382_v30, %v3376_v15 }
 0xeb7   :  { %v3389_v9 = vadd.f32 1.0, %v3955_v43 }
 0xeb8   :  { %v3386_v2 = vmul.f32 0.7978846, %v3384_v29 }
 0xeb9   :  { %v3391_v26 = vmul.f32 0.5, %v3389_v9 }
 0xeba   :  { %3956 = vtanh.f32 %v3386_v2 }
 0xebb   :  { %v3393_v55 = vmul.f32 %v3391_v26, %v3375_v42 }
 0xebd   :  { %3690 = vmatmul.msk.f32.vlgmr.msrb.gmra.mxu2 %vm328_vm1, %v3393_v55 }
 0xec0   :  { %v3957_v16 = vpop.eup %3956 }
 0xec1   :  { %v3390_v33 = vadd.f32 1.0, %v3957_v16 }
 0xec3   :  { %v3392_v4 = vmul.f32 0.5, %v3390_v33 }
 0xec5   :  { %v3394_v36 = vmul.f32 %v3392_v4, %v3376_v15 }
 0xec7   :  { %3691 = vmatmul.msk.f32.gmra.mxu2 %vm328_vm1, %v3394_v36 }
 0xee4   :  { %s3711_s28 = spop %3710 }
 0xee5   :  { %s3713_s29 = spop %3712  ;;  %v3438_v61 = vstv %s3711_s28 }
 0xee6   :  { %v3446_v56 = vstv %s3713_s29 }
 0xee7   :  { %v3448_v48 = vmul.f32 %v3446_v56, %v5057_v12  ;;  %v3449_v23 = vmul.f32 %v3446_v56, %v5065_v27 }
 0xf40   :  { %v3428_v1 = vpop.f32.mrf.mxu2 }
 0xf41   :  { %v3429_v31 = vadd.f32 %v3792_v57, %v3428_v1 }
 0xf43   :  { %v3440_v14 = vmul.f32 %v3438_v61, %v3429_v31 }
 0xf45   :  { %v3450_v28 = vadd.f32 %v3448_v48, %v3440_v14 }
 0xf47   :  { %3692 = vmatmul.msk.f32.vlgmr.msrb.gmra.mxu3 %vm328_vm1, %v3450_v28 }
 0xf4a   :  { %v3431_v58 = vpop.f32.mrf.mxu2 }
 0xf4b   :  { %v3432_v35 = vadd.f32 %v3792_v57, %v3431_v58 }
 0xf4d   :  { %v3441_v40 = vmul.f32 %v3438_v61, %v3432_v35 }
 0xf4f   :  { %v3451_v11 = vadd.f32 %v3449_v23, %v3441_v40 }
 0xf51   :  { %3693 = vmatmul.msk.f32.gmra.mxu3 %vm328_vm1, %v3451_v11 }
 0xfca   :  { %v3483_v47 = vpop.f32.mrf.mxu3 }
 0xfcb   :  { %v3484_v46 = vadd.f32 %v3793_v37, %v3483_v47 }
 0xfcd   :  { %3490 = vst.msk [vmem:[%s5343_s13] sm:$0xff] %vm3489_vm14, %v3484_v46 }
 0xfd4   :  { %v3486_v12 = vpop.f32.mrf.mxu3 }
 0xfd5   :  { %v3487_v24 = vadd.f32 %v3793_v37, %v3486_v12 }
 0xfd7   :  { %3491 = vst.msk [vmem:[%s5343_s13 + $0x8] sm:$0xff] %vm3489_vm14, %v3487_v24 }
 0xfd8   :  { %3496 = vsyncpa [#allocation3], 1 }
 0xfd9   :  { %3497 = vsyncpa [#allocation5], 1 }
 0xfda   :  { %3498 = vsyncpa [#allocation8], 1 }
 0xfdb   :  { %3499 = vsyncpa [#allocation11], 1 }

</bundles_post_ra>
